<compile_context>
chip_gen: v7x
topology: tpu7x:2x2x1
jax: 0.10.0
libtpu: 0.0.40
codegen_flags: <defaults>
</compile_context>

<pallas_src>
import functools

import jax
import jax.numpy as jnp
from jax import lax
from jax.experimental import pallas as pl
from jax.experimental.pallas import tpu as pltpu


def _round_up(x, m):
    return ((x + m - 1) // m) * m


# -----------------------------------------------------------------------------
# Pallas kernel: one (batch, layer) step per grid point.
#
# Per layer i (dilation = 2**i), conditioning frame l, offset t in [0, hop):
#   y[o, l*hop + t] = bias[o, l] + sum_{c,k} x_pad[c, l*hop + t + k*dil] * W[c,o,k,l]
#   x <- sigmoid(y[:Cin]) * tanh(y[Cin:])
# which matches torch's pad/unfold/einsum whenever dilation <= hop and
# hop % dilation == 0 (true for these configs).
# TODO(synk): the torch hop_size < dilation branch (extra pad + truncation) is
# not reproduced; shapes used here never hit it (guarded by an assert).
# -----------------------------------------------------------------------------
def _lvc_block_kernel(x_ref, w_ref, b_ref, o_ref, xbuf, *,
                      conv_layers, K, hop, KL, cin, cout, pad_left, L):
    # x_ref: (1, Cin, Lp)  zero-padded input; data occupies [pad_left, pad_left+L)
    # w_ref: (1, 1, KL, Cout, K*Cin)  bf16 weights for the CURRENT layer only
    # b_ref: (1, 1, KL, Cout)         f32 biases for the current layer
    # o_ref: (1, Cin, L)
    # xbuf : (Cin, Lp) f32 VMEM scratch; activation stays resident across layers
    lay = pl.program_id(1)

    @pl.when(lay == 0)
    def _():
        # (Re)load the input and its zero margins at the start of each batch item.
        xbuf[...] = x_ref[0].astype(jnp.float32)

    # Static dispatch over layers: exactly one branch runs per grid step, and
    # every tap-slice start / writeback offset inside it is a static constant.
    for i in range(conv_layers):
        @pl.when(lay == i)
        def _(i=i):
            dil = 2 ** i
            base = pad_left - dil * ((K - 1) // 2)        # >= 0 by construction

            # K dilated, full-length taps -> (K*Cin, L); then frame-major
            # (KL, K*Cin, hop) so ONE batched contraction covers all frames.
            taps = jnp.concatenate(
                [xbuf[:, base + k * dil: base + k * dil + L] for k in range(K)],
                axis=0)                                    # (K*Cin, L)
            taps = jnp.transpose(taps.reshape(K * cin, KL, hop), (1, 0, 2))

            w_l = w_ref[0, 0]                              # (KL, Cout, K*Cin) bf16
            y = jnp.einsum("fok,fkt->fot", w_l, taps.astype(w_l.dtype),
                           preferred_element_type=jnp.float32)  # (KL, Cout, hop)
            y = y + b_ref[0, 0][:, :, None]                # single broadcast add

            # Gated activation (cout == 2*cin), still frame-major; relayout the
            # (smaller) gated half only, back to the lane-dense (Cin, L).
            gated = jax.nn.sigmoid(y[:, :cin, :]) * jnp.tanh(y[:, cin:, :])
            out_t = jnp.transpose(gated, (1, 0, 2)).reshape(cin, L)

            if i + 1 < conv_layers:
                # Lane-aligned (pad_left % 128 == 0) unmasked writeback; the
                # zero margins of xbuf are never touched, so the next layer's
                # implicit zero padding stays intact.
                xbuf[:, pad_left:pad_left + L] = out_t
            else:
                # Output block index is constant across the layer axis, so this
                # is the only write that ever reaches HBM for this batch item.
                o_ref[0] = out_t.astype(o_ref.dtype)


def lvc_block_apply(x, kernels, bias, *, conv_layers, conv_kernel_size,
                    cond_hop_length):
    """x: (B, Cin, L); kernels: (B, layers, Cin, Cout, K, KL);
       bias: (B, layers, Cout, KL)."""
    B, cin, L = x.shape
    K = conv_kernel_size
    hop = cond_hop_length
    _, _, kcin, cout, kk, KL = kernels.shape
    assert kcin == cin and kk == K
    assert cout == 2 * cin, "gate split requires conv_out_channels == 2*in_channels"
    assert L == KL * hop, "length of (x, kernel) is not matched"
    for i in range(conv_layers):
        d = 2 ** i
        assert d <= hop and hop % d == 0, \
            "hop_size < dilation branch not implemented"  # TODO(synk)

    # bf16 MXU operands (accumulation stays f32 in-kernel).  Re-layout so each
    # frame's contraction matrix (Cout, K*Cin) sits on the trailing
    # (sublane, lane) dims: (B,layers,Cin,Cout,K,KL) -> (B,layers,KL,Cout,K*Cin).
    w = jnp.transpose(kernels.astype(jnp.bfloat16),
                      (0, 1, 5, 3, 4, 2)).reshape(B, conv_layers, KL, cout, K * cin)
    b = jnp.transpose(bias, (0, 1, 3, 2)).astype(jnp.float32)  # (B,layers,KL,Cout)

    # Pad once for the maximum dilation; the LEFT pad is rounded up to a lane
    # multiple so per-layer writebacks are unmasked, and the total length is a
    # lane multiple too.
    pad_max = (2 ** (conv_layers - 1)) * ((K - 1) // 2)
    pad_left = _round_up(pad_max, 128)
    Lp = _round_up(pad_left + L + pad_max, 128)
    x_pad = jnp.pad(x, ((0, 0), (0, 0), (pad_left, Lp - pad_left - L)))

    kern = functools.partial(
        _lvc_block_kernel, conv_layers=conv_layers, K=K, hop=hop, KL=KL,
        cin=cin, cout=cout, pad_left=pad_left, L=L)

    return pl.pallas_call(
        kern,
        out_shape=jax.ShapeDtypeStruct((B, cin, L), x.dtype),
        grid=(B, conv_layers),
        in_specs=[
            # Input block index is constant across the layer axis -> fetched once.
            pl.BlockSpec((1, cin, Lp), lambda bb, ll: (bb, 0, 0)),
            # One layer's weights per grid step -> bounded VMEM + pipelined DMA.
            pl.BlockSpec((1, 1, KL, cout, K * cin),
                         lambda bb, ll: (bb, ll, 0, 0, 0)),
            pl.BlockSpec((1, 1, KL, cout), lambda bb, ll: (bb, ll, 0, 0)),
        ],
        out_specs=pl.BlockSpec((1, cin, L), lambda bb, ll: (bb, 0, 0)),
        scratch_shapes=[pltpu.VMEM((cin, Lp), jnp.float32)],
        compiler_params=pltpu.CompilerParams(
            # TODO(synk): add a parallel frame-block axis so batch=1 still uses
            # both v7x TensorCores.
            dimension_semantics=("parallel", "arbitrary"),
            vmem_limit_bytes=64 * 1024 * 1024),
    )(x_pad, w, b)


# -----------------------------------------------------------------------------
# KernelPredictor (plain-JAX glue: produces the location-variable weights)
# -----------------------------------------------------------------------------
def _conv1d(x, w, b):
    # x: (B, Cin, T); w: (Cout, Cin, K) (PyTorch layout); padding = 0 (VALID)
    y = lax.conv_general_dilated(x, w, window_strides=(1,), padding="VALID",
                                 dimension_numbers=("NCH", "OIH", "NCH"))
    return y + b[None, :, None]


def _leaky_relu(x, slope=0.1):
    return jnp.where(x >= 0, x, slope * x)


def kernel_predictor_forward(c, p, conv_layers, conv_in, conv_out, K):
    h = _leaky_relu(_conv1d(c, p["w_in"], p["b_in"]))     # Conv1d(k=5)+LReLU
    r = _leaky_relu(_conv1d(h, p["w_r1"], p["b_r1"]))     # Dropout(0)=id, 1x1
    r = _conv1d(r, p["w_r2"], p["b_r2"])                  # 1x1 conv
    h = h + r
    k = _conv1d(h, p["w_k"], p["b_k"])                    # 1x1 -> kernels
    b = _conv1d(h, p["w_b"], p["b_b"])                    # 1x1 -> biases
    B = c.shape[0]
    KL = c.shape[2] - 4
    kernels = k.reshape(B, conv_layers, conv_in, conv_out, K, KL)
    bias = b.reshape(B, conv_layers, conv_out, KL)
    return kernels, bias


def lvc_block_forward(x, c, params, *, conv_layers, conv_kernel_size,
                      cond_hop_length):
    B, cin, L = x.shape
    KL = c.shape[2] - 4
    assert L == KL * cond_hop_length, "LVCNet length mismatch"
    kernels, bias = kernel_predictor_forward(
        c, params, conv_layers, cin, 2 * cin, conv_kernel_size)
    return lvc_block_apply(x, kernels, bias, conv_layers=conv_layers,
                           conv_kernel_size=conv_kernel_size,
                           cond_hop_length=cond_hop_length)


# -----------------------------------------------------------------------------
# Pure-JAX reference (same math, incl. the bf16 weight/tap operands) for a
# correctness check
# -----------------------------------------------------------------------------
def _lvc_layer_ref(x, kernel, bias, dilation, hop):
    B, cin, L = x.shape
    _, _, cout, K, KL = kernel.shape
    padding = dilation * ((K - 1) // 2)
    xp = jnp.pad(x, ((0, 0), (0, 0), (padding, padding)))
    taps = jnp.stack([xp[:, :, k * dilation:k * dilation + L]
                      for k in range(K)], axis=2)          # (B, Cin, K, L)
    taps = taps.reshape(B, cin, K, KL, hop)
    y = jnp.einsum("biklt,biokl->bolt",
                   taps.astype(jnp.bfloat16), kernel.astype(jnp.bfloat16),
                   preferred_element_type=jnp.float32) + bias[..., None]
    y = y.reshape(B, cout, L)
    return jax.nn.sigmoid(y[:, :cin]) * jnp.tanh(y[:, cin:])


def lvc_block_ref(x, c, params, *, conv_layers, conv_kernel_size,
                  cond_hop_length):
    kernels, bias = kernel_predictor_forward(
        c, params, conv_layers, x.shape[1], 2 * x.shape[1], conv_kernel_size)
    for i in range(conv_layers):
        x = _lvc_layer_ref(x, kernels[:, i], bias[:, i], 2 ** i,
                           cond_hop_length)
    return x


# -----------------------------------------------------------------------------
# Deterministic parameter init (PyTorch Conv1d weight layout: (out, in, k))
# -----------------------------------------------------------------------------
def init_params(key, cond_channels, in_channels, conv_layers, K, hidden):
    cout = 2 * in_channels
    k_ch = in_channels * cout * K * conv_layers
    b_ch = cout * conv_layers
    keys = jax.random.split(key, 10)

    def w(kk, shape, scale):
        return scale * jax.random.normal(kk, shape, jnp.float32)

    return {
        "w_in": w(keys[0], (hidden, cond_channels, 5), 0.2),
        "b_in": w(keys[1], (hidden,), 0.1),
        "w_r1": w(keys[2], (hidden, hidden, 1), 0.2),
        "b_r1": w(keys[3], (hidden,), 0.1),
        "w_r2": w(keys[4], (hidden, hidden, 1), 0.2),
        "b_r2": w(keys[5], (hidden,), 0.1),
        "w_k": w(keys[6], (k_ch, hidden, 1), 0.1),
        "b_k": w(keys[7], (k_ch,), 0.05),
        "w_b": w(keys[8], (b_ch, hidden, 1), 0.1),
        "b_b": w(keys[9], (b_ch,), 0.05),
    }


if __name__ == "__main__":
    # Small shapes consistent with the module's forward contract:
    # in_length == (cond_length - 4) * cond_hop_length
    batch = 2
    in_channels = 8
    cond_channels = 8
    conv_layers = 3            # dilations 1, 2, 4 (all <= hop, divide hop)
    conv_kernel_size = 3
    cond_hop_length = 16
    kpnet_hidden = 16
    cond_length = 12           # KL = 8
    in_length = (cond_length - 4) * cond_hop_length   # 128

    key = jax.random.PRNGKey(0)
    kx, kc, kp = jax.random.split(key, 3)
    x = jax.random.normal(kx, (batch, in_channels, in_length), jnp.float32)
    c = jax.random.normal(kc, (batch, cond_channels, cond_length), jnp.float32)
    params = init_params(kp, cond_channels, in_channels, conv_layers,
                         conv_kernel_size, kpnet_hidden)

    fwd = jax.jit(functools.partial(
        lvc_block_forward, conv_layers=conv_layers,
        conv_kernel_size=conv_kernel_size, cond_hop_length=cond_hop_length))
    out = jax.block_until_ready(fwd(x, c, params))
    assert out.shape == (batch, in_channels, in_length)

    ref = lvc_block_ref(x, c, params, conv_layers=conv_layers,
                        conv_kernel_size=conv_kernel_size,
                        cond_hop_length=cond_hop_length)
    max_err = float(jnp.max(jnp.abs(out - ref)))
    assert jnp.allclose(out, ref, atol=1e-2, rtol=1e-2), max_err

    print("KERNEL_OK")
</pallas_src>

<mosaic_0001>
module attributes {stable_mosaic.version = 11 : i64} {
  func.func @_lvc_block_kernel(%arg0: i32, %arg1: i32, %arg2: memref<1x8x384xf32, #tpu.memory_space<vmem>>, %arg3: memref<1x1x8x16x24xbf16, #tpu.memory_space<vmem>>, %arg4: memref<1x1x8x16xf32, #tpu.memory_space<vmem>>, %arg5: memref<1x8x128xf32, #tpu.memory_space<vmem>>, %arg6: memref<8x384xf32, #tpu.memory_space<vmem>>) attributes {dimension_semantics = [#tpu.dimension_semantics<parallel>, #tpu.dimension_semantics<arbitrary>], iteration_bounds = array<i64: 2, 3>, scalar_prefetch = 0 : i64, scratch_operands = 1 : i64, tpu.core_type = #tpu.core_type<tc>, window_params = [{transform_indices = @transform_0, window_bounds = array<i64: 1, 8, 384>}, {transform_indices = @transform_1, window_bounds = array<i64: 1, 1, 8, 16, 24>}, {transform_indices = @transform_2, window_bounds = array<i64: 1, 1, 8, 16>}, {transform_indices = @transform_3, window_bounds = array<i64: 1, 8, 128>}]} {
    %c0_i32 = arith.constant 0 : i32
    %0 = arith.cmpi eq, %arg1, %c0_i32 : i32
    %1 = arith.extui %0 : i1 to i32
    %c0_i32_0 = arith.constant 0 : i32
    %2 = arith.cmpi ne, %1, %c0_i32_0 : i32
    scf.if %2 {
      %c0 = arith.constant 0 : index
      %c0_5 = arith.constant 0 : index
      %c0_6 = arith.constant 0 : index
      %12 = vector.load %arg2[%c0, %c0_5, %c0_6] : memref<1x8x384xf32, #tpu.memory_space<vmem>>, vector<1x8x384xf32>
      %13 = vector.shape_cast %12 : vector<1x8x384xf32> to vector<8x384xf32>
      %c0_7 = arith.constant 0 : index
      %c0_8 = arith.constant 0 : index
      %14 = vector.load %arg6[%c0_7, %c0_8] : memref<8x384xf32, #tpu.memory_space<vmem>>, vector<8x384xf32>
      tpu.vector_store %arg6[%c0_7, %c0_8], %13 {strides = array<i32>} : memref<8x384xf32, #tpu.memory_space<vmem>>, vector<8x384xf32>,
    } else {
    }
    %c0_i32_1 = arith.constant 0 : i32
    %3 = arith.cmpi eq, %arg1, %c0_i32_1 : i32
    %4 = arith.extui %3 : i1 to i32
    %c0_i32_2 = arith.constant 0 : i32
    %5 = arith.cmpi ne, %4, %c0_i32_2 : i32
    scf.if %5 {
      %c0 = arith.constant 0 : index
      %c127 = arith.constant 127 : index
      %12 = vector.load %arg6[%c0, %c127] : memref<8x384xf32, #tpu.memory_space<vmem>>, vector<8x128xf32>
      %c0_5 = arith.constant 0 : index
      %c128 = arith.constant 128 : index
      %13 = vector.load %arg6[%c0_5, %c128] : memref<8x384xf32, #tpu.memory_space<vmem>>, vector<8x128xf32>
      %c0_6 = arith.constant 0 : index
      %c129 = arith.constant 129 : index
      %14 = vector.load %arg6[%c0_6, %c129] : memref<8x384xf32, #tpu.memory_space<vmem>>, vector<8x128xf32>
      %15 = tpu.concatenate %12, %13, %14 in 0 : vector<8x128xf32>, vector<8x128xf32>, vector<8x128xf32> -> vector<24x128xf32>
      %16 = vector.shape_cast %15 : vector<24x128xf32> to vector<24x8x16xf32>
      %17 = tpu.transpose %16, [1, 0, 2] : vector<24x8x16xf32> -> vector<8x24x16xf32>
      %c0_7 = arith.constant 0 : index
      %c0_8 = arith.constant 0 : index
      %c0_9 = arith.constant 0 : index
      %c0_10 = arith.constant 0 : index
      %c0_11 = arith.constant 0 : index
      %18 = vector.load %arg3[%c0_7, %c0_8, %c0_9, %c0_10, %c0_11] : memref<1x1x8x16x24xbf16, #tpu.memory_space<vmem>>, vector<1x1x8x16x24xbf16>
      %19 = vector.shape_cast %18 : vector<1x1x8x16x24xbf16> to vector<8x16x24xbf16>
      %20 = arith.truncf %17 : vector<8x24x16xf32> to vector<8x24x16xbf16>
      "tpu.trace_start"() <{level = 10 : i32, message = "fok,fkt->fot"}> : () -> ()
      %cst = arith.constant dense<0.000000e+00> : vector<8x16x16xf32>
      %21 = tpu.matmul %19, %20, %cst {dimension_numbers = #tpu.dot_dimension_numbers<[2], [1], [1], [2], [0, 0, 0, 1, 1, 2], [0], [0]>} : vector<8x16x24xbf16>, vector<8x24x16xbf16>, vector<8x16x16xf32> -> vector<8x16x16xf32>
      "tpu.trace_stop"() : () -> ()
      %c0_12 = arith.constant 0 : index
      %c0_13 = arith.constant 0 : index
      %c0_14 = arith.constant 0 : index
      %c0_15 = arith.constant 0 : index
      %22 = vector.load %arg4[%c0_12, %c0_13, %c0_14, %c0_15] : memref<1x1x8x16xf32, #tpu.memory_space<vmem>>, vector<1x1x8x16xf32>
      %23 = vector.shape_cast %22 : vector<1x1x8x16xf32> to vector<8x16xf32>
      %24 = vector.shape_cast %23 : vector<8x16xf32> to vector<8x16x1xf32>
      %25 = vector.broadcast %24 : vector<8x16x1xf32> to vector<8x16x16xf32>
      %26 = arith.addf %21, %25 : vector<8x16x16xf32>
      %27 = vector.extract_strided_slice %26 {offsets = [0, 0, 0], sizes = [8, 8, 16], strides = [1, 1, 1]} : vector<8x16x16xf32> to vector<8x8x16xf32>
      %28 = arith.negf %27 : vector<8x8x16xf32>
      %29 = math.exp %28 : vector<8x8x16xf32>
      %cst_16 = arith.constant 1.000000e+00 : f32
      %30 = vector.broadcast %cst_16 : f32 to vector<8x8x16xf32>
      %31 = arith.addf %30, %29 : vector<8x8x16xf32>
      %32 = arith.divf %30, %31 : vector<8x8x16xf32>
      %33 = vector.extract_strided_slice %26 {offsets = [0, 8, 0], sizes = [8, 8, 16], strides = [1, 1, 1]} : vector<8x16x16xf32> to vector<8x8x16xf32>
      %34 = math.tanh %33 : vector<8x8x16xf32>
      %35 = arith.mulf %32, %34 : vector<8x8x16xf32>
      %36 = tpu.transpose %35, [1, 0, 2] : vector<8x8x16xf32> -> vector<8x8x16xf32>
      %37 = vector.shape_cast %36 : vector<8x8x16xf32> to vector<8x128xf32>
      %c0_17 = arith.constant 0 : index
      %c128_18 = arith.constant 128 : index
      %38 = vector.load %arg6[%c0_17, %c128_18] : memref<8x384xf32, #tpu.memory_space<vmem>>, vector<8x128xf32>
      tpu.vector_store %arg6[%c0_17, %c128_18], %37 {strides = array<i32>} : memref<8x384xf32, #tpu.memory_space<vmem>>, vector<8x128xf32>,
    } else {
    }
    %c1_i32 = arith.constant 1 : i32
    %6 = arith.cmpi eq, %arg1, %c1_i32 : i32
    %7 = arith.extui %6 : i1 to i32
    %c0_i32_3 = arith.constant 0 : i32
    %8 = arith.cmpi ne, %7, %c0_i32_3 : i32
    scf.if %8 {
      %c0 = arith.constant 0 : index
      %c126 = arith.constant 126 : index
      %12 = vector.load %arg6[%c0, %c126] : memref<8x384xf32, #tpu.memory_space<vmem>>, vector<8x128xf32>
      %c0_5 = arith.constant 0 : index
      %c128 = arith.constant 128 : index
      %13 = vector.load %arg6[%c0_5, %c128] : memref<8x384xf32, #tpu.memory_space<vmem>>, vector<8x128xf32>
      %c0_6 = arith.constant 0 : index
      %c130 = arith.constant 130 : index
      %14 = vector.load %arg6[%c0_6, %c130] : memref<8x384xf32, #tpu.memory_space<vmem>>, vector<8x128xf32>
      %15 = tpu.concatenate %12, %13, %14 in 0 : vector<8x128xf32>, vector<8x128xf32>, vector<8x128xf32> -> vector<24x128xf32>
      %16 = vector.shape_cast %15 : vector<24x128xf32> to vector<24x8x16xf32>
      %17 = tpu.transpose %16, [1, 0, 2] : vector<24x8x16xf32> -> vector<8x24x16xf32>
      %c0_7 = arith.constant 0 : index
      %c0_8 = arith.constant 0 : index
      %c0_9 = arith.constant 0 : index
      %c0_10 = arith.constant 0 : index
      %c0_11 = arith.constant 0 : index
      %18 = vector.load %arg3[%c0_7, %c0_8, %c0_9, %c0_10, %c0_11] : memref<1x1x8x16x24xbf16, #tpu.memory_space<vmem>>, vector<1x1x8x16x24xbf16>
      %19 = vector.shape_cast %18 : vector<1x1x8x16x24xbf16> to vector<8x16x24xbf16>
      %20 = arith.truncf %17 : vector<8x24x16xf32> to vector<8x24x16xbf16>
      "tpu.trace_start"() <{level = 10 : i32, message = "fok,fkt->fot"}> : () -> ()
      %cst = arith.constant dense<0.000000e+00> : vector<8x16x16xf32>
      %21 = tpu.matmul %19, %20, %cst {dimension_numbers = #tpu.dot_dimension_numbers<[2], [1], [1], [2], [0, 0, 0, 1, 1, 2], [0], [0]>} : vector<8x16x24xbf16>, vector<8x24x16xbf16>, vector<8x16x16xf32> -> vector<8x16x16xf32>
      "tpu.trace_stop"() : () -> ()
      %c0_12 = arith.constant 0 : index
      %c0_13 = arith.constant 0 : index
      %c0_14 = arith.constant 0 : index
      %c0_15 = arith.constant 0 : index
      %22 = vector.load %arg4[%c0_12, %c0_13, %c0_14, %c0_15] : memref<1x1x8x16xf32, #tpu.memory_space<vmem>>, vector<1x1x8x16xf32>
      %23 = vector.shape_cast %22 : vector<1x1x8x16xf32> to vector<8x16xf32>
      %24 = vector.shape_cast %23 : vector<8x16xf32> to vector<8x16x1xf32>
      %25 = vector.broadcast %24 : vector<8x16x1xf32> to vector<8x16x16xf32>
      %26 = arith.addf %21, %25 : vector<8x16x16xf32>
      %27 = vector.extract_strided_slice %26 {offsets = [0, 0, 0], sizes = [8, 8, 16], strides = [1, 1, 1]} : vector<8x16x16xf32> to vector<8x8x16xf32>
      %28 = arith.negf %27 : vector<8x8x16xf32>
      %29 = math.exp %28 : vector<8x8x16xf32>
      %cst_16 = arith.constant 1.000000e+00 : f32
      %30 = vector.broadcast %cst_16 : f32 to vector<8x8x16xf32>
      %31 = arith.addf %30, %29 : vector<8x8x16xf32>
      %32 = arith.divf %30, %31 : vector<8x8x16xf32>
      %33 = vector.extract_strided_slice %26 {offsets = [0, 8, 0], sizes = [8, 8, 16], strides = [1, 1, 1]} : vector<8x16x16xf32> to vector<8x8x16xf32>
      %34 = math.tanh %33 : vector<8x8x16xf32>
      %35 = arith.mulf %32, %34 : vector<8x8x16xf32>
      %36 = tpu.transpose %35, [1, 0, 2] : vector<8x8x16xf32> -> vector<8x8x16xf32>
      %37 = vector.shape_cast %36 : vector<8x8x16xf32> to vector<8x128xf32>
      %c0_17 = arith.constant 0 : index
      %c128_18 = arith.constant 128 : index
      %38 = vector.load %arg6[%c0_17, %c128_18] : memref<8x384xf32, #tpu.memory_space<vmem>>, vector<8x128xf32>
      tpu.vector_store %arg6[%c0_17, %c128_18], %37 {strides = array<i32>} : memref<8x384xf32, #tpu.memory_space<vmem>>, vector<8x128xf32>,
    } else {
    }
    %c2_i32 = arith.constant 2 : i32
    %9 = arith.cmpi eq, %arg1, %c2_i32 : i32
    %10 = arith.extui %9 : i1 to i32
    %c0_i32_4 = arith.constant 0 : i32
    %11 = arith.cmpi ne, %10, %c0_i32_4 : i32
    scf.if %11 {
      %c0 = arith.constant 0 : index
      %c124 = arith.constant 124 : index
      %12 = vector.load %arg6[%c0, %c124] : memref<8x384xf32, #tpu.memory_space<vmem>>, vector<8x128xf32>
      %c0_5 = arith.constant 0 : index
      %c128 = arith.constant 128 : index
      %13 = vector.load %arg6[%c0_5, %c128] : memref<8x384xf32, #tpu.memory_space<vmem>>, vector<8x128xf32>
      %c0_6 = arith.constant 0 : index
      %c132 = arith.constant 132 : index
      %14 = vector.load %arg6[%c0_6, %c132] : memref<8x384xf32, #tpu.memory_space<vmem>>, vector<8x128xf32>
      %15 = tpu.concatenate %12, %13, %14 in 0 : vector<8x128xf32>, vector<8x128xf32>, vector<8x128xf32> -> vector<24x128xf32>
      %16 = vector.shape_cast %15 : vector<24x128xf32> to vector<24x8x16xf32>
      %17 = tpu.transpose %16, [1, 0, 2] : vector<24x8x16xf32> -> vector<8x24x16xf32>
      %c0_7 = arith.constant 0 : index
      %c0_8 = arith.constant 0 : index
      %c0_9 = arith.constant 0 : index
      %c0_10 = arith.constant 0 : index
      %c0_11 = arith.constant 0 : index
      %18 = vector.load %arg3[%c0_7, %c0_8, %c0_9, %c0_10, %c0_11] : memref<1x1x8x16x24xbf16, #tpu.memory_space<vmem>>, vector<1x1x8x16x24xbf16>
      %19 = vector.shape_cast %18 : vector<1x1x8x16x24xbf16> to vector<8x16x24xbf16>
      %20 = arith.truncf %17 : vector<8x24x16xf32> to vector<8x24x16xbf16>
      "tpu.trace_start"() <{level = 10 : i32, message = "fok,fkt->fot"}> : () -> ()
      %cst = arith.constant dense<0.000000e+00> : vector<8x16x16xf32>
      %21 = tpu.matmul %19, %20, %cst {dimension_numbers = #tpu.dot_dimension_numbers<[2], [1], [1], [2], [0, 0, 0, 1, 1, 2], [0], [0]>} : vector<8x16x24xbf16>, vector<8x24x16xbf16>, vector<8x16x16xf32> -> vector<8x16x16xf32>
      "tpu.trace_stop"() : () -> ()
      %c0_12 = arith.constant 0 : index
      %c0_13 = arith.constant 0 : index
      %c0_14 = arith.constant 0 : index
      %c0_15 = arith.constant 0 : index
      %22 = vector.load %arg4[%c0_12, %c0_13, %c0_14, %c0_15] : memref<1x1x8x16xf32, #tpu.memory_space<vmem>>, vector<1x1x8x16xf32>
      %23 = vector.shape_cast %22 : vector<1x1x8x16xf32> to vector<8x16xf32>
      %24 = vector.shape_cast %23 : vector<8x16xf32> to vector<8x16x1xf32>
      %25 = vector.broadcast %24 : vector<8x16x1xf32> to vector<8x16x16xf32>
      %26 = arith.addf %21, %25 : vector<8x16x16xf32>
      %27 = vector.extract_strided_slice %26 {offsets = [0, 0, 0], sizes = [8, 8, 16], strides = [1, 1, 1]} : vector<8x16x16xf32> to vector<8x8x16xf32>
      %28 = arith.negf %27 : vector<8x8x16xf32>
      %29 = math.exp %28 : vector<8x8x16xf32>
      %cst_16 = arith.constant 1.000000e+00 : f32
      %30 = vector.broadcast %cst_16 : f32 to vector<8x8x16xf32>
      %31 = arith.addf %30, %29 : vector<8x8x16xf32>
      %32 = arith.divf %30, %31 : vector<8x8x16xf32>
      %33 = vector.extract_strided_slice %26 {offsets = [0, 8, 0], sizes = [8, 8, 16], strides = [1, 1, 1]} : vector<8x16x16xf32> to vector<8x8x16xf32>
      %34 = math.tanh %33 : vector<8x8x16xf32>
      %35 = arith.mulf %32, %34 : vector<8x8x16xf32>
      %36 = tpu.transpose %35, [1, 0, 2] : vector<8x8x16xf32> -> vector<8x8x16xf32>
      %37 = vector.shape_cast %36 : vector<8x8x16xf32> to vector<8x128xf32>
      %c0_17 = arith.constant 0 : index
      %c0_18 = arith.constant 0 : index
      %c0_19 = arith.constant 0 : index
      %38 = vector.load %arg5[%c0_17, %c0_18, %c0_19] : memref<1x8x128xf32, #tpu.memory_space<vmem>>, vector<1x8x128xf32>
      %39 = vector.shape_cast %38 : vector<1x8x128xf32> to vector<8x128xf32>
      %40 = vector.shape_cast %37 : vector<8x128xf32> to vector<1x8x128xf32>
      tpu.vector_store %arg5[%c0_17, %c0_18, %c0_19], %40 {strides = array<i32>} : memref<1x8x128xf32, #tpu.memory_space<vmem>>, vector<1x8x128xf32>,
    } else {
    }
    return
  }
  func.func @transform_0(%arg0: i32, %arg1: i32) -> (i32, i32, i32) {
    %c0_i32 = arith.constant 0 : i32
    %c0_i32_0 = arith.constant 0 : i32
    %c0_i32_1 = arith.constant 0 : i32
    return %arg0, %c0_i32, %c0_i32_0 : i32, i32, i32
  }
  func.func @transform_1(%arg0: i32, %arg1: i32) -> (i32, i32, i32, i32, i32) {
    %c0_i32 = arith.constant 0 : i32
    %c0_i32_0 = arith.constant 0 : i32
    %c0_i32_1 = arith.constant 0 : i32
    %c0_i32_2 = arith.constant 0 : i32
    return %arg0, %arg1, %c0_i32, %c0_i32_0, %c0_i32_1 : i32, i32, i32, i32, i32
  }
  func.func @transform_2(%arg0: i32, %arg1: i32) -> (i32, i32, i32, i32) {
    %c0_i32 = arith.constant 0 : i32
    %c0_i32_0 = arith.constant 0 : i32
    %c0_i32_1 = arith.constant 0 : i32
    return %arg0, %arg1, %c0_i32, %c0_i32_0 : i32, i32, i32, i32
  }
  func.func @transform_3(%arg0: i32, %arg1: i32) -> (i32, i32, i32) {
    %c0_i32 = arith.constant 0 : i32
    %c0_i32_0 = arith.constant 0 : i32
    %c0_i32_1 = arith.constant 0 : i32
    return %arg0, %c0_i32, %c0_i32_0 : i32, i32, i32
  }
}

</mosaic_0001>

<bundles_post_ra>
// kernel: lvc_block_forward.1
= control target key start
LH: loop header
LB: loop body
LE: loop exit
PB: predicated region body
PF: predicated region fallthrough
CT: control target
= control target key end

     0   :  { %s8645_s0 = inlined_call_operand.hbm [shape: f32[2,8,384], index: 0, kind: input, shape index: {}]   ;;  %s8646_s1 = inlined_call_operand.hbm [shape: bf16[2,3,8,16,24], index: 1, kind: input, shape index: {}]   ;;  %s8647_s2 = inlined_call_operand.hbm [shape: f32[2,3,8,16], index: 2, kind: input, shape index: {}]   ;;  %s8648_s3 = inlined_call_operand.hbm [shape: f32[2,8,128], index: 3, kind: output, shape index: {}]  }
   0x1   :  { %8661 = sst [smem:[#allocation20_spill]] %s8645_s0 }
   0x2   :  { %8662 = sst [smem:[#allocation21_spill]] %s8646_s1 }
   0x3   :  { %8663 = sst [smem:[#allocation22_spill]] %s8648_s3 }
   0x4   :  { %8 = vsyncpa [#allocation4], 0 }
   0x5   :  { %10 = vsyncpa [#allocation4 + $0x1], 0 }
   0x6   :  { %11 = vsyncpa [#allocation7], 0 }
   0x7   :  { %13 = vsyncpa [#allocation7 + $0x1], 0 }
   0x8   :  { %14 = vsyncpa [#allocation5], 0 }
   0x9   :  { %16 = vsyncpa [#allocation5 + $0x1], 0  ;;  %s7124_s12 = smov 0   ;;  %s7126_s13 = smov 0  }
   0xa   :  { %s7128_s14 = smov 0   ;;  %s7130_s15 = smov 0  }
   0xb   :  { %s7132_s16 = smov 0   ;;  %s7134_s17 = smov 0  }
   0xc   :  { %s7136_s18 = smov 0   ;;  %s7138_s19 = smov 0  }
   0xd   :  { %s7140_s20 = smov 0   ;;  %s7142_s21 = smov 0  }
   0xe   :  { %s7144_s22 = smov 0  }
   0xf LB: > { %8664 = sst [smem:[#allocation13_spill]] %s7034_s17  ;;  %s31_s23 = sadd.s32 1, %s7046_s20  ;;  %s7054_s22 = sphi %s7144_s22, %s22_s22   ;;  %s7050_s21 = sphi %s7142_s21, %s8710_s21   ;;  %s7046_s20 = sphi %s7140_s20, %s8709_s20   ;;  %s7042_s19 = sphi %s7138_s19, %s8708_s19   ;;  %s7038_s18 = sphi %s7136_s18, %s8707_s18   ;;  %s7034_s17 = sphi %s7134_s17, %s8699_s17   ;;  %s7030_s16 = sphi %s7132_s16, %s8706_s16   ;;  %s7026_s15 = sphi %s7130_s15, %s8705_s15   ;;  %s7022_s14 = sphi %s7128_s14, %s8704_s14   ;;  %s7018_s13 = sphi %s7126_s13, %s8703_s13   ;;  %s7014_s12 = sphi %s7124_s12, %s8702_s12  }
  0x10   : > { %8665 = sst [smem:[#allocation14_spill]] %s7042_s19  ;;  %p8650_p0 = scmp.eq.s32.totalorder %s7054_s22, 0 }
  0x11   : > { %p7181_p1 = scmp.ge.s32.totalorder %s31_s23, 3  ;;  %p76_p2 = scmp.ne.s32.totalorder %s7022_s14, %s7018_s13 }
  0x12   : > { %p8649_p5 = scmp.lt.s32.totalorder %s7054_s22, 6  ;;  %s179_s27 = sand.u32 1, %s7054_s22  }
  0x13   : > { %s8712_s23 = smov (%p7181_p1, %s31_s23), 0  ;;  %p78_p4 = por %p76_p2, %p8650_p0 }
  0x14   : > { %8667 = sst [smem:[#allocation15_spill]] %s8712_s23  ;;  %s65_s26 = ssub.s32 %s7046_s20, %s8712_s23 }
  0x15   : > { %s8651_s28 = sand.u32 1, %s7022_s14   ;;  %s6062_s30 = sshll.u32 %s7046_s20, 4 }
  0x16   : > { %s6061_s29 = sshll.u32 %s8651_s28, 6  ;;  %s6511_s4 = smul.u32 48, %s7050_s21 }
  0x17   : > { %s183_s5 = scalar_lea.vmem [#allocation6], %s6061_s29  ;;  %p7209_p6 = pnand %p8649_p5, %p78_p4 }
  0x18   : > { %s192_s6 = sshll.u32 %s183_s5, 4  ;;  %s189_s8 = sadd.s32 %s6511_s4, %s6062_s30  ;;  %s7205_s6 = int_to_ptr.vmem [resolvable:$true] %s192_s6 }
  0x19   : > { %s6063_s9 = sshll.u32 %s189_s8, 6  ;;  %s8669_s1 = sld [smem:[#allocation21_spill]] }
  0x1a   : > { %s7218_s29 = scalar_lea.sflag [#allocation7], %s179_s27  ;;  %p8654_p8 = pneg %p7209_p6 }
  0x1f   : > { %s7216_s25 = scalar_lea.hbm %s8669_s1, %s6063_s9  ;;  %s6843_s8 = scalar_lea.hbm %s8669_s1, 6144 }
  0x20   : > { %s6838_s5 = scalar_lea.hbm %s7216_s25, 1024  ;;  %p6844_p11 = scmp.lt.u32.totalorder %s7216_s25, %s8669_s1 }
  0x21   : > { %p6839_p7 = scmp.ne.s32.totalorder %s7216_s25, %s6838_s5  ;;  %p6845_p12 = scmp.lt.u32.totalorder %s6843_s8, %s6838_s5 }
  0x22   : > { %p6847_p2 = scmp.lt.u32.totalorder %s6838_s5, %s7216_s25 }
  0x23   : > { %p6841_p9 = pnand %p8654_p8, %p6839_p7  ;;  %p6846_p13 = por %p6845_p12, %p6844_p11 }
  0x25   : > { %p6842_p10 = pneg %p6841_p9  ;;  %p6848_p4 = por %p6847_p2, %p6846_p13 }
  0x27   : > { %p6849_p5 = pnand %p6848_p4, %p6842_p10 }
  0x29   : > { %6852 = shalt.err (!%p6849_p5)
}
  0x2a   : > { %s6853_s27 = scalar_lea.vmem %s7205_s6, 1024  ;;  %s7056_s11 = smov [#allocation6]  }
  0x2b   : > { %p6854_p7 = scmp.ne.s32.totalorder %s7205_s6, %s6853_s27  ;;  %s6858_s30 = sshll.u32 %s7056_s11, 4  ;;  %s6859_s30 = int_to_ptr.vmem [resolvable:$false] %s6858_s30 }
  0x2c   : > { %s6860_s4 = scalar_lea.vmem %s6859_s30, 2048  ;;  %p6861_p0 = scmp.lt.s32.totalorder %s7205_s6, %s6859_s30 }
  0x2d   : > { %p6856_p9 = pnand %p6854_p7, %p8654_p8  ;;  %p6862_p11 = scmp.lt.s32.totalorder %s6860_s4, %s6853_s27 }
  0x2f   : > { %p6857_p3 = pneg %p6856_p9  ;;  %p6863_p12 = por %p6862_p11, %p6861_p0 }
  0x31   : > { %p6864_p13 = pnand %p6863_p12, %p6857_p3 }
  0x33   : > { %6867 = shalt.err (!%p6864_p13)
}
  0x34   : > { %s7057_s5 = smov 64   ;;  %s7058_s8 = smov 4  }
  0x35   : > { %6528 = dma.hbm_to_vmem [thread:$0]  (!%p7209_p6), %s7216_s25, 1024, %s7205_s6, %s7218_s29, %s7057_s5, %s7057_s5, %s7058_s8  }
  0x36   : > { %p6066_p0 = scmp.ge.s32.totalorder %s7054_s22, 1  ;;  %p220_p3 = scmp.lt.s32.totalorder %s7054_s22, 7 }
  0x37   : > { %s7253_s10 = sadd.s32 4294967295, %s7054_s22   ;;  %s6057_s27 = sadd.s32 4294967294, %s7054_s22  }
  0x38   : > { %p7248_p5 = pnand %p6066_p0, %p220_p3  ;;  %s34_s11 = sadd.s32 1, %s7050_s21 }
  0x39   : > { %s8714_s11 = smov (!%p7181_p1, %s34_s11), %s7050_s21  ;;  %s41_s25 = sadd.s32 1, %s7034_s17 }
  0x3a   : > { %s8670_s9 = scalar_select %p7248_p5, 1, 0 }
  0x3b   : > { %p48_p10 = scmp.ne.s32.totalorder %s7034_s17, %s7030_s16  ;;  %p36_p2 = scmp.ge.s32.totalorder %s8714_s11, 2 }
  0x3c   : > { %p54_p4 = scmp.ne.s32.totalorder %s7030_s16, %s7026_s15  ;;  %p8671_p7 = scmp.eq.s32.totalorder %s7054_s22, 0 }
  0x3d   : > { %p55_p11 = scmp.eq.s32.totalorder %s7253_s10, 0  ;;  %s8716_s11 = smov (%p36_p2, %s8714_s11), 0 }
  0x3e   : > { %p7270_p9 = por %p8671_p7, %p48_p10  ;;  %8673 = sst [smem:[#allocation16_spill]] %s8716_s11 }
  0x3f   : > { %p7280_p1 = por %p55_p11, %p54_p4  ;;  %p8675_p12 = scmp.ne.s32.totalorder %s7018_s13, %s7014_s12 }
  0x40   : > { %s38_s4 = ssub.s32 %s7050_s21, %s8716_s11  ;;  %p134_p0 = scmp.eq.s32.totalorder %s7253_s10, 5 }
  0x41   : > { %s8674_s24 = scalar_select %p7280_p1, 1, 0 }
  0x42   : > { %p7287_p13 = por %p8675_p12, %p55_p11  ;;  %p39_p3 = scmp.eq.s32.totalorder %s38_s4, 0 }
  0x43   : > { %s66_s5 = sor.u32 %s65_s26, %s38_s4  ;;  %p7300_p7 = por %p134_p0, %p48_p10 }
  0x44   : > { %s8676_s30 = scalar_select %p7287_p13, 1, 0 }
  0x45   : > { %p67_p2 = scmp.eq.s32.totalorder %s66_s5, 0  ;;  %s8679_s1 = sadd.s32 1, %s7022_s14 }
  0x46   : > { %s8677_s8 = scalar_select %p7300_p7, 1, 0 }
  0x47   : > { %s7305_s28 = scalar_select %p39_p3, %s7034_s17, %s41_s25  }
  0x48   : > { %s7310_s3 = scalar_select %p67_p2, %s7022_s14, %s8679_s1  }
  0x49   : > { %8678 = sst [smem:[#allocation17_spill]] %s7305_s28  ;;  %p140_p11 = scmp.eq.s32.totalorder %s6057_s27, 5 }
  0x4a   : > { %8680 = sst [smem:[#allocation18_spill]] %s7310_s3  ;;  %s160_s12 = sand.u32 1, %s7034_s17  }
  0x4b   : > { %s6509_s19 = smul.u32 24, %s160_s12  ;;  %p7316_p12 = por %p140_p11, %p54_p4 }
  0x4c   : > { %s6510_s26 = smul.u32 384, %s7050_s21  ;;  %p8683_p8 = scmp.lt.s32.totalorder %s7054_s22, 6 }
  0x4d   : > { %s8681_s11 = scalar_select %p7316_p12, 1, 0 }
  0x4e   : > { %p7325_p10 = pnand %p8683_p8, %p7270_p9  ;;  %s8685_s0 = sld [smem:[#allocation20_spill]] }
  0x4f   : > { %8682 = sst [smem:[#allocation19_spill]] %s8681_s11  ;;  %s164_s27 = scalar_lea.vmem [#allocation3], %s6509_s19 }
  0x50   : > { %s172_s23 = sshll.u32 %s164_s27, 4  ;;  %s161_s6 = scalar_lea.sflag [#allocation4], %s160_s12  ;;  %s7334_s23 = int_to_ptr.vmem [resolvable:$true] %s172_s23 }
  0x51   : > { %p6870_p4 = pneg %p7325_p10 }
  0x54   : > { %s7332_s1 = scalar_lea.hbm %s8685_s0, %s6510_s26  ;;  %s6873_s5 = scalar_lea.hbm %s8685_s0, 768 }
  0x55   : > { %s6868_s28 = scalar_lea.hbm %s7332_s1, 384  ;;  %p6874_p3 = scmp.lt.u32.totalorder %s7332_s1, %s8685_s0 }
  0x56   : > { %p6869_p8 = scmp.ne.s32.totalorder %s7332_s1, %s6868_s28  ;;  %p6875_p2 = scmp.lt.u32.totalorder %s6873_s5, %s6868_s28 }
  0x57   : > { %p6877_p12 = scmp.lt.u32.totalorder %s6868_s28, %s7332_s1 }
  0x58   : > { %p6871_p9 = pnand %p6870_p4, %p6869_p8  ;;  %p6876_p11 = por %p6875_p2, %p6874_p3 }
  0x5a   : > { %p6872_p0 = pneg %p6871_p9  ;;  %p6878_p7 = por %p6877_p12, %p6876_p11 }
  0x5c   : > { %p6879_p13 = pnand %p6878_p7, %p6872_p0 }
  0x5e   : > { %6882 = shalt.err (!%p6879_p13)
}
  0x5f   : > { %s6883_s19 = scalar_lea.vmem %s7334_s23, 384  ;;  %s7059_s12 = smov [#allocation3]  }
  0x60   : > { %p6884_p8 = scmp.ne.s32.totalorder %s7334_s23, %s6883_s19  ;;  %s6888_s27 = sshll.u32 %s7059_s12, 4  ;;  %s6889_s27 = int_to_ptr.vmem [resolvable:$false] %s6888_s27 }
  0x61   : > { %s6890_s3 = scalar_lea.vmem %s6889_s27, 768  ;;  %p6891_p5 = scmp.lt.s32.totalorder %s7334_s23, %s6889_s27 }
  0x62   : > { %p6886_p9 = pnand %p6884_p8, %p6870_p4  ;;  %p6892_p3 = scmp.lt.s32.totalorder %s6890_s3, %s6883_s19 }
  0x64   : > { %p6887_p1 = pneg %p6886_p9  ;;  %p6893_p2 = por %p6892_p3, %p6891_p5 }
  0x66   : > { %p6894_p12 = pnand %p6893_p2, %p6887_p1 }
  0x68   : > { %6897 = shalt.err (!%p6894_p12)
}
  0x69   : > { %6525 = dma.hbm_to_vmem [thread:$0]  (!%p7325_p10), %s7332_s1, 384, %s7334_s23, %s161_s6  }
  0x6a   : > { %s8686_s17 = sand.u32 1, %s7022_s14   ;;  %s6512_s25 = smul.u32 3, %s7050_s21 }
  0x6b   : > { %s6064_s28 = sshll.u32 %s8686_s17, 3  ;;  %p8687_p1 = pneg %p7209_p6 }
  0x6c   : > { %s211_s26 = sadd.s32 %s7046_s20, %s6512_s25  ;;  %s206_s5 = scalar_lea.vmem [#allocation8], %s6064_s28 }
  0x6d   : > { %s215_s12 = sshll.u32 %s206_s5, 4  ;;  %s6065_s27 = sshll.u32 %s211_s26, 7  ;;  %s216_s12 = int_to_ptr.vmem [resolvable:$true] %s215_s12 }
  0x6e   : > { %s213_s0 = scalar_lea.hbm %s8647_s2, %s6065_s27  ;;  %s6903_s1 = scalar_lea.hbm %s8647_s2, 768 }
  0x6f   : > { %s6898_s4 = scalar_lea.hbm %s213_s0, 128  ;;  %p6904_p10 = scmp.lt.u32.totalorder %s213_s0, %s8647_s2 }
  0x70   : > { %p6899_p5 = scmp.ne.s32.totalorder %s213_s0, %s6898_s4  ;;  %p6905_p4 = scmp.lt.u32.totalorder %s6903_s1, %s6898_s4 }
  0x71   : > { %p6907_p11 = scmp.lt.u32.totalorder %s6898_s4, %s213_s0 }
  0x72   : > { %p6901_p13 = pnand %p6899_p5, %p8687_p1  ;;  %p6906_p0 = por %p6905_p4, %p6904_p10 }
  0x74   : > { %p6902_p7 = pneg %p6901_p13  ;;  %p6908_p8 = por %p6907_p11, %p6906_p0 }
  0x76   : > { %p6909_p9 = pnand %p6908_p8, %p6902_p7 }
  0x78   : > { %6912 = shalt.err (!%p6909_p9)
}
  0x79   : > { %s6913_s28 = scalar_lea.vmem %s216_s12, 128  ;;  %p8688_p2 = pmov %p8687_p1 }
  0x7a   : > { %p6914_p3 = scmp.ne.s32.totalorder %s216_s12, %s6913_s28  ;;  %s7060_s25 = smov [#allocation8]  }
  0x7b   : > { %s6918_s11 = sshll.u32 %s7060_s25, 4  ;;  %s6919_s11 = int_to_ptr.vmem [resolvable:$false] %s6918_s11 }
  0x7c   : > { %p6916_p12 = pnand %p6914_p3, %p8688_p2  ;;  %s6920_s26 = scalar_lea.vmem %s6919_s11, 256 }
  0x7d   : > { %p6921_p1 = scmp.lt.s32.totalorder %s216_s12, %s6919_s11  ;;  %p6922_p13 = scmp.lt.s32.totalorder %s6920_s26, %s6913_s28 }
  0x7e   : > { %p6917_p5 = pneg %p6916_p12 }
  0x7f   : > { %p6923_p4 = por %p6922_p13, %p6921_p1 }
  0x81   : > { %p6924_p10 = pnand %p6923_p4, %p6917_p5 }
  0x83   : > { %6927 = shalt.err (!%p6924_p10)
}
  0x84   : > { %6531 = dma.hbm_to_vmem [thread:$0]  (!%p7209_p6), %s213_s0, 128, %s216_s12, %s7218_s29  }
  0x85   : > { %p8689_p7 = scmp.ne.s32.totalorder %s8670_s9, 0 }
  0x86   : > { %s7386_s5 = sand.u32 (!%p8689_p7), 1, %s7030_s16   ;;  %p8690_p0 = scmp.ne.s32.totalorder (!%p8689_p7), %s8674_s24, 0 }
  0x87   : > { %224 = sbr.rel (%p8689_p7) target bundleno = 2602 (0xa2a), region = 32  ;;  %s227_s19 = scalar_lea.sflag (!%p8689_p7), [#allocation4], %s7386_s5 }
  0x88   : > { %s6513_s27 = smul.u32 (!%p8689_p7), 24, %s7386_s5 }
  0x8a   : > { %s7390_s3 = scalar_lea.vmem (!%p8689_p7), [#allocation3], %s6513_s27 }
  0x8e   : > { %7001 = dma.done.wait (%p8690_p0), %s227_s19, 384  }
  0x8f   : > { %7003 = vsyncadd (%p8690_p0), %s227_s19, 4294966912  ;;  %s235_s0 = sand.u32 1, %s7253_s10   ;;  %s237_s7 = sand.u32 1, %s7018_s13  }
  0x90   : > { %s6067_s29 = sshll.u32 %s237_s7, 6  ;;  %s236_s9 = scalar_lea.sflag [#allocation7], %s235_s0 }
  0x91   : > { %s7398_s12 = scalar_lea.vmem [#allocation6], %s6067_s29  ;;  %p8691_p6 = scmp.ne.s32.totalorder %s8676_s30, 0 }
  0x93   : > { %7005 = dma.done.wait (%p8691_p6), %s236_s9, 1152  }
  0x94   : > { %7007 = vsyncadd (%p8691_p6), %s236_s9, 4294966144  ;;  %s6068_s4 = sshll.u32 %s237_s7, 3  ;;  %s6069_s23 = sshll.u32 %s7386_s5, 3 }
  0x95   : > { %s7405_s1 = scalar_lea.vmem [#allocation8], %s6068_s4  ;;  %s7407_s24 = scalar_lea.vmem [#allocation9], %s6069_s23 }
  0x96   : > { %p6070_p11 = scmp.ne.s32.totalorder %s7038_s18, 0 }
  0x97   : > { %v287_v0 = vld [vmem:[%s7390_s3 + $0x8] sm:$0xff] (!%p6070_p11)  ;;  %v288_v1 = vld [vmem:[%s7390_s3 + $0x10] sm:$0xff] (!%p6070_p11)  ;;  %s7061_s10 = smov (!%p6070_p11), 127   ;;  %s7062_s30 = smov (!%p6070_p11), 126   ;;  %v286_v2 = vld [vmem:[%s7390_s3] sm:$0xff] (!%p6070_p11)  ;;  %vm305_vm0 = vcmask (!%p6070_p11), 1031168   ;;  %v434_v29 = vlaneseq (!%p6070_p11) }
  0x98   : > { %285 = sbr.rel (%p6070_p11) target bundleno = 955 (0x3bb), region = 48  ;;  %297 = vrot.lane.b32.xlu0 (!%p6070_p11), %v287_v0, %s7061_s10  ;;  %291 = vst [vmem:[#allocation2 + $0x10] sm:$0xff] (!%p6070_p11), %v288_v1  ;;  %303 = vrot.lane.b32.xlu1 (!%p6070_p11), %v288_v1, %s7062_s30  ;;  %s7063_s6 = smov (!%p6070_p11), 112   ;;  %289 = vst [vmem:[#allocation2] sm:$0xff] (!%p6070_p11), %v286_v2  ;;  %v7071_v22 = vmov (!%p6070_p11), 0.0   ;;  %vm7072_vm1 = vmmov (!%p6070_p11), 0  }
  0x99   : > { %s7064_s17 = smov (!%p6070_p11), 96   ;;  %s7065_s28 = smov (!%p6070_p11), 64   ;;  %6317 = vmatprep.subr.bf16.mxu0 (!%p6070_p11), %v7071_v22  ;;  %6325 = vmatprep.subr.bf16.mxu1 (!%p6070_p11), %v7071_v22  ;;  %v435_v30 = vshrl.u32 (!%p6070_p11), %v434_v29, 7  ;;  %v1277_v31 = vld [vmem:[%s7405_s1] sm:$0xff] (!%p6070_p11)  ;;  %v7073_v50 = vmov (!%p6070_p11), 1983009808  }
  0x9a   : > { %s7066_s25 = smov (!%p6070_p11), 80   ;;  %s7067_s11 = smov (!%p6070_p11), 48   ;;  %6321 = vmatprep.mubr.msk.bf16.mxu0 (!%p6070_p11), %vm7072_vm1, %v7071_v22  ;;  %6329 = vmatprep.mubr.msk.bf16.mxu1 (!%p6070_p11), %vm7072_vm1, %v7071_v22  ;;  %v432_v51 = vunpack.c.l.s4 (!%p6070_p11), %v7073_v50  ;;  %vm402_vm2 = vcmask (!%p6070_p11), 7168   ;;  %v7074_v59 = vmov (!%p6070_p11), 1934713408   ;;  %vm1375_vm3 = vcmask (!%p6070_p11), 1043456  }
  0x9b   : > { %s7068_s26 = smov (!%p6070_p11), 32   ;;  %s7069_s27 = smov (!%p6070_p11), 16   ;;  %v1291_v32 = vsub.s32 (!%p6070_p11), 1, %v435_v30  ;;  %v1280_v33 = vsub.s32 (!%p6070_p11), 0, %v435_v30  ;;  %v1313_v34 = vsub.s32 (!%p6070_p11), 3, %v435_v30  ;;  %v1302_v35 = vsub.s32 (!%p6070_p11), 2, %v435_v30 }
  0x9c   : > { %301 = vrot.lane.b32.xlu0 (!%p6070_p11), %v287_v0, %s7062_s30  ;;  %307 = vrot.lane.b32.xlu1 (!%p6070_p11), %v287_v0, %s7063_s6  ;;  %s7070_s19 = smov (!%p6070_p11), 1   ;;  %v1335_v40 = vsub.s32 (!%p6070_p11), 5, %v435_v30  ;;  %v1324_v41 = vsub.s32 (!%p6070_p11), 4, %v435_v30  ;;  %v1357_v44 = vsub.s32 (!%p6070_p11), 7, %v435_v30  ;;  %v1346_v45 = vsub.s32 (!%p6070_p11), 6, %v435_v30 }
  0x9d   : > { %v1292_v36 = vrot.slane (!%p6070_p11), %v1277_v31, %v1291_v32  ;;  %v1281_v37 = vrot.slane (!%p6070_p11), %v1277_v31, %v1280_v33  ;;  %v1314_v38 = vrot.slane (!%p6070_p11), %v1277_v31, %v1313_v34  ;;  %v1303_v39 = vrot.slane (!%p6070_p11), %v1277_v31, %v1302_v35 }
  0x9e   : > { %v1336_v42 = vrot.slane (!%p6070_p11), %v1277_v31, %v1335_v40  ;;  %v1325_v43 = vrot.slane (!%p6070_p11), %v1277_v31, %v1324_v41  ;;  %v1358_v46 = vrot.slane (!%p6070_p11), %v1277_v31, %v1357_v44  ;;  %v1347_v47 = vrot.slane (!%p6070_p11), %v1277_v31, %v1346_v45 }
  0x9f   : > { %v433_v54 = vunpack.c.0.s8 %v432_v51  ;;  %v496_v60 = vunpack.c.l.s4 %v7074_v59  ;;  %vm1371_vm4 = vcmask 195584   ;;  %vm2148_vm5 = vcmask 130048  }
  0xa0   : > { %313 = vrot.lane.b32.xlu1 %v287_v0, %s7064_s17  ;;  %325 = vrot.lane.b32.xlu0 %v287_v0, %s7065_s28  ;;  %vm2150_vm6 = vcmask 261120   ;;  %vm2152_vm7 = vcmask 392192   ;;  %vm2154_vm8 = vcmask 523264   ;;  %vm2156_vm9 = vcmask 654336  }
  0xa1   : > { %v7468_v57 = vsub.s32 %v433_v54, %v435_v30  ;;  %v497_v1 = vunpack.c.0.s8 %v496_v60  ;;  %vm2158_vm10 = vcmask 785408   ;;  %vm2160_vm11 = vcmask 916480  }
  0xa4   : > { %319 = vrot.lane.b32.xlu1 %v287_v0, %s7066_s25  ;;  %331 = vrot.lane.b32.xlu0 %v287_v0, %s7067_s11 }
 0x10a   : > { %v298_v3 = vpop.permute.xlu0 %297  ;;  %v304_v4 = vpop.permute.xlu1 %303 }
 0x10b   : > { %327 = vrot.lane.b32.xlu1 %v298_v3, %s7065_s28  ;;  %309 = vrot.lane.b32.xlu0 %v298_v3, %s7063_s6 }
 0x10e   : > { %v302_v5 = vpop.permute.xlu0 %301  ;;  %v308_v7 = vpop.permute.xlu1 %307 }
 0x10f   : > { %333 = vrot.lane.b32.xlu1 %v298_v3, %s7067_s11  ;;  %315 = vrot.lane.b32.xlu0 %v298_v3, %s7064_s17  ;;  %v306_v6 = vsel %vm305_vm0, %v302_v5, %v304_v4 }
 0x112   : > { %v314_v8 = vpop.permute.xlu1 %313  ;;  %v326_v9 = vpop.permute.xlu0 %325 }
 0x113   : > { %321 = vrot.lane.b32.xlu0 %v298_v3, %s7066_s25  ;;  %311 = vrot.lane.b32.xlu1 %v306_v6, %s7063_s6 }
 0x116   : > { %v320_v10 = vpop.permute.xlu1 %319  ;;  %v332_v11 = vpop.permute.xlu0 %331 }
 0x117   : > { %317 = vrot.lane.b32.xlu0 %v306_v6, %s7064_s17  ;;  %323 = vrot.lane.b32.xlu1 %v306_v6, %s7066_s25 }
 0x11b   : > { %337 = vrot.lane.b32.xlu0 %v287_v0, %s7068_s26  ;;  %339 = vrot.lane.b32.xlu1 %v298_v3, %s7068_s26 }
 0x11f   : > { %343 = vrot.lane.b32.xlu0 %v287_v0, %s7069_s27  ;;  %345 = vrot.lane.b32.xlu1 %v298_v3, %s7069_s27 }
 0x123   : > { %329 = vrot.lane.b32.xlu0 %v306_v6, %s7065_s28  ;;  %335 = vrot.lane.b32.xlu1 %v306_v6, %s7067_s11 }
 0x127   : > { %341 = vrot.lane.b32.xlu0 %v306_v6, %s7068_s26  ;;  %347 = vrot.lane.b32.xlu1 %v306_v6, %s7069_s27 }
 0x12b   : > { %352 = vrot.lane.b32.xlu1 %v287_v0, %s7070_s19  ;;  %350 = vrot.lane.b32.xlu0 %v286_v2, %s7070_s19 }
 0x12f   : > { %360 = vrot.lane.b32.xlu1 %v308_v7, %s7070_s19  ;;  %354 = vrot.lane.b32.xlu0 %v298_v3, %s7070_s19  ;;  %v7476_v7 = vsub.s32 %v497_v1, %v435_v30 }
 0x133   : > { %366 = vrot.lane.b32.xlu1 %v314_v8, %s7070_s19  ;;  %378 = vrot.lane.b32.xlu0 %v326_v9, %s7070_s19 }
 0x137   : > { %372 = vrot.lane.b32.xlu1 %v320_v10, %s7070_s19  ;;  %384 = vrot.lane.b32.xlu0 %v332_v11, %s7070_s19 }
 0x13b   : > { %356 = vrot.lane.b32.xlu1 %v302_v5, %s7070_s19  ;;  %358 = vrot.lane.b32.xlu0 %v306_v6, %s7070_s19 }
 0x17d   : > { %v328_v12 = vpop.permute.xlu1 %327  ;;  %v310_v13 = vpop.permute.xlu0 %309 }
 0x17e   : > { %380 = vrot.lane.b32.xlu1 %v328_v12, %s7070_s19  ;;  %362 = vrot.lane.b32.xlu0 %v310_v13, %s7070_s19 }
 0x181   : > { %v334_v14 = vpop.permute.xlu1 %333  ;;  %v316_v15 = vpop.permute.xlu0 %315 }
 0x182   : > { %386 = vrot.lane.b32.xlu1 %v334_v14, %s7070_s19  ;;  %368 = vrot.lane.b32.xlu0 %v316_v15, %s7070_s19 }
 0x185   : > { %v312_v16 = vpop.permute.xlu1 %311  ;;  %v322_v17 = vpop.permute.xlu0 %321 }
 0x186   : > { %364 = vrot.lane.b32.xlu1 %v312_v16, %s7070_s19  ;;  %374 = vrot.lane.b32.xlu0 %v322_v17, %s7070_s19 }
 0x189   : > { %v324_v18 = vpop.permute.xlu1 %323  ;;  %v318_v19 = vpop.permute.xlu0 %317 }
 0x18a   : > { %376 = vrot.lane.b32.xlu1 %v324_v18, %s7070_s19  ;;  %370 = vrot.lane.b32.xlu0 %v318_v19, %s7070_s19 }
 0x18d   : > { %v340_v20 = vpop.permute.xlu1 %339  ;;  %v338_v21 = vpop.permute.xlu0 %337 }
 0x18e   : > { %392 = vrot.lane.b32.xlu1 %v340_v20, %s7070_s19  ;;  %390 = vrot.lane.b32.xlu0 %v338_v21, %s7070_s19 }
 0x191   : > { %v346_v23 = vpop.permute.xlu1 %345  ;;  %v344_v24 = vpop.permute.xlu0 %343 }
 0x192   : > { %398 = vrot.lane.b32.xlu1 %v346_v23, %s7070_s19  ;;  %396 = vrot.lane.b32.xlu0 %v344_v24, %s7070_s19 }
 0x195   : > { %v336_v25 = vpop.permute.xlu1 %335  ;;  %v330_v26 = vpop.permute.xlu0 %329 }
 0x196   : > { %388 = vrot.lane.b32.xlu1 %v336_v25, %s7070_s19  ;;  %382 = vrot.lane.b32.xlu0 %v330_v26, %s7070_s19 }
 0x199   : > { %v348_v27 = vpop.permute.xlu1 %347  ;;  %v342_v28 = vpop.permute.xlu0 %341 }
 0x19a   : > { %400 = vrot.lane.b32.xlu1 %v348_v27, %s7070_s19  ;;  %394 = vrot.lane.b32.xlu0 %v342_v28, %s7070_s19 }
 0x19d   : > { %v353_v48 = vpop.permute.xlu1 %352  ;;  %v351_v52 = vpop.permute.xlu0 %350 }
 0x19e   : > { %1294 = vbcast.lane.b32.xlu1 %v1292_v36, 256  ;;  %1283 = vbcast.lane.b32.xlu0 %v1281_v37, 256  ;;  %v403_v55 = vsel %vm402_vm2, %v351_v52, %v353_v48 }
 0x1a1   : > { %v361_v49 = vpop.permute.xlu1 %360  ;;  %v355_v56 = vpop.permute.xlu0 %354 }
 0x1a2   : > { %1316 = vbcast.lane.b32.xlu1 %v1314_v38, 256  ;;  %1305 = vbcast.lane.b32.xlu0 %v1303_v39, 256 }
 0x1a5   : > { %v367_v53 = vpop.permute.xlu1 %366  ;;  %v7472_v4 = vpop.permute.xlu0 %378 }
 0x1a6   : > { %1338 = vbcast.lane.b32.xlu1 %v1336_v42, 256  ;;  %1327 = vbcast.lane.b32.xlu0 %v1325_v43, 256  ;;  %v429_v58 = vcombine.low %v403_v55, %v367_v53  ;;  %v430_v62 = vcombine.high %v403_v55, %v367_v53 }
 0x1a8   : > { %v437_v2 = vrot.slane %v429_v58, %v7468_v57  ;;  %v444_v3 = vrot.slane %v430_v62, %v7468_v57 }
 0x1a9   : > { %v373_v61 = vpop.permute.xlu1 %372  ;;  %v7478_v12 = vpop.permute.xlu0 %384 }
 0x1aa   : > { %1360 = vbcast.lane.b32.xlu1 %v1358_v46, 256  ;;  %1349 = vbcast.lane.b32.xlu0 %v1347_v47, 256  ;;  %v445_v63 = vcombine.low %v361_v49, %v373_v61  ;;  %v446_v0 = vcombine.high %v361_v49, %v373_v61 }
 0x1ac   : > { %v453_v5 = vrot.slane %v445_v63, %v7468_v57  ;;  %v460_v6 = vrot.slane %v446_v0, %v7468_v57 }
 0x1ad   : > { %v357_v21 = vpop.permute.xlu1 %356  ;;  %v359_v23 = vpop.permute.xlu0 %358 }
 0x1ae   : > { %1298 = vbcast.lane.b32.xlu1 %v1292_v36, 264  ;;  %1287 = vbcast.lane.b32.xlu0 %v1281_v37, 264  ;;  %v493_v8 = vcombine.low %v437_v2, %v453_v5  ;;  %v494_v9 = vcombine.high %v437_v2, %v453_v5  ;;  %v509_v10 = vcombine.low %v444_v3, %v460_v6 }
 0x1af   : > { %v510_v11 = vcombine.high %v444_v3, %v460_v6  ;;  %v404_v50 = vsel %vm402_vm2, %v357_v21, %v359_v23 }
 0x1b0   : > { %v501_v13 = vrot.slane %v493_v8, %v7476_v7  ;;  %v508_v14 = vrot.slane %v494_v9, %v7476_v7  ;;  %v517_v15 = vrot.slane %v509_v10, %v7476_v7 }
 0x1b1   : > { %v524_v16 = vrot.slane %v510_v11, %v7476_v7 }
 0x1b2   : > { %1320 = vbcast.lane.b32.xlu1 %v1314_v38, 264  ;;  %1309 = vbcast.lane.b32.xlu0 %v1303_v39, 264  ;;  %v6071_v17 = vcombine.low %v501_v13, %v508_v14  ;;  %v6073_v18 = vcombine.high %v501_v13, %v508_v14 }
 0x1b3   : > { %v6075_v19 = vcombine.low %v517_v15, %v524_v16  ;;  %v6077_v20 = vcombine.high %v517_v15, %v524_v16 }
 0x1b4   : > { %v845_v26 = vrot.slane %v6071_v17, %v7468_v57  ;;  %v861_v27 = vrot.slane %v6073_v18, %v7468_v57 }
 0x1b5   : > { %v877_v28 = vrot.slane %v6075_v19, %v7468_v57  ;;  %v893_v29 = vrot.slane %v6077_v20, %v7468_v57 }
 0x1b6   : > { %1342 = vbcast.lane.b32.xlu1 %v1336_v42, 264  ;;  %1331 = vbcast.lane.b32.xlu0 %v1325_v43, 264  ;;  %v901_v32 = vcombine.low %v845_v26, %v861_v27  ;;  %v902_v33 = vcombine.high %v845_v26, %v861_v27 }
 0x1b7   : > { %v933_v34 = vcombine.low %v877_v28, %v893_v29  ;;  %v934_v35 = vcombine.high %v877_v28, %v893_v29 }
 0x1b8   : > { %v7493_v40 = vrot.slane %v901_v32, %v7476_v7  ;;  %v7499_v42 = vrot.slane %v902_v33, %v7476_v7 }
 0x1b9   : > { %v7496_v41 = vrot.slane %v933_v34, %v7476_v7  ;;  %v7502_v43 = vrot.slane %v934_v35, %v7476_v7 }
 0x1ba   : > { %1364 = vbcast.lane.b32.xlu1 %v1358_v46, 264  ;;  %1353 = vbcast.lane.b32.xlu0 %v1347_v47, 264 }
 0x1bb   : > { %v965_v53 = vcombine.low %v7493_v40, %v7496_v41  ;;  %v966_v54 = vcombine.high %v7493_v40, %v7496_v41  ;;  %v967_v55 = vcombine.low %v7499_v42, %v7502_v43 }
 0x1f0   : > { %v7484_v24 = vpop.permute.xlu1 %380  ;;  %v363_v25 = vpop.permute.xlu0 %362 }
 0x1f4   : > { %v7490_v30 = vpop.permute.xlu1 %386  ;;  %v369_v31 = vpop.permute.xlu0 %368 }
 0x1f5   : > { %v565_v36 = vcombine.low %v355_v56, %v369_v31  ;;  %v566_v37 = vcombine.high %v355_v56, %v369_v31 }
 0x1f7   : > { %v573_v46 = vrot.slane %v565_v36, %v7468_v57  ;;  %v580_v47 = vrot.slane %v566_v37, %v7468_v57  ;;  %v968_v36 = vcombine.high %v7499_v42, %v7502_v43 }
 0x1f8   : > { %v365_v38 = vpop.permute.xlu1 %364  ;;  %v375_v39 = vpop.permute.xlu0 %374 }
 0x1f9   : > { %v581_v44 = vcombine.low %v363_v25, %v375_v39  ;;  %v582_v45 = vcombine.high %v363_v25, %v375_v39 }
 0x1fb   : > { %v589_v48 = vrot.slane %v581_v44, %v7468_v57  ;;  %v596_v49 = vrot.slane %v582_v45, %v7468_v57 }
 0x1fc   : > { %v377_v51 = vpop.permute.xlu1 %376  ;;  %v371_v52 = vpop.permute.xlu0 %370 }
 0x1fd   : > { %v629_v56 = vcombine.low %v573_v46, %v589_v48  ;;  %v630_v58 = vcombine.high %v573_v46, %v589_v48  ;;  %v645_v59 = vcombine.low %v580_v47, %v596_v49  ;;  %v646_v60 = vcombine.high %v580_v47, %v596_v49 }
 0x1fe   : > { %v717_v61 = vcombine.low %v365_v38, %v377_v51  ;;  %v718_v62 = vcombine.high %v365_v38, %v377_v51  ;;  %v701_v63 = vcombine.low %v404_v50, %v371_v52  ;;  %v702_v0 = vcombine.high %v404_v50, %v371_v52 }
 0x1ff   : > { %v637_v1 = vrot.slane %v629_v56, %v7476_v7  ;;  %v644_v2 = vrot.slane %v630_v58, %v7476_v7  ;;  %v653_v3 = vrot.slane %v645_v59, %v7476_v7  ;;  %v660_v5 = vrot.slane %v646_v60, %v7476_v7 }
 0x200   : > { %v725_v6 = vrot.slane %v717_v61, %v7468_v57  ;;  %v732_v8 = vrot.slane %v718_v62, %v7468_v57  ;;  %v709_v9 = vrot.slane %v701_v63, %v7468_v57  ;;  %v716_v10 = vrot.slane %v702_v0, %v7468_v57  ;;  %v393_v11 = vpop.permute.xlu1 %392  ;;  %v391_v13 = vpop.permute.xlu0 %390 }
 0x201   : > { %v6079_v14 = vcombine.low %v637_v1, %v644_v2  ;;  %v6081_v15 = vcombine.high %v637_v1, %v644_v2  ;;  %v6083_v16 = vcombine.low %v653_v3, %v660_v5  ;;  %v6085_v17 = vcombine.high %v653_v3, %v660_v5 }
 0x202   : > { %v765_v18 = vcombine.low %v709_v9, %v725_v6  ;;  %v766_v19 = vcombine.high %v709_v9, %v725_v6  ;;  %v781_v20 = vcombine.low %v716_v10, %v732_v8  ;;  %v782_v21 = vcombine.high %v716_v10, %v732_v8 }
 0x203   : > { %v597_v23 = vcombine.low %v7484_v24, %v393_v11  ;;  %v598_v25 = vcombine.high %v7484_v24, %v393_v11  ;;  %v461_v26 = vcombine.low %v7472_v4, %v391_v13  ;;  %v462_v27 = vcombine.high %v7472_v4, %v391_v13 }
 0x204   : > { %v7528_v28 = vrot.slane %v765_v18, %v7476_v7  ;;  %v7531_v29 = vrot.slane %v766_v19, %v7476_v7  ;;  %v7534_v31 = vrot.slane %v781_v20, %v7476_v7  ;;  %v7537_v32 = vrot.slane %v782_v21, %v7476_v7  ;;  %v399_v33 = vpop.permute.xlu1 %398  ;;  %v397_v34 = vpop.permute.xlu0 %396 }
 0x205   : > { %v605_v24 = vrot.slane %v597_v23, %v7468_v57  ;;  %v612_v35 = vrot.slane %v598_v25, %v7468_v57  ;;  %v469_v4 = vrot.slane %v461_v26, %v7468_v57  ;;  %v476_v44 = vrot.slane %v462_v27, %v7468_v57 }
 0x206   : > { %v6087_v37 = vcombine.low %v7528_v28, %v7531_v29  ;;  %v6089_v38 = vcombine.high %v7528_v28, %v7531_v29  ;;  %v6091_v39 = vcombine.low %v7534_v31, %v7537_v32  ;;  %v613_v45 = vcombine.low %v7490_v30, %v399_v33 }
 0x207   : > { %v614_v46 = vcombine.high %v7490_v30, %v399_v33  ;;  %v477_v47 = vcombine.low %v7478_v12, %v397_v34  ;;  %v478_v48 = vcombine.high %v7478_v12, %v397_v34  ;;  %v7556_v49 = vrot.slane %v6079_v14, %v7468_v57 }
 0x208   : > { %v7559_v50 = vrot.slane %v6081_v15, %v7468_v57  ;;  %v7562_v51 = vrot.slane %v6083_v16, %v7468_v57  ;;  %v7565_v52 = vrot.slane %v6085_v17, %v7468_v57  ;;  %v621_v56 = vrot.slane %v613_v45, %v7468_v57  ;;  %v389_v60 = vpop.permute.xlu1 %388  ;;  %v383_v61 = vpop.permute.xlu0 %382 }
 0x209   : > { %v628_v30 = vrot.slane %v614_v46, %v7468_v57  ;;  %v485_v58 = vrot.slane %v477_v47, %v7468_v57  ;;  %v492_v12 = vrot.slane %v478_v48, %v7468_v57  ;;  %v6093_v59 = vcombine.high %v7534_v31, %v7537_v32 }
 0x20a   : > { %v1037_v62 = vcombine.low %v7556_v49, %v7559_v50  ;;  %v1038_v63 = vcombine.high %v7556_v49, %v7559_v50  ;;  %v1069_v0 = vcombine.low %v7562_v51, %v7565_v52  ;;  %v661_v1 = vcombine.low %v605_v24, %v621_v56 }
 0x20b   : > { %v662_v2 = vcombine.high %v605_v24, %v621_v56  ;;  %v677_v3 = vcombine.low %v612_v35, %v628_v30  ;;  %v678_v5 = vcombine.high %v612_v35, %v628_v30  ;;  %v525_v6 = vcombine.low %v469_v4, %v485_v58 }
 0x20c   : > { %v526_v8 = vcombine.high %v469_v4, %v485_v58  ;;  %v541_v9 = vcombine.low %v476_v44, %v492_v12  ;;  %v542_v10 = vcombine.high %v476_v44, %v492_v12  ;;  %v669_v11 = vrot.slane %v661_v1, %v7476_v7  ;;  %v401_v33 = vpop.permute.xlu1 %400  ;;  %v395_v34 = vpop.permute.xlu0 %394 }
 0x20d   : > { %v676_v13 = vrot.slane %v662_v2, %v7476_v7  ;;  %v7582_v14 = vrot.slane %v677_v3, %v7476_v7  ;;  %v7585_v15 = vrot.slane %v678_v5, %v7476_v7  ;;  %v533_v16 = vrot.slane %v525_v6, %v7476_v7 }
 0x20e   : > { %v540_v17 = vrot.slane %v526_v8, %v7476_v7  ;;  %v549_v18 = vrot.slane %v541_v9, %v7476_v7  ;;  %v556_v19 = vrot.slane %v542_v10, %v7476_v7  ;;  %v1070_v25 = vcombine.high %v7562_v51, %v7565_v52 }
 0x20f   : > { %v6080_v20 = vcombine.low %v669_v11, %v676_v13  ;;  %v6082_v21 = vcombine.high %v669_v11, %v676_v13  ;;  %v6084_v23 = vcombine.low %v7582_v14, %v7585_v15  ;;  %v6086_v44 = vcombine.high %v7582_v14, %v7585_v15 }
 0x210   : > { %v6072_v26 = vcombine.low %v533_v16, %v540_v17  ;;  %v6074_v27 = vcombine.high %v533_v16, %v540_v17  ;;  %v6076_v28 = vcombine.low %v549_v18, %v556_v19  ;;  %v6078_v29 = vcombine.high %v549_v18, %v556_v19 }
 0x211   : > { %v7596_v24 = vrot.slane %v6080_v20, %v7468_v57  ;;  %v7599_v35 = vrot.slane %v6082_v21, %v7468_v57  ;;  %v7602_v4 = vrot.slane %v6084_v23, %v7468_v57  ;;  %v749_v51 = vcombine.low %v389_v60, %v401_v33 }
 0x212   : > { %v7607_v45 = vrot.slane %v6072_v26, %v7468_v57  ;;  %v7610_v46 = vrot.slane %v6074_v27, %v7468_v57  ;;  %v7613_v47 = vrot.slane %v6076_v28, %v7468_v57  ;;  %v7616_v48 = vrot.slane %v6078_v29, %v7468_v57 }
 0x213   : > { %v750_v52 = vcombine.high %v389_v60, %v401_v33  ;;  %v733_v56 = vcombine.low %v383_v61, %v395_v34  ;;  %v734_v30 = vcombine.high %v383_v61, %v395_v34  ;;  %v1045_v58 = vrot.slane %v1037_v62, %v7476_v7 }
 0x214   : > { %v1077_v12 = vrot.slane %v1069_v0, %v7476_v7  ;;  %v1117_v1 = vrot.slane %v6087_v37, %v7468_v57  ;;  %v1133_v2 = vrot.slane %v6089_v38, %v7468_v57  ;;  %v757_v3 = vrot.slane %v749_v51, %v7468_v57 }
 0x215   : > { %v764_v5 = vrot.slane %v750_v52, %v7468_v57  ;;  %v741_v6 = vrot.slane %v733_v56, %v7468_v57  ;;  %v748_v8 = vrot.slane %v734_v30, %v7468_v57  ;;  %v1149_v61 = vrot.slane %v6091_v39, %v7468_v57 }
 0x216   : > { %v1101_v9 = vcombine.low %v1045_v58, %v1077_v12  ;;  %v1102_v60 = vcombine.high %v1045_v58, %v1077_v12  ;;  %v1165_v62 = vrot.slane %v6093_v59, %v7468_v57  ;;  %v1173_v14 = vcombine.low %v1117_v1, %v1133_v2  ;;  %v6670_v58 = vld [vmem:[%s7398_s12] sm:$0xff]   ;;  %v6671_v12 = vld [vmem:[%s7398_s12 + $0x8] sm:$0xff]  }
 0x217   : > { %v797_v37 = vcombine.low %v741_v6, %v757_v3  ;;  %v798_v0 = vcombine.high %v741_v6, %v757_v3  ;;  %v813_v38 = vcombine.low %v748_v8, %v764_v5  ;;  %v814_v10 = vcombine.high %v748_v8, %v764_v5 }
 0x218   : > { %v1261_v11 = vpack.c.bf16 %v1101_v9, %v965_v53  ;;  %v1263_v13 = vpack.c.bf16 %v1102_v60, %v966_v54  ;;  %v1205_v15 = vcombine.low %v1149_v61, %v1165_v62  ;;  %v1181_v59 = vrot.slane %v1173_v14, %v7476_v7 }
 0x219   : > { %v805_v16 = vrot.slane %v797_v37, %v7476_v7  ;;  %v812_v31 = vrot.slane %v798_v0, %v7476_v7  ;;  %v821_v32 = vrot.slane %v813_v38, %v7476_v7  ;;  %v828_v39 = vrot.slane %v814_v10, %v7476_v7 }
 0x21a   : > { %6318 = vmatpush3.bf16.msra.mxu0 %v1261_v11  ;;  %6326 = vmatpush3.bf16.msra.mxu1 %v1263_v13  ;;  %v1213_v53 = vrot.slane %v1205_v15, %v7476_v7  ;;  %v1052_v40 = vrot.slane %v1038_v63, %v7476_v7  ;;  %v1084_v21 = vrot.slane %v1070_v25, %v7476_v7 }
 0x21b   : > { %v6088_v41 = vcombine.low %v805_v16, %v812_v31  ;;  %v6090_v54 = vcombine.high %v805_v16, %v812_v31  ;;  %v6092_v17 = vcombine.low %v821_v32, %v828_v39  ;;  %v6094_v18 = vcombine.high %v821_v32, %v828_v39  ;;  %6319 = vmatprep.subr.bf16.mxu0 %v7071_v22  ;;  %v6672_v39 = vld [vmem:[%s7398_s12 + $0x10] sm:$0xff]  }
 0x21c   : > { %6327 = vmatprep.subr.bf16.mxu1 %v7071_v22  ;;  %v1237_v19 = vcombine.low %v1181_v59, %v1213_v53  ;;  %v1238_v20 = vcombine.high %v1181_v59, %v1213_v53  ;;  %v1174_v23 = vcombine.high %v1117_v1, %v1133_v2  ;;  %v7651_v26 = vrot.slane %v6086_v44, %v7468_v57  ;;  %v6673_v59 = vld [vmem:[%s7398_s12 + $0x18] sm:$0xff]  }
 0x21d   : > { %v7654_v49 = vrot.slane %v6088_v41, %v7468_v57  ;;  %v7657_v50 = vrot.slane %v6090_v54, %v7468_v57  ;;  %v7660_v63 = vrot.slane %v6092_v17, %v7468_v57  ;;  %v1103_v29 = vcombine.low %v1052_v40, %v1084_v21 }
 0x21e   : > { %v1262_v27 = vpack.c.bf16 %v1237_v19, %v1237_v19  ;;  %v1264_v28 = vpack.c.bf16 %v1238_v20, %v1238_v20  ;;  %v1104_v33 = vcombine.high %v1052_v40, %v1084_v21  ;;  %v1188_v25 = vrot.slane %v1174_v23, %v7476_v7 }
 0x21f   : > { %v1206_v34 = vcombine.high %v1149_v61, %v1165_v62  ;;  %v917_v44 = vcombine.low %v7607_v45, %v7610_v46  ;;  %v949_v51 = vcombine.low %v7613_v47, %v7616_v48  ;;  %v7668_v52 = vrot.slane %v6094_v18, %v7468_v57 }
 0x220   : > { %v1377_v56 = vsel %vm1375_vm3, %v1262_v27, 0  ;;  %v1429_v30 = vsel %vm1375_vm3, %v1264_v28, 0  ;;  %v1265_v1 = vpack.c.bf16 %v1103_v29, %v967_v55  ;;  %v1053_v6 = vcombine.low %v7596_v24, %v7599_v35  ;;  %v6674_v28 = vld [vmem:[%s7398_s12 + $0x20] sm:$0xff]   ;;  %v6675_v29 = vld [vmem:[%s7398_s12 + $0x28] sm:$0xff]  }
 0x221   : > { %6320 = vmatpush3.bf16.msra.mxu0 %v1377_v56  ;;  %6328 = vmatpush3.bf16.msra.mxu1 %v1429_v30  ;;  %v1220_v2 = vrot.slane %v1206_v34, %v7476_v7  ;;  %v925_v3 = vrot.slane %v917_v44, %v7476_v7  ;;  %v957_v5 = vrot.slane %v949_v51, %v7476_v7 }
 0x222   : > { %6333 = vmatprep.subr.bf16.mxu0 %v7071_v22  ;;  %6341 = vmatprep.subr.bf16.mxu1 %v7071_v22  ;;  %v1085_v8 = vcombine.low %v7602_v4, %v7651_v26  ;;  %v1189_v55 = vcombine.low %v7654_v49, %v7657_v50  ;;  %v1267_v9 = vpack.c.bf16 %v1104_v33, %v968_v36 }
 0x223   : > { %v1239_v60 = vcombine.low %v1188_v25, %v1220_v2  ;;  %v1240_v61 = vcombine.high %v1188_v25, %v1220_v2  ;;  %v969_v62 = vcombine.low %v925_v3, %v957_v5  ;;  %v1061_v37 = vrot.slane %v1053_v6, %v7476_v7  ;;  %v1284_v2 = vpop.permute.xlu0 %1283 }
 0x224   : > { %6322 = vmatmul.mubr.msk.bf16.vlgmr.msra.gmra.mrb[0].mxu0 %vm1371_vm4, %v6670_v58  ;;  %6330 = vmatmul.mubr.msk.bf16.vlgmr.msra.gmra.mrb[0].mxu1 %vm1371_vm4, %v6671_v12  ;;  %v1093_v0 = vrot.slane %v1085_v8, %v7476_v7  ;;  %v1197_v38 = vrot.slane %v1189_v55, %v7476_v7  ;;  %v1221_v43 = vcombine.low %v7660_v63, %v7668_v52  ;;  %v6676_v58 = vld [vmem:[%s7398_s12 + $0x30] sm:$0xff]   ;;  %v6677_v12 = vld [vmem:[%s7398_s12 + $0x38] sm:$0xff]  }
 0x225   : > { %6334 = vmatpush3.bf16.msra.mxu0 %v1265_v1  ;;  %6342 = vmatpush3.bf16.msra.mxu1 %v1267_v9  ;;  %v1266_v10 = vpack.c.bf16 %v1239_v60, %v1239_v60  ;;  %v1268_v42 = vpack.c.bf16 %v1240_v61, %v1240_v61  ;;  %v970_v11 = vcombine.high %v925_v3, %v957_v5  ;;  %v1295_v1 = vpop.permute.xlu1 %1294 }
 0x226   : > { %6335 = vmatprep.subr.bf16.mxu0 %v7071_v22  ;;  %6343 = vmatprep.subr.bf16.mxu1 %v7071_v22  ;;  %v1105_v36 = vcombine.low %v1061_v37, %v1093_v0  ;;  %v918_v13 = vcombine.high %v7607_v45, %v7610_v46  ;;  %v1106_v14 = vcombine.high %v1061_v37, %v1093_v0 }
 0x227   : > { %6337 = vmatprep.mubr.msk.bf16.mxu0 %vm7072_vm1, %v7071_v22  ;;  %6345 = vmatprep.mubr.msk.bf16.mxu1 %vm7072_vm1, %v7071_v22  ;;  %v1229_v15 = vrot.slane %v1221_v43, %v7476_v7  ;;  %v950_v16 = vcombine.high %v7613_v47, %v7616_v48  ;;  %v1481_v31 = vsel %vm1375_vm3, %v1266_v10, 0  ;;  %v1533_v32 = vsel %vm1375_vm3, %v1268_v42, 0  ;;  %v1306_v5 = vpop.permute.xlu0 %1305 }
 0x228   : > { %v1269_v53 = vpack.c.bf16 %v1105_v36, %v969_v62  ;;  %v1054_v45 = vcombine.high %v7596_v24, %v7599_v35  ;;  %v932_v41 = vrot.slane %v918_v13, %v7476_v7  ;;  %v1086_v48 = vcombine.high %v7602_v4, %v7651_v26 }
 0x229   : > { %6336 = vmatpush3.bf16.msra.mxu0 %v1481_v31  ;;  %6344 = vmatpush3.bf16.msra.mxu1 %v1533_v32  ;;  %v1241_v46 = vcombine.low %v1197_v38, %v1229_v15  ;;  %v1242_v40 = vcombine.high %v1197_v38, %v1229_v15  ;;  %v964_v47 = vrot.slane %v950_v16, %v7476_v7  ;;  %v1317_v3 = vpop.permute.xlu1 %1316 }
 0x22a   : > { %6349 = vmatprep.subr.bf16.mxu0 %v7071_v22  ;;  %6357 = vmatprep.subr.bf16.mxu1 %v7071_v22  ;;  %v1190_v54 = vcombine.high %v7654_v49, %v7657_v50  ;;  %v1271_v17 = vpack.c.bf16 %v1106_v14, %v970_v11  ;;  %v1068_v18 = vrot.slane %v1054_v45, %v7476_v7 }
 0x22b   : > { %v1270_v24 = vpack.c.bf16 %v1241_v46, %v1241_v46  ;;  %v1272_v35 = vpack.c.bf16 %v1242_v40, %v1242_v40  ;;  %v1100_v19 = vrot.slane %v1086_v48, %v7476_v7  ;;  %v1222_v4 = vcombine.high %v7660_v63, %v7668_v52  ;;  %v1328_v8 = vpop.permute.xlu0 %1327 }
 0x22c   : > { %6338 = vmatmul.mubr.msk.bf16.vlgmr.msra.gmra.mrb[4].mxu0 %vm1371_vm4, %v6672_v39  ;;  %6346 = vmatmul.mubr.msk.bf16.vlgmr.msra.gmra.mrb[4].mxu1 %vm1371_vm4, %v6673_v59  ;;  %v1204_v20 = vrot.slane %v1190_v54, %v7476_v7  ;;  %v971_v26 = vcombine.low %v932_v41, %v964_v47  ;;  %v972_v63 = vcombine.high %v932_v41, %v964_v47 }
 0x22d   : > { %6350 = vmatpush3.bf16.msra.mxu0 %v1269_v53  ;;  %6358 = vmatpush3.bf16.msra.mxu1 %v1271_v17  ;;  %v1585_v21 = vsel %vm1375_vm3, %v1270_v24, 0  ;;  %v1637_v23 = vsel %vm1375_vm3, %v1272_v35, 0  ;;  %v1236_v49 = vrot.slane %v1222_v4, %v7476_v7  ;;  %v1107_v50 = vcombine.low %v1068_v18, %v1100_v19  ;;  %v1339_v6 = vpop.permute.xlu1 %1338 }
 0x22e   : > { %6351 = vmatprep.subr.bf16.mxu0 %v7071_v22  ;;  %6359 = vmatprep.subr.bf16.mxu1 %v7071_v22  ;;  %v1108_v27 = vcombine.high %v1068_v18, %v1100_v19 }
 0x22f   : > { %6353 = vmatprep.mubr.msk.bf16.mxu0 %vm7072_vm1, %v7071_v22  ;;  %6361 = vmatprep.mubr.msk.bf16.mxu1 %vm7072_vm1, %v7071_v22  ;;  %v1243_v33 = vcombine.low %v1204_v20, %v1236_v49  ;;  %v1244_v25 = vcombine.high %v1204_v20, %v1236_v49  ;;  %v1273_v34 = vpack.c.bf16 %v1107_v50, %v971_v26 }
 0x230   : > { %v1275_v44 = vpack.c.bf16 %v1108_v27, %v972_v63 }
 0x231   : > { %6352 = vmatpush3.bf16.msra.mxu0 %v1585_v21  ;;  %6360 = vmatpush3.bf16.msra.mxu1 %v1637_v23  ;;  %v1274_v51 = vpack.c.bf16 %v1243_v33, %v1243_v33  ;;  %v1276_v52 = vpack.c.bf16 %v1244_v25, %v1244_v25  ;;  %v7757_v55 = vpop.permute.xlu1 %1360 }
 0x232   : > { %6365 = vmatprep.subr.bf16.mxu0 %v7071_v22  ;;  %6373 = vmatprep.subr.bf16.mxu1 %v7071_v22 }
 0x233   : > { %v1689_v56 = vsel %vm1375_vm3, %v1274_v51, 0  ;;  %v1741_v30 = vsel %vm1375_vm3, %v1276_v52, 0 }
 0x234   : > { %6354 = vmatmul.mubr.msk.bf16.vlgmr.msra.gmra.mrb[8].mxu0 %vm1371_vm4, %v6674_v28  ;;  %6362 = vmatmul.mubr.msk.bf16.vlgmr.msra.gmra.mrb[8].mxu1 %vm1371_vm4, %v6675_v29 }
 0x235   : > { %6366 = vmatpush3.bf16.msra.mxu0 %v1273_v34  ;;  %6374 = vmatpush3.bf16.msra.mxu1 %v1275_v44  ;;  %v1299_v13 = vpop.permute.xlu1 %1298 }
 0x236   : > { %6367 = vmatprep.subr.bf16.mxu0 %v7071_v22  ;;  %6375 = vmatprep.subr.bf16.mxu1 %v7071_v22 }
 0x237   : > { %6369 = vmatprep.mubr.msk.bf16.mxu0 %vm7072_vm1, %v7071_v22  ;;  %6377 = vmatprep.mubr.msk.bf16.mxu1 %vm7072_vm1, %v7071_v22  ;;  %v7759_v22 = vpop.permute.xlu0 %1349 }
 0x239   : > { %6368 = vmatpush3.bf16.msra.mxu0 %v1689_v56  ;;  %6376 = vmatpush3.bf16.msra.mxu1 %v1741_v30  ;;  %v1321_v24 = vpop.permute.xlu1 %1320 }
 0x23b   : > { %v1288_v14 = vpop.permute.xlu0 %1287 }
 0x23c   : > { %6370 = vmatmul.mubr.msk.bf16.vlgmr.msra.gmra.mrb[12].mxu0 %vm1371_vm4, %v6676_v58  ;;  %6378 = vmatmul.mubr.msk.bf16.vlgmr.msra.gmra.mrb[12].mxu1 %vm1371_vm4, %v6677_v12 }
 0x23d   : > { %v1343_v52 = vpop.permute.xlu1 %1342 }
 0x23f   : > { %v1310_v35 = vpop.permute.xlu0 %1309 }
 0x243   : > { %v1332_v56 = vpop.permute.xlu0 %1331 }
 0x2f7   : > { %v1413_v9 = vpop.f32.mrb[0].mxu0  ;;  %v1465_v60 = vpop.f32.mrb[0].mxu1 }
 0x2f8   : > { %v1414_v61 = vadd.f32 %v1413_v9, %v1284_v2  ;;  %v1466_v62 = vadd.f32 %v1465_v60, %v1295_v1  ;;  %v6323_v37 = vpop.f32.mrb[1].mxu0  ;;  %v6331_v0 = vpop.f32.mrb[1].mxu1 }
 0x2f9   : > { %v1416_v38 = vpop.f32.mrb[2].mxu0  ;;  %v1468_v10 = vpop.f32.mrb[2].mxu1 }
 0x2fa   : > { %v6111_v42 = vmul.f32 -1.442695, %v1414_v61  ;;  %v6112_v43 = vmul.f32 -1.442695, %v1466_v62  ;;  %v6324_v36 = vpop.f32.mrb[3].mxu0  ;;  %v6332_v11 = vpop.f32.mrb[3].mxu1  ;;  %v1469_v48 = vadd.f32 %v1468_v10, %v1299_v13  ;;  %v1417_v54 = vadd.f32 %v1416_v38, %v1288_v14 }
 0x2fc   : > { %6678 = vpow2.f32 %v6111_v42 }
 0x2fd   : > { %6680 = vpow2.f32 %v6112_v43 }
 0x2ff   : > { %v1517_v15 = vpop.f32.mrb[4].mxu0  ;;  %v1569_v16 = vpop.f32.mrb[4].mxu1 }
 0x300   : > { %v1518_v31 = vadd.f32 %v1517_v15, %v1306_v5  ;;  %v1570_v32 = vadd.f32 %v1569_v16, %v1317_v3  ;;  %v6339_v39 = vpop.f32.mrb[5].mxu0  ;;  %v6347_v59 = vpop.f32.mrb[5].mxu1 }
 0x301   : > { %v1520_v53 = vpop.f32.mrb[6].mxu0  ;;  %v1572_v45 = vpop.f32.mrb[6].mxu1 }
 0x302   : > { %v6113_v46 = vmul.f32 -1.442695, %v1518_v31  ;;  %v6114_v40 = vmul.f32 -1.442695, %v1570_v32  ;;  %v6340_v41 = vpop.f32.mrb[7].mxu0  ;;  %v6348_v47 = vpop.f32.mrb[7].mxu1  ;;  %v1573_v34 = vadd.f32 %v1572_v45, %v1321_v24  ;;  %v1521_v44 = vadd.f32 %v1520_v53, %v1310_v35 }
 0x303   : > { %v1365_v31 = vpop.permute.xlu1 %1364  ;;  %v1354_v39 = vpop.permute.xlu0 %1353 }
 0x304   : > { %6682 = vpow2.f32 %v6113_v46 }
 0x305   : > { %6684 = vpow2.f32 %v6114_v40 }
 0x306   : > { %v6679_v17 = vpop.eup %6678  ;;  %6686 = vtanh.f32 %v1469_v48 }
 0x307   : > { %v6681_v18 = vpop.eup %6680  ;;  %v1808_v19 = vadd.f32 1.0, %v6679_v17  ;;  %v1621_v20 = vpop.f32.mrb[8].mxu0  ;;  %6688 = vtanh.f32 %v1417_v54 }
 0x308   : > { %v1673_v4 = vpop.f32.mrb[8].mxu1  ;;  %v1809_v21 = vadd.f32 1.0, %v6681_v18  ;;  %v1622_v23 = vadd.f32 %v1621_v20, %v1328_v8  ;;  %v6355_v49 = vpop.f32.mrb[9].mxu0 }
 0x309   : > { %v1674_v26 = vadd.f32 %v1673_v4, %v1339_v6  ;;  %v6363_v50 = vpop.f32.mrb[9].mxu1  ;;  %6690 = vrcp.f32 %v1808_v19  ;;  %v1624_v63 = vpop.f32.mrb[10].mxu0 }
 0x30a   : > { %v1676_v27 = vpop.f32.mrb[10].mxu1  ;;  %6692 = vrcp.f32 %v1809_v21  ;;  %v6115_v28 = vmul.f32 -1.442695, %v1622_v23  ;;  %v6356_v33 = vpop.f32.mrb[11].mxu0  ;;  %v1625_v13 = vadd.f32 %v1624_v63, %v1332_v56 }
 0x30b   : > { %v6116_v29 = vmul.f32 -1.442695, %v1674_v26  ;;  %v6364_v25 = vpop.f32.mrb[11].mxu1  ;;  %v1677_v43 = vadd.f32 %v1676_v27, %v1343_v52 }
 0x30c   : > { %6694 = vpow2.f32 %v6115_v28 }
 0x30d   : > { %6696 = vpow2.f32 %v6116_v29 }
 0x30e   : > { %v6683_v51 = vpop.eup %6682  ;;  %6698 = vtanh.f32 %v1573_v34 }
 0x30f   : > { %v6685_v30 = vpop.eup %6684  ;;  %v1810_v58 = vadd.f32 1.0, %v6683_v51  ;;  %v1725_v12 = vpop.f32.mrb[12].mxu0  ;;  %6700 = vtanh.f32 %v1521_v44 }
 0x310   : > { %v1777_v1 = vpop.f32.mrb[12].mxu1  ;;  %v1811_v2 = vadd.f32 1.0, %v6685_v30  ;;  %v1726_v3 = vadd.f32 %v1725_v12, %v7759_v22  ;;  %v6371_v6 = vpop.f32.mrb[13].mxu0 }
 0x311   : > { %v1778_v5 = vadd.f32 %v1777_v1, %v7757_v55  ;;  %v6379_v8 = vpop.f32.mrb[13].mxu1  ;;  %v6687_v9 = vpop.eup %6686  ;;  %6702 = vrcp.f32 %v1810_v58 }
 0x312   : > { %v1728_v60 = vpop.f32.mrb[14].mxu0  ;;  %v1780_v61 = vpop.f32.mrb[14].mxu1  ;;  %6704 = vrcp.f32 %v1811_v2  ;;  %v6117_v37 = vmul.f32 -1.442695, %v1726_v3 }
 0x313   : > { %v6689_v62 = vpop.eup %6688  ;;  %v6118_v0 = vmul.f32 -1.442695, %v1778_v5  ;;  %v6372_v38 = vpop.f32.mrb[15].mxu0  ;;  %v1781_v45 = vadd.f32 %v1780_v61, %v1365_v31  ;;  %v1729_v41 = vadd.f32 %v1728_v60, %v1354_v39 }
 0x314   : > { %v6380_v10 = vpop.f32.mrb[15].mxu1  ;;  %v6691_v42 = vpop.eup %6690  ;;  %6706 = vpow2.f32 %v6117_v37 }
 0x315   : > { %v6693_v36 = vpop.eup %6692  ;;  %v1840_v11 = vmul.f32 %v6691_v42, %v6689_v62  ;;  %6708 = vpow2.f32 %v6118_v0 }
 0x316   : > { %v1841_v22 = vmul.f32 %v6693_v36, %v6687_v9  ;;  %v6695_v55 = vpop.eup %6694  ;;  %6710 = vtanh.f32 %v1677_v43 }
 0x317   : > { %v6697_v14 = vpop.eup %6696  ;;  %v1812_v15 = vadd.f32 1.0, %v6695_v55  ;;  %6712 = vtanh.f32 %v1625_v13 }
 0x318   : > { %v1813_v16 = vadd.f32 1.0, %v6697_v14  ;;  %v6699_v32 = vpop.eup %6698 }
 0x319   : > { %6714 = vrcp.f32 %v1812_v15  ;;  %v6701_v59 = vpop.eup %6700 }
 0x31a   : > { %6716 = vrcp.f32 %v1813_v16 }
 0x31b   : > { %v6703_v53 = vpop.eup %6702  ;;  %6718 = vtanh.f32 %v1781_v45 }
 0x31c   : > { %v6705_v46 = vpop.eup %6704  ;;  %v1842_v40 = vmul.f32 %v6703_v53, %v6701_v59  ;;  %6720 = vtanh.f32 %v1729_v41 }
 0x31d   : > { %v1843_v47 = vmul.f32 %v6705_v46, %v6699_v32 }
 0x31e   : > { %v6707_v48 = vpop.eup %6706  ;;  %v1848_v54 = vcombine.low %v1840_v11, %v1842_v40  ;;  %v1849_v17 = vcombine.high %v1840_v11, %v1842_v40 }
 0x31f   : > { %v6709_v24 = vpop.eup %6708  ;;  %v1864_v35 = vcombine.low %v1841_v22, %v1843_v47  ;;  %v1865_v18 = vcombine.high %v1841_v22, %v1843_v47  ;;  %v1814_v19 = vadd.f32 1.0, %v6707_v48 }
 0x320   : > { %v1856_v20 = vrot.slane %v1848_v54, %v7468_v57  ;;  %v1863_v4 = vrot.slane %v1849_v17, %v7468_v57  ;;  %v1815_v21 = vadd.f32 1.0, %v6709_v24  ;;  %v6711_v23 = vpop.eup %6710 }
 0x321   : > { %v1872_v26 = vrot.slane %v1864_v35, %v7468_v57  ;;  %v1879_v49 = vrot.slane %v1865_v18, %v7468_v57  ;;  %6722 = vrcp.f32 %v1814_v19  ;;  %v6713_v50 = vpop.eup %6712 }
 0x322   : > { %6724 = vrcp.f32 %v1815_v21 }
 0x323   : > { %v6715_v63 = vpop.eup %6714  ;;  %v1912_v27 = vcombine.low %v1856_v20, %v1872_v26  ;;  %v1913_v28 = vcombine.high %v1856_v20, %v1872_v26  ;;  %v1928_v29 = vcombine.low %v1863_v4, %v1879_v49  ;;  %v1929_v33 = vcombine.high %v1863_v4, %v1879_v49 }
 0x324   : > { %v6717_v25 = vpop.eup %6716  ;;  %v1844_v34 = vmul.f32 %v6715_v63, %v6713_v50 }
 0x325   : > { %v1845_v44 = vmul.f32 %v6717_v25, %v6711_v23  ;;  %v1920_v51 = vrot.slane %v1912_v27, %v7476_v7  ;;  %v1927_v52 = vrot.slane %v1913_v28, %v7476_v7  ;;  %v1936_v56 = vrot.slane %v1928_v29, %v7476_v7  ;;  %v6719_v3 = vpop.eup %6718 }
 0x326   : > { %v1943_v30 = vrot.slane %v1929_v33, %v7476_v7  ;;  %v6721_v8 = vpop.eup %6720 }
 0x327   : > { %v6119_v58 = vcombine.low %v1920_v51, %v1927_v52  ;;  %v6121_v12 = vcombine.high %v1920_v51, %v1927_v52 }
 0x328   : > { %v6123_v1 = vcombine.low %v1936_v56, %v1943_v30  ;;  %v6125_v2 = vcombine.high %v1936_v56, %v1943_v30 }
 0x329   : > { %v1992_v5 = vrot.slane %v6119_v58, %v7468_v57  ;;  %v2008_v6 = vrot.slane %v6121_v12, %v7468_v57 }
 0x32a   : > { %v2024_v9 = vrot.slane %v6123_v1, %v7468_v57  ;;  %v2040_v60 = vrot.slane %v6125_v2, %v7468_v57 }
 0x32b   : > { %v6723_v61 = vpop.eup %6722  ;;  %v2049_v62 = vcombine.high %v1992_v5, %v2008_v6  ;;  %v2048_v37 = vcombine.low %v1992_v5, %v2008_v6 }
 0x32c   : > { %v6725_v0 = vpop.eup %6724  ;;  %v1846_v38 = vmul.f32 %v6723_v61, %v6721_v8  ;;  %v2081_v10 = vcombine.high %v2024_v9, %v2040_v60  ;;  %v2080_v42 = vcombine.low %v2024_v9, %v2040_v60 }
 0x32d   : > { %v1847_v43 = vmul.f32 %v6725_v0, %v6719_v3  ;;  %v2063_v36 = vrot.slane %v2049_v62, %v7476_v7  ;;  %v2056_v11 = vrot.slane %v2048_v37, %v7476_v7 }
 0x32e   : > { %v1880_v13 = vcombine.low %v1844_v34, %v1846_v38  ;;  %v1881_v22 = vcombine.high %v1844_v34, %v1846_v38  ;;  %v2095_v55 = vrot.slane %v2081_v10, %v7476_v7  ;;  %v2088_v14 = vrot.slane %v2080_v42, %v7476_v7 }
 0x32f   : > { %v1896_v15 = vcombine.low %v1845_v44, %v1847_v43  ;;  %v1897_v16 = vcombine.high %v1845_v44, %v1847_v43 }
 0x330   : > { %v1888_v31 = vrot.slane %v1880_v13, %v7468_v57  ;;  %v1895_v32 = vrot.slane %v1881_v22, %v7468_v57  ;;  %v2114_v39 = vcombine.low %v2063_v36, %v2095_v55  ;;  %v2113_v59 = vcombine.high %v2056_v11, %v2088_v14 }
 0x331   : > { %v1904_v53 = vrot.slane %v1896_v15, %v7468_v57  ;;  %v1911_v45 = vrot.slane %v1897_v16, %v7468_v57  ;;  %v2115_v46 = vcombine.high %v2063_v36, %v2095_v55  ;;  %v2112_v40 = vcombine.low %v2056_v11, %v2088_v14 }
 0x332   : > { %2125 = vrot.lane.b32.xlu1 %v2114_v39, %s7068_s26  ;;  %2121 = vrot.lane.b32.xlu0 %v2113_v59, %s7069_s27 }
 0x333   : > { %v1944_v41 = vcombine.low %v1888_v31, %v1904_v53  ;;  %v1945_v47 = vcombine.high %v1888_v31, %v1904_v53  ;;  %v1960_v48 = vcombine.low %v1895_v32, %v1911_v45  ;;  %v1961_v54 = vcombine.high %v1895_v32, %v1911_v45 }
 0x335   : > { %v1952_v17 = vrot.slane %v1944_v41, %v7476_v7  ;;  %v1959_v24 = vrot.slane %v1945_v47, %v7476_v7  ;;  %v1968_v35 = vrot.slane %v1960_v48, %v7476_v7  ;;  %v1975_v18 = vrot.slane %v1961_v54, %v7476_v7 }
 0x336   : > { %2129 = vrot.lane.b32.xlu0 %v2115_v46, %s7067_s11 }
 0x337   : > { %v6120_v19 = vcombine.low %v1952_v17, %v1959_v24  ;;  %v6122_v20 = vcombine.high %v1952_v17, %v1959_v24  ;;  %v6124_v4 = vcombine.low %v1968_v35, %v1975_v18  ;;  %v6126_v21 = vcombine.high %v1968_v35, %v1975_v18 }
 0x339   : > { %v1999_v23 = vrot.slane %v6120_v19, %v7468_v57  ;;  %v2015_v26 = vrot.slane %v6122_v20, %v7468_v57  ;;  %v2031_v49 = vrot.slane %v6124_v4, %v7468_v57  ;;  %v2047_v50 = vrot.slane %v6126_v21, %v7468_v57 }
 0x33b   : > { %v2064_v63 = vcombine.low %v1999_v23, %v2015_v26  ;;  %v2096_v27 = vcombine.low %v2031_v49, %v2047_v50  ;;  %v2065_v28 = vcombine.high %v1999_v23, %v2015_v26  ;;  %v2097_v29 = vcombine.high %v2031_v49, %v2047_v50 }
 0x33d   : > { %v2072_v33 = vrot.slane %v2064_v63, %v7476_v7  ;;  %v2104_v25 = vrot.slane %v2096_v27, %v7476_v7  ;;  %v2079_v34 = vrot.slane %v2065_v28, %v7476_v7  ;;  %v2111_v44 = vrot.slane %v2097_v29, %v7476_v7 }
 0x33f   : > { %v2117_v51 = vcombine.high %v2072_v33, %v2104_v25  ;;  %v2116_v52 = vcombine.low %v2072_v33, %v2104_v25  ;;  %v2119_v56 = vcombine.high %v2079_v34, %v2111_v44  ;;  %v2118_v30 = vcombine.low %v2079_v34, %v2111_v44 }
 0x341   : > { %2137 = vrot.lane.b32.xlu0 %v2117_v51, %s7066_s25  ;;  %2133 = vrot.lane.b32.xlu1 %v2116_v52, %s7065_s28 }
 0x345   : > { %2145 = vrot.lane.b32.xlu0 %v2119_v56, %s7063_s6  ;;  %2141 = vrot.lane.b32.xlu1 %v2118_v30, %s7064_s17 }
 0x3a4   : > { %v2122_v57 = vpop.permute.xlu0 %2121  ;;  %v2126_v58 = vpop.permute.xlu1 %2125 }
 0x3a5   : > { %v2149_v12 = vsel %vm2148_vm5, %v2112_v40, %v2122_v57 }
 0x3a6   : > { %v2151_v7 = vsel %vm2150_vm6, %v2149_v12, %v2126_v58 }
 0x3a8   : > { %v2130_v1 = vpop.permute.xlu0 %2129 }
 0x3a9   : > { %v2153_v2 = vsel %vm2152_vm7, %v2151_v7, %v2130_v1 }
 0x3b3   : > { %v2134_v3 = vpop.permute.xlu1 %2133  ;;  %v2138_v5 = vpop.permute.xlu0 %2137 }
 0x3b4   : > { %v2155_v6 = vsel %vm2154_vm8, %v2153_v2, %v2134_v3 }
 0x3b5   : > { %v2157_v8 = vsel %vm2156_vm9, %v2155_v6, %v2138_v5 }
 0x3b7   : > { %v2142_v9 = vpop.permute.xlu1 %2141  ;;  %v2146_v60 = vpop.permute.xlu0 %2145 }
 0x3b8   : > { %v2159_v61 = vsel %vm2158_vm10, %v2157_v8, %v2142_v9 }
 0x3b9   : > { %v2161_v62 = vsel %vm2160_vm11, %v2159_v61, %v2146_v60 }
 0x3ba   : > { %2162 = vst [vmem:[#allocation2 + $0x8] sm:$0xff] %v2161_v62 }
 0x3bb PF: > { %p6127_p8 = scmp.ne.s32.totalorder %s7038_s18, 1 }
 0x3bc   : > { %v2170_v0 = vld [vmem:[#allocation2 + $0x10] sm:$0xff] (!%p6127_p8)  ;;  %s7075_s3 = smov (!%p6127_p8), 126   ;;  %s7076_s0 = smov (!%p6127_p8), 124   ;;  %vm2180_vm12 = vcmask (!%p6127_p8), 1014784   ;;  %v2167_v36 = vld [vmem:[#allocation2] sm:$0xff] (!%p6127_p8)  ;;  %v7085_v41 = vmov (!%p6127_p8), 0.0   ;;  %v2309_v18 = vlaneseq (!%p6127_p8) }
 0x3bd   : > { %2166 = sbr.rel (%p6127_p8) target bundleno = 1765 (0x6e5), region = 52  ;;  %2178 = vrot.lane.b32.xlu1 (!%p6127_p8), %v2170_v0, %s7076_s0  ;;  %s7077_s7 = smov (!%p6127_p8), 112   ;;  %6381 = vmatprep.subr.bf16.mxu0 (!%p6127_p8), %v7085_v41  ;;  %vm7086_vm13 = vmmov (!%p6127_p8), 0   ;;  %v3152_v20 = vld [vmem:[%s7405_s1] sm:$0xff] (!%p6127_p8)  ;;  %v7087_v57 = vmov (!%p6127_p8), 1983009808  }
 0x3be   : > { %s7078_s29 = smov (!%p6127_p8), 96   ;;  %s7079_s9 = smov (!%p6127_p8), 64   ;;  %6389 = vmatprep.subr.bf16.mxu1 (!%p6127_p8), %v7085_v41  ;;  %6385 = vmatprep.mubr.msk.bf16.mxu0 (!%p6127_p8), %vm7086_vm13, %v7085_v41  ;;  %v2310_v19 = vshrl.u32 (!%p6127_p8), %v2309_v18, 7  ;;  %v2307_v58 = vunpack.c.l.s4 (!%p6127_p8), %v7087_v57  ;;  %vm2277_vm14 = vcmask (!%p6127_p8), 15360   ;;  %v7088_v8 = vmov (!%p6127_p8), 1934713408  }
 0x3bf   : > { %s7080_s4 = smov (!%p6127_p8), 80   ;;  %s7081_s23 = smov (!%p6127_p8), 48   ;;  %6393 = vmatprep.mubr.msk.bf16.mxu1 (!%p6127_p8), %vm7086_vm13, %v7085_v41  ;;  %v2371_v9 = vunpack.c.l.s4 (!%p6127_p8), %v7088_v8  ;;  %vm3250_vm15 = vcmask (!%p6127_p8), 1043456   ;;  %vm3246_vm0 = vcmask (!%p6127_p8), 195584   ;;  %vm4023_vm1 = vcmask (!%p6127_p8), 130048  }
 0x3c0   : > { %s7082_s10 = smov (!%p6127_p8), 32   ;;  %s7083_s30 = smov (!%p6127_p8), 16   ;;  %v3166_v4 = vsub.s32 (!%p6127_p8), 1, %v2310_v19  ;;  %v3155_v21 = vsub.s32 (!%p6127_p8), 0, %v2310_v19  ;;  %v3188_v23 = vsub.s32 (!%p6127_p8), 3, %v2310_v19  ;;  %v3177_v26 = vsub.s32 (!%p6127_p8), 2, %v2310_v19 }
 0x3c1   : > { %v2168_v37 = vld [vmem:[#allocation2 + $0x8] sm:$0xff] (!%p6127_p8)  ;;  %s7084_s6 = smov (!%p6127_p8), 2   ;;  %v3210_v28 = vsub.s32 (!%p6127_p8), 5, %v2310_v19  ;;  %v3199_v29 = vsub.s32 (!%p6127_p8), 4, %v2310_v19  ;;  %v3232_v34 = vsub.s32 (!%p6127_p8), 7, %v2310_v19  ;;  %v3221_v44 = vsub.s32 (!%p6127_p8), 6, %v2310_v19 }
 0x3c2   : > { %2172 = vrot.lane.b32.xlu0 (!%p6127_p8), %v2168_v37, %s7075_s3  ;;  %2182 = vrot.lane.b32.xlu1 (!%p6127_p8), %v2168_v37, %s7077_s7  ;;  %v3167_v49 = vrot.slane (!%p6127_p8), %v3152_v20, %v3166_v4  ;;  %v3156_v50 = vrot.slane (!%p6127_p8), %v3152_v20, %v3155_v21  ;;  %v3189_v63 = vrot.slane (!%p6127_p8), %v3152_v20, %v3188_v23  ;;  %v2308_v7 = vunpack.c.0.s8 (!%p6127_p8), %v2307_v58 }
 0x3c3   : > { %v3178_v27 = vrot.slane (!%p6127_p8), %v3152_v20, %v3177_v26  ;;  %v3211_v33 = vrot.slane (!%p6127_p8), %v3152_v20, %v3210_v28  ;;  %v3200_v25 = vrot.slane (!%p6127_p8), %v3152_v20, %v3199_v29  ;;  %v3233_v51 = vrot.slane (!%p6127_p8), %v3152_v20, %v3232_v34 }
 0x3c4   : > { %v3222_v52 = vrot.slane %v3152_v20, %v3221_v44  ;;  %v7858_v5 = vsub.s32 %v2308_v7, %v2310_v19  ;;  %v2372_v0 = vunpack.c.0.s8 %v2371_v9  ;;  %vm4025_vm2 = vcmask 261120  }
 0x3c5   : > { %vm4027_vm3 = vcmask 392192   ;;  %vm4029_vm4 = vcmask 523264   ;;  %vm4031_vm5 = vcmask 654336   ;;  %vm4033_vm6 = vcmask 785408  }
 0x3c6   : > { %2176 = vrot.lane.b32.xlu0 %v2168_v37, %s7076_s0  ;;  %2188 = vrot.lane.b32.xlu1 %v2168_v37, %s7078_s29  ;;  %vm4035_vm7 = vcmask 916480  }
 0x3ca   : > { %2200 = vrot.lane.b32.xlu0 %v2168_v37, %s7079_s9  ;;  %2194 = vrot.lane.b32.xlu1 %v2168_v37, %s7080_s4 }
 0x3ce   : > { %2206 = vrot.lane.b32.xlu0 %v2168_v37, %s7081_s23 }
 0x42f   : > { %v2179_v10 = vpop.permute.xlu1 %2178 }
 0x434   : > { %v2173_v38 = vpop.permute.xlu0 %2172  ;;  %v2183_v11 = vpop.permute.xlu1 %2182 }
 0x435   : > { %2202 = vrot.lane.b32.xlu1 %v2173_v38, %s7079_s9  ;;  %2184 = vrot.lane.b32.xlu0 %v2173_v38, %s7077_s7 }
 0x438   : > { %v2177_v42 = vpop.permute.xlu0 %2176  ;;  %v2189_v13 = vpop.permute.xlu1 %2188 }
 0x439   : > { %2208 = vrot.lane.b32.xlu1 %v2173_v38, %s7081_s23  ;;  %2190 = vrot.lane.b32.xlu0 %v2173_v38, %s7078_s29  ;;  %v2181_v43 = vsel %vm2180_vm12, %v2177_v42, %v2179_v10 }
 0x43c   : > { %v2201_v22 = vpop.permute.xlu0 %2200  ;;  %v2195_v55 = vpop.permute.xlu1 %2194 }
 0x43d   : > { %2196 = vrot.lane.b32.xlu0 %v2173_v38, %s7080_s4  ;;  %2186 = vrot.lane.b32.xlu1 %v2181_v43, %s7077_s7 }
 0x440   : > { %v2207_v14 = vpop.permute.xlu0 %2206 }
 0x441   : > { %2192 = vrot.lane.b32.xlu0 %v2181_v43, %s7078_s29  ;;  %2198 = vrot.lane.b32.xlu1 %v2181_v43, %s7080_s4 }
 0x445   : > { %2212 = vrot.lane.b32.xlu0 %v2168_v37, %s7082_s10  ;;  %2214 = vrot.lane.b32.xlu1 %v2173_v38, %s7082_s10 }
 0x449   : > { %2218 = vrot.lane.b32.xlu0 %v2168_v37, %s7083_s30  ;;  %2220 = vrot.lane.b32.xlu1 %v2173_v38, %s7083_s30 }
 0x44d   : > { %2204 = vrot.lane.b32.xlu0 %v2181_v43, %s7079_s9  ;;  %2210 = vrot.lane.b32.xlu1 %v2181_v43, %s7081_s23 }
 0x451   : > { %2216 = vrot.lane.b32.xlu0 %v2181_v43, %s7082_s10  ;;  %2222 = vrot.lane.b32.xlu1 %v2181_v43, %s7083_s30 }
 0x455   : > { %2227 = vrot.lane.b32.xlu1 %v2168_v37, %s7084_s6  ;;  %2225 = vrot.lane.b32.xlu0 %v2167_v36, %s7084_s6 }
 0x459   : > { %2235 = vrot.lane.b32.xlu1 %v2183_v11, %s7084_s6  ;;  %2229 = vrot.lane.b32.xlu0 %v2173_v38, %s7084_s6  ;;  %v7866_v11 = vsub.s32 %v2372_v0, %v2310_v19 }
 0x45d   : > { %2241 = vrot.lane.b32.xlu1 %v2189_v13, %s7084_s6  ;;  %2253 = vrot.lane.b32.xlu0 %v2201_v22, %s7084_s6 }
 0x461   : > { %2247 = vrot.lane.b32.xlu1 %v2195_v55, %s7084_s6  ;;  %2259 = vrot.lane.b32.xlu0 %v2207_v14, %s7084_s6 }
 0x465   : > { %2231 = vrot.lane.b32.xlu1 %v2177_v42, %s7084_s6  ;;  %2233 = vrot.lane.b32.xlu0 %v2181_v43, %s7084_s6 }
 0x4a7   : > { %v2203_v15 = vpop.permute.xlu1 %2202  ;;  %v2185_v16 = vpop.permute.xlu0 %2184 }
 0x4a8   : > { %2255 = vrot.lane.b32.xlu1 %v2203_v15, %s7084_s6  ;;  %2237 = vrot.lane.b32.xlu0 %v2185_v16, %s7084_s6 }
 0x4ab   : > { %v2209_v31 = vpop.permute.xlu1 %2208  ;;  %v2191_v32 = vpop.permute.xlu0 %2190 }
 0x4ac   : > { %2261 = vrot.lane.b32.xlu1 %v2209_v31, %s7084_s6  ;;  %2243 = vrot.lane.b32.xlu0 %v2191_v32, %s7084_s6 }
 0x4af   : > { %v2187_v39 = vpop.permute.xlu1 %2186  ;;  %v2197_v59 = vpop.permute.xlu0 %2196 }
 0x4b0   : > { %2239 = vrot.lane.b32.xlu1 %v2187_v39, %s7084_s6  ;;  %2249 = vrot.lane.b32.xlu0 %v2197_v59, %s7084_s6 }
 0x4b3   : > { %v2199_v53 = vpop.permute.xlu1 %2198  ;;  %v2193_v45 = vpop.permute.xlu0 %2192 }
 0x4b4   : > { %2251 = vrot.lane.b32.xlu1 %v2199_v53, %s7084_s6  ;;  %2245 = vrot.lane.b32.xlu0 %v2193_v45, %s7084_s6 }
 0x4b7   : > { %v2215_v46 = vpop.permute.xlu1 %2214  ;;  %v2213_v40 = vpop.permute.xlu0 %2212 }
 0x4b8   : > { %2267 = vrot.lane.b32.xlu1 %v2215_v46, %s7084_s6  ;;  %2265 = vrot.lane.b32.xlu0 %v2213_v40, %s7084_s6 }
 0x4bb   : > { %v2221_v47 = vpop.permute.xlu1 %2220  ;;  %v2219_v48 = vpop.permute.xlu0 %2218 }
 0x4bc   : > { %2273 = vrot.lane.b32.xlu1 %v2221_v47, %s7084_s6  ;;  %2271 = vrot.lane.b32.xlu0 %v2219_v48, %s7084_s6 }
 0x4bf   : > { %v2211_v54 = vpop.permute.xlu1 %2210  ;;  %v2205_v17 = vpop.permute.xlu0 %2204 }
 0x4c0   : > { %2263 = vrot.lane.b32.xlu1 %v2211_v54, %s7084_s6  ;;  %2257 = vrot.lane.b32.xlu0 %v2205_v17, %s7084_s6 }
 0x4c3   : > { %v2223_v24 = vpop.permute.xlu1 %2222  ;;  %v2217_v35 = vpop.permute.xlu0 %2216 }
 0x4c4   : > { %2275 = vrot.lane.b32.xlu1 %v2223_v24, %s7084_s6  ;;  %2269 = vrot.lane.b32.xlu0 %v2217_v35, %s7084_s6 }
 0x4c7   : > { %v2228_v56 = vpop.permute.xlu1 %2227  ;;  %v2226_v12 = vpop.permute.xlu0 %2225 }
 0x4c8   : > { %3169 = vbcast.lane.b32.xlu1 %v3167_v49, 256  ;;  %3158 = vbcast.lane.b32.xlu0 %v3156_v50, 256  ;;  %v2278_v2 = vsel %vm2277_vm14, %v2226_v12, %v2228_v56 }
 0x4cb   : > { %v2236_v30 = vpop.permute.xlu1 %2235  ;;  %v2230_v3 = vpop.permute.xlu0 %2229 }
 0x4cc   : > { %3191 = vbcast.lane.b32.xlu1 %v3189_v63, 256  ;;  %3180 = vbcast.lane.b32.xlu0 %v3178_v27, 256 }
 0x4cf   : > { %v2242_v1 = vpop.permute.xlu1 %2241  ;;  %v7862_v42 = vpop.permute.xlu0 %2253 }
 0x4d0   : > { %3213 = vbcast.lane.b32.xlu1 %v3211_v33, 256  ;;  %3202 = vbcast.lane.b32.xlu0 %v3200_v25, 256  ;;  %v2304_v6 = vcombine.low %v2278_v2, %v2242_v1  ;;  %v2305_v61 = vcombine.high %v2278_v2, %v2242_v1 }
 0x4d2   : > { %v2312_v38 = vrot.slane %v2304_v6, %v7858_v5  ;;  %v2319_v10 = vrot.slane %v2305_v61, %v7858_v5 }
 0x4d3   : > { %v2248_v60 = vpop.permute.xlu1 %2247  ;;  %v7868_v15 = vpop.permute.xlu0 %2259 }
 0x4d4   : > { %3235 = vbcast.lane.b32.xlu1 %v3233_v51, 256  ;;  %3224 = vbcast.lane.b32.xlu0 %v3222_v52, 256  ;;  %v2320_v62 = vcombine.low %v2236_v30, %v2248_v60  ;;  %v2321_v37 = vcombine.high %v2236_v30, %v2248_v60 }
 0x4d6   : > { %v2328_v43 = vrot.slane %v2320_v62, %v7858_v5  ;;  %v2335_v36 = vrot.slane %v2321_v37, %v7858_v5 }
 0x4d7   : > { %v2232_v40 = vpop.permute.xlu1 %2231  ;;  %v2234_v47 = vpop.permute.xlu0 %2233 }
 0x4d8   : > { %3173 = vbcast.lane.b32.xlu1 %v3167_v49, 264  ;;  %3162 = vbcast.lane.b32.xlu0 %v3156_v50, 264  ;;  %v2368_v13 = vcombine.low %v2312_v38, %v2328_v43  ;;  %v2369_v22 = vcombine.high %v2312_v38, %v2328_v43  ;;  %v2384_v55 = vcombine.low %v2319_v10, %v2335_v36 }
 0x4d9   : > { %v2385_v14 = vcombine.high %v2319_v10, %v2335_v36  ;;  %v2279_v57 = vsel %vm2277_vm14, %v2232_v40, %v2234_v47 }
 0x4da   : > { %v2376_v16 = vrot.slane %v2368_v13, %v7866_v11  ;;  %v2383_v31 = vrot.slane %v2369_v22, %v7866_v11  ;;  %v2392_v32 = vrot.slane %v2384_v55, %v7866_v11 }
 0x4db   : > { %v2399_v39 = vrot.slane %v2385_v14, %v7866_v11 }
 0x4dc   : > { %3195 = vbcast.lane.b32.xlu1 %v3189_v63, 264  ;;  %3184 = vbcast.lane.b32.xlu0 %v3178_v27, 264  ;;  %v6128_v59 = vcombine.low %v2376_v16, %v2383_v31  ;;  %v6130_v53 = vcombine.high %v2376_v16, %v2383_v31 }
 0x4dd   : > { %v6132_v45 = vcombine.low %v2392_v32, %v2399_v39  ;;  %v6134_v46 = vcombine.high %v2392_v32, %v2399_v39 }
 0x4de   : > { %v2720_v17 = vrot.slane %v6128_v59, %v7858_v5  ;;  %v2736_v24 = vrot.slane %v6130_v53, %v7858_v5 }
 0x4df   : > { %v2752_v35 = vrot.slane %v6132_v45, %v7858_v5  ;;  %v2768_v18 = vrot.slane %v6134_v46, %v7858_v5 }
 0x4e0   : > { %3217 = vbcast.lane.b32.xlu1 %v3211_v33, 264  ;;  %3206 = vbcast.lane.b32.xlu0 %v3200_v25, 264  ;;  %v2776_v4 = vcombine.low %v2720_v17, %v2736_v24  ;;  %v2777_v21 = vcombine.high %v2720_v17, %v2736_v24 }
 0x4e1   : > { %v2808_v23 = vcombine.low %v2752_v35, %v2768_v18  ;;  %v2809_v26 = vcombine.high %v2752_v35, %v2768_v18 }
 0x4e2   : > { %v7883_v28 = vrot.slane %v2776_v4, %v7866_v11  ;;  %v7889_v33 = vrot.slane %v2777_v21, %v7866_v11 }
 0x4e3   : > { %v7886_v29 = vrot.slane %v2808_v23, %v7866_v11  ;;  %v7892_v25 = vrot.slane %v2809_v26, %v7866_v11 }
 0x4e4   : > { %3239 = vbcast.lane.b32.xlu1 %v3233_v51, 264  ;;  %3228 = vbcast.lane.b32.xlu0 %v3222_v52, 264 }
 0x4e5   : > { %v2840_v1 = vcombine.low %v7883_v28, %v7886_v29  ;;  %v2841_v7 = vcombine.high %v7883_v28, %v7886_v29  ;;  %v2842_v2 = vcombine.low %v7889_v33, %v7892_v25 }
 0x51a   : > { %v7874_v48 = vpop.permute.xlu1 %2255  ;;  %v2238_v54 = vpop.permute.xlu0 %2237 }
 0x51e   : > { %v7880_v19 = vpop.permute.xlu1 %2261  ;;  %v2244_v20 = vpop.permute.xlu0 %2243 }
 0x51f   : > { %v2440_v49 = vcombine.low %v2230_v3, %v2244_v20  ;;  %v2441_v50 = vcombine.high %v2230_v3, %v2244_v20 }
 0x521   : > { %v2448_v51 = vrot.slane %v2440_v49, %v7858_v5  ;;  %v2455_v52 = vrot.slane %v2441_v50, %v7858_v5  ;;  %v2843_v49 = vcombine.high %v7889_v33, %v7892_v25 }
 0x522   : > { %v2240_v63 = vpop.permute.xlu1 %2239  ;;  %v2250_v27 = vpop.permute.xlu0 %2249 }
 0x523   : > { %v2456_v34 = vcombine.low %v2238_v54, %v2250_v27  ;;  %v2457_v44 = vcombine.high %v2238_v54, %v2250_v27 }
 0x525   : > { %v2464_v56 = vrot.slane %v2456_v34, %v7858_v5  ;;  %v2471_v30 = vrot.slane %v2457_v44, %v7858_v5 }
 0x526   : > { %v2252_v58 = vpop.permute.xlu1 %2251  ;;  %v2246_v12 = vpop.permute.xlu0 %2245 }
 0x527   : > { %v2504_v3 = vcombine.low %v2448_v51, %v2464_v56  ;;  %v2505_v6 = vcombine.high %v2448_v51, %v2464_v56  ;;  %v2520_v8 = vcombine.low %v2455_v52, %v2471_v30  ;;  %v2521_v9 = vcombine.high %v2455_v52, %v2471_v30 }
 0x528   : > { %v2592_v60 = vcombine.low %v2240_v63, %v2252_v58  ;;  %v2593_v61 = vcombine.high %v2240_v63, %v2252_v58  ;;  %v2576_v62 = vcombine.low %v2279_v57, %v2246_v12  ;;  %v2577_v37 = vcombine.high %v2279_v57, %v2246_v12 }
 0x529   : > { %v2512_v0 = vrot.slane %v2504_v3, %v7866_v11  ;;  %v2519_v38 = vrot.slane %v2505_v6, %v7866_v11  ;;  %v2528_v10 = vrot.slane %v2520_v8, %v7866_v11  ;;  %v2535_v43 = vrot.slane %v2521_v9, %v7866_v11 }
 0x52a   : > { %v2600_v36 = vrot.slane %v2592_v60, %v7858_v5  ;;  %v2607_v13 = vrot.slane %v2593_v61, %v7858_v5  ;;  %v2584_v22 = vrot.slane %v2576_v62, %v7858_v5  ;;  %v2591_v55 = vrot.slane %v2577_v37, %v7858_v5  ;;  %v2268_v14 = vpop.permute.xlu1 %2267  ;;  %v2266_v16 = vpop.permute.xlu0 %2265 }
 0x52b   : > { %v6136_v31 = vcombine.low %v2512_v0, %v2519_v38  ;;  %v6138_v32 = vcombine.high %v2512_v0, %v2519_v38  ;;  %v6140_v39 = vcombine.low %v2528_v10, %v2535_v43  ;;  %v6142_v59 = vcombine.high %v2528_v10, %v2535_v43 }
 0x52c   : > { %v2640_v53 = vcombine.low %v2584_v22, %v2600_v36  ;;  %v2641_v45 = vcombine.high %v2584_v22, %v2600_v36  ;;  %v2656_v46 = vcombine.low %v2591_v55, %v2607_v13  ;;  %v2657_v40 = vcombine.high %v2591_v55, %v2607_v13 }
 0x52d   : > { %v2472_v47 = vcombine.low %v7874_v48, %v2268_v14  ;;  %v2473_v54 = vcombine.high %v7874_v48, %v2268_v14  ;;  %v2336_v17 = vcombine.low %v7862_v42, %v2266_v16  ;;  %v2337_v24 = vcombine.high %v7862_v42, %v2266_v16 }
 0x52e   : > { %v7918_v35 = vrot.slane %v2640_v53, %v7866_v11  ;;  %v7921_v18 = vrot.slane %v2641_v45, %v7866_v11  ;;  %v7924_v20 = vrot.slane %v2656_v46, %v7866_v11  ;;  %v7927_v4 = vrot.slane %v2657_v40, %v7866_v11  ;;  %v2274_v21 = vpop.permute.xlu1 %2273  ;;  %v2272_v23 = vpop.permute.xlu0 %2271 }
 0x52f   : > { %v2480_v48 = vrot.slane %v2472_v47, %v7858_v5  ;;  %v2487_v26 = vrot.slane %v2473_v54, %v7858_v5  ;;  %v2344_v42 = vrot.slane %v2336_v17, %v7858_v5  ;;  %v2351_v34 = vrot.slane %v2337_v24, %v7858_v5 }
 0x530   : > { %v6144_v50 = vcombine.low %v7918_v35, %v7921_v18  ;;  %v6146_v63 = vcombine.high %v7918_v35, %v7921_v18  ;;  %v6148_v27 = vcombine.low %v7924_v20, %v7927_v4  ;;  %v2488_v44 = vcombine.low %v7880_v19, %v2274_v21 }
 0x531   : > { %v2489_v51 = vcombine.high %v7880_v19, %v2274_v21  ;;  %v2352_v52 = vcombine.low %v7868_v15, %v2272_v23  ;;  %v2353_v56 = vcombine.high %v7868_v15, %v2272_v23  ;;  %v7946_v30 = vrot.slane %v6136_v31, %v7858_v5 }
 0x532   : > { %v7949_v57 = vrot.slane %v6138_v32, %v7858_v5  ;;  %v7952_v58 = vrot.slane %v6140_v39, %v7858_v5  ;;  %v7955_v12 = vrot.slane %v6142_v59, %v7858_v5  ;;  %v2496_v3 = vrot.slane %v2488_v44, %v7858_v5  ;;  %v2264_v9 = vpop.permute.xlu1 %2263  ;;  %v2258_v60 = vpop.permute.xlu0 %2257 }
 0x533   : > { %v2503_v19 = vrot.slane %v2489_v51, %v7858_v5  ;;  %v2360_v6 = vrot.slane %v2352_v52, %v7858_v5  ;;  %v2367_v15 = vrot.slane %v2353_v56, %v7858_v5  ;;  %v6150_v8 = vcombine.high %v7924_v20, %v7927_v4 }
 0x534   : > { %v2912_v61 = vcombine.low %v7946_v30, %v7949_v57  ;;  %v2913_v62 = vcombine.high %v7946_v30, %v7949_v57  ;;  %v2944_v37 = vcombine.low %v7952_v58, %v7955_v12  ;;  %v2536_v0 = vcombine.low %v2480_v48, %v2496_v3 }
 0x535   : > { %v2537_v38 = vcombine.high %v2480_v48, %v2496_v3  ;;  %v2552_v10 = vcombine.low %v2487_v26, %v2503_v19  ;;  %v2553_v43 = vcombine.high %v2487_v26, %v2503_v19  ;;  %v2400_v36 = vcombine.low %v2344_v42, %v2360_v6 }
 0x536   : > { %v2401_v13 = vcombine.high %v2344_v42, %v2360_v6  ;;  %v2416_v22 = vcombine.low %v2351_v34, %v2367_v15  ;;  %v2417_v55 = vcombine.high %v2351_v34, %v2367_v15  ;;  %v2544_v14 = vrot.slane %v2536_v0, %v7866_v11  ;;  %v2276_v21 = vpop.permute.xlu1 %2275  ;;  %v2270_v23 = vpop.permute.xlu0 %2269 }
 0x537   : > { %v2551_v16 = vrot.slane %v2537_v38, %v7866_v11  ;;  %v7972_v31 = vrot.slane %v2552_v10, %v7866_v11  ;;  %v7975_v32 = vrot.slane %v2553_v43, %v7866_v11  ;;  %v2408_v39 = vrot.slane %v2400_v36, %v7866_v11 }
 0x538   : > { %v2415_v59 = vrot.slane %v2401_v13, %v7866_v11  ;;  %v2424_v53 = vrot.slane %v2416_v22, %v7866_v11  ;;  %v2431_v45 = vrot.slane %v2417_v55, %v7866_v11  ;;  %v2945_v54 = vcombine.high %v7952_v58, %v7955_v12 }
 0x539   : > { %v6137_v46 = vcombine.low %v2544_v14, %v2551_v16  ;;  %v6139_v40 = vcombine.high %v2544_v14, %v2551_v16  ;;  %v6141_v47 = vcombine.low %v7972_v31, %v7975_v32  ;;  %v6143_v34 = vcombine.high %v7972_v31, %v7975_v32 }
 0x53a   : > { %v6129_v17 = vcombine.low %v2408_v39, %v2415_v59  ;;  %v6131_v24 = vcombine.high %v2408_v39, %v2415_v59  ;;  %v6133_v35 = vcombine.low %v2424_v53, %v2431_v45  ;;  %v6135_v18 = vcombine.high %v2424_v53, %v2431_v45 }
 0x53b   : > { %v7986_v48 = vrot.slane %v6137_v46, %v7858_v5  ;;  %v7989_v26 = vrot.slane %v6139_v40, %v7858_v5  ;;  %v7992_v42 = vrot.slane %v6141_v47, %v7858_v5  ;;  %v2624_v58 = vcombine.low %v2264_v9, %v2276_v21 }
 0x53c   : > { %v7997_v44 = vrot.slane %v6129_v17, %v7858_v5  ;;  %v8000_v51 = vrot.slane %v6131_v24, %v7858_v5  ;;  %v8003_v52 = vrot.slane %v6133_v35, %v7858_v5  ;;  %v8006_v56 = vrot.slane %v6135_v18, %v7858_v5 }
 0x53d   : > { %v2625_v12 = vcombine.high %v2264_v9, %v2276_v21  ;;  %v2608_v3 = vcombine.low %v2258_v60, %v2270_v23  ;;  %v2609_v19 = vcombine.high %v2258_v60, %v2270_v23  ;;  %v2920_v6 = vrot.slane %v2912_v61, %v7866_v11 }
 0x53e   : > { %v2952_v15 = vrot.slane %v2944_v37, %v7866_v11  ;;  %v2992_v0 = vrot.slane %v6144_v50, %v7858_v5  ;;  %v3008_v38 = vrot.slane %v6146_v63, %v7858_v5  ;;  %v2632_v10 = vrot.slane %v2624_v58, %v7858_v5 }
 0x53f   : > { %v2639_v43 = vrot.slane %v2625_v12, %v7858_v5  ;;  %v2616_v36 = vrot.slane %v2608_v3, %v7858_v5  ;;  %v2623_v13 = vrot.slane %v2609_v19, %v7858_v5  ;;  %v3024_v60 = vrot.slane %v6148_v27, %v7858_v5 }
 0x540   : > { %v2976_v22 = vcombine.low %v2920_v6, %v2952_v15  ;;  %v2977_v9 = vcombine.high %v2920_v6, %v2952_v15  ;;  %v3040_v61 = vrot.slane %v6150_v8, %v7858_v5  ;;  %v3048_v31 = vcombine.low %v2992_v0, %v3008_v38  ;;  %v6726_v6 = vld [vmem:[%s7398_s12] sm:$0xff]   ;;  %v6727_v15 = vld [vmem:[%s7398_s12 + $0x8] sm:$0xff]  }
 0x541   : > { %v2672_v50 = vcombine.low %v2616_v36, %v2632_v10  ;;  %v2673_v37 = vcombine.high %v2616_v36, %v2632_v10  ;;  %v2688_v63 = vcombine.low %v2623_v13, %v2639_v43  ;;  %v2689_v55 = vcombine.high %v2623_v13, %v2639_v43 }
 0x542   : > { %v3136_v14 = vpack.c.bf16 %v2976_v22, %v2840_v1  ;;  %v3138_v16 = vpack.c.bf16 %v2977_v9, %v2841_v7  ;;  %v3080_v32 = vcombine.low %v3024_v60, %v3040_v61  ;;  %v3056_v8 = vrot.slane %v3048_v31, %v7866_v11 }
 0x543   : > { %v2680_v39 = vrot.slane %v2672_v50, %v7866_v11  ;;  %v2687_v20 = vrot.slane %v2673_v37, %v7866_v11  ;;  %v2696_v4 = vrot.slane %v2688_v63, %v7866_v11  ;;  %v2703_v27 = vrot.slane %v2689_v55, %v7866_v11 }
 0x544   : > { %6382 = vmatpush3.bf16.msra.mxu0 %v3136_v14  ;;  %6390 = vmatpush3.bf16.msra.mxu1 %v3138_v16  ;;  %v3088_v1 = vrot.slane %v3080_v32, %v7866_v11  ;;  %v2927_v28 = vrot.slane %v2913_v62, %v7866_v11  ;;  %v2959_v40 = vrot.slane %v2945_v54, %v7866_v11 }
 0x545   : > { %v6145_v29 = vcombine.low %v2680_v39, %v2687_v20  ;;  %v6147_v7 = vcombine.high %v2680_v39, %v2687_v20  ;;  %v6149_v59 = vcombine.low %v2696_v4, %v2703_v27  ;;  %v6151_v53 = vcombine.high %v2696_v4, %v2703_v27  ;;  %6383 = vmatprep.subr.bf16.mxu0 %v7085_v41  ;;  %v6728_v27 = vld [vmem:[%s7398_s12 + $0x10] sm:$0xff]  }
 0x546   : > { %6391 = vmatprep.subr.bf16.mxu1 %v7085_v41  ;;  %v3112_v45 = vcombine.low %v3056_v8, %v3088_v1  ;;  %v3113_v46 = vcombine.high %v3056_v8, %v3088_v1  ;;  %v3049_v47 = vcombine.high %v2992_v0, %v3008_v38  ;;  %v8041_v17 = vrot.slane %v6143_v34, %v7858_v5  ;;  %v6729_v8 = vld [vmem:[%s7398_s12 + $0x18] sm:$0xff]  }
 0x547   : > { %v8044_v30 = vrot.slane %v6145_v29, %v7858_v5  ;;  %v8047_v57 = vrot.slane %v6147_v7, %v7858_v5  ;;  %v8050_v62 = vrot.slane %v6149_v59, %v7858_v5  ;;  %v2978_v18 = vcombine.low %v2927_v28, %v2959_v40 }
 0x548   : > { %v3137_v24 = vpack.c.bf16 %v3112_v45, %v3112_v45  ;;  %v3139_v35 = vpack.c.bf16 %v3113_v46, %v3113_v46  ;;  %v2979_v21 = vcombine.high %v2927_v28, %v2959_v40  ;;  %v3063_v54 = vrot.slane %v3049_v47, %v7866_v11 }
 0x549   : > { %v3081_v23 = vcombine.high %v3024_v60, %v3040_v61  ;;  %v2792_v34 = vcombine.low %v7997_v44, %v8000_v51  ;;  %v2824_v58 = vcombine.low %v8003_v52, %v8006_v56  ;;  %v8058_v12 = vrot.slane %v6151_v53, %v7858_v5 }
 0x54a   : > { %v3252_v3 = vsel %vm3250_vm15, %v3137_v24, 0  ;;  %v3304_v19 = vsel %vm3250_vm15, %v3139_v35, 0  ;;  %v3140_v0 = vpack.c.bf16 %v2978_v18, %v2842_v2  ;;  %v2928_v36 = vcombine.low %v7986_v48, %v7989_v26  ;;  %v6730_v35 = vld [vmem:[%s7398_s12 + $0x20] sm:$0xff]   ;;  %v6731_v18 = vld [vmem:[%s7398_s12 + $0x28] sm:$0xff]  }
 0x54b   : > { %6384 = vmatpush3.bf16.msra.mxu0 %v3252_v3  ;;  %6392 = vmatpush3.bf16.msra.mxu1 %v3304_v19  ;;  %v3095_v38 = vrot.slane %v3081_v23, %v7866_v11  ;;  %v2800_v10 = vrot.slane %v2792_v34, %v7866_v11  ;;  %v2832_v43 = vrot.slane %v2824_v58, %v7866_v11 }
 0x54c   : > { %6397 = vmatprep.subr.bf16.mxu0 %v7085_v41  ;;  %6405 = vmatprep.subr.bf16.mxu1 %v7085_v41  ;;  %v2960_v13 = vcombine.low %v7992_v42, %v8041_v17  ;;  %v3064_v2 = vcombine.low %v8044_v30, %v8047_v57  ;;  %v3142_v22 = vpack.c.bf16 %v2979_v21, %v2843_v49 }
 0x54d   : > { %v3114_v9 = vcombine.low %v3063_v54, %v3095_v38  ;;  %v3115_v60 = vcombine.high %v3063_v54, %v3095_v38  ;;  %v2844_v61 = vcombine.low %v2800_v10, %v2832_v43  ;;  %v2936_v50 = vrot.slane %v2928_v36, %v7866_v11  ;;  %v3159_v38 = vpop.permute.xlu0 %3158 }
 0x54e   : > { %6386 = vmatmul.mubr.msk.bf16.vlgmr.msra.gmra.mrb[0].mxu0 %vm3246_vm0, %v6726_v6  ;;  %6394 = vmatmul.mubr.msk.bf16.vlgmr.msra.gmra.mrb[0].mxu1 %vm3246_vm0, %v6727_v15  ;;  %v2968_v37 = vrot.slane %v2960_v13, %v7866_v11  ;;  %v3072_v63 = vrot.slane %v3064_v2, %v7866_v11  ;;  %v3096_v25 = vcombine.low %v8050_v62, %v8058_v12  ;;  %v6732_v6 = vld [vmem:[%s7398_s12 + $0x30] sm:$0xff]   ;;  %v6733_v15 = vld [vmem:[%s7398_s12 + $0x38] sm:$0xff]  }
 0x54f   : > { %6398 = vmatpush3.bf16.msra.mxu0 %v3140_v0  ;;  %6406 = vmatpush3.bf16.msra.mxu1 %v3142_v22  ;;  %v3141_v55 = vpack.c.bf16 %v3114_v9, %v3114_v9  ;;  %v3143_v33 = vpack.c.bf16 %v3115_v60, %v3115_v60  ;;  %v2845_v14 = vcombine.high %v2800_v10, %v2832_v43  ;;  %v3170_v0 = vpop.permute.xlu1 %3169 }
 0x550   : > { %6399 = vmatprep.subr.bf16.mxu0 %v7085_v41  ;;  %6407 = vmatprep.subr.bf16.mxu1 %v7085_v41  ;;  %v2980_v49 = vcombine.low %v2936_v50, %v2968_v37  ;;  %v2793_v16 = vcombine.high %v7997_v44, %v8000_v51  ;;  %v2981_v31 = vcombine.high %v2936_v50, %v2968_v37 }
 0x551   : > { %6401 = vmatprep.mubr.msk.bf16.mxu0 %vm7086_vm13, %v7085_v41  ;;  %6409 = vmatprep.mubr.msk.bf16.mxu1 %vm7086_vm13, %v7085_v41  ;;  %v3104_v32 = vrot.slane %v3096_v25, %v7866_v11  ;;  %v2825_v39 = vcombine.high %v8003_v52, %v8006_v56  ;;  %v3356_v20 = vsel %vm3250_vm15, %v3141_v55, 0  ;;  %v3408_v4 = vsel %vm3250_vm15, %v3143_v33, 0  ;;  %v3181_v43 = vpop.permute.xlu0 %3180 }
 0x552   : > { %v3144_v1 = vpack.c.bf16 %v2980_v49, %v2844_v61  ;;  %v2929_v44 = vcombine.high %v7986_v48, %v7989_v26  ;;  %v2807_v29 = vrot.slane %v2793_v16, %v7866_v11  ;;  %v2961_v56 = vcombine.high %v7992_v42, %v8041_v17 }
 0x553   : > { %6400 = vmatpush3.bf16.msra.mxu0 %v3356_v20  ;;  %6408 = vmatpush3.bf16.msra.mxu1 %v3408_v4  ;;  %v3116_v51 = vcombine.low %v3072_v63, %v3104_v32  ;;  %v3117_v28 = vcombine.high %v3072_v63, %v3104_v32  ;;  %v2839_v52 = vrot.slane %v2825_v39, %v7866_v11  ;;  %v3192_v10 = vpop.permute.xlu1 %3191 }
 0x554   : > { %6413 = vmatprep.subr.bf16.mxu0 %v7085_v41  ;;  %6421 = vmatprep.subr.bf16.mxu1 %v7085_v41  ;;  %v3065_v7 = vcombine.high %v8044_v30, %v8047_v57  ;;  %v3146_v59 = vpack.c.bf16 %v2981_v31, %v2845_v14  ;;  %v2943_v53 = vrot.slane %v2929_v44, %v7866_v11 }
 0x555   : > { %v3145_v48 = vpack.c.bf16 %v3116_v51, %v3116_v51  ;;  %v3147_v26 = vpack.c.bf16 %v3117_v28, %v3117_v28  ;;  %v2975_v45 = vrot.slane %v2961_v56, %v7866_v11  ;;  %v3097_v42 = vcombine.high %v8050_v62, %v8058_v12  ;;  %v3203_v13 = vpop.permute.xlu0 %3202 }
 0x556   : > { %6402 = vmatmul.mubr.msk.bf16.vlgmr.msra.gmra.mrb[4].mxu0 %vm3246_vm0, %v6728_v27  ;;  %6410 = vmatmul.mubr.msk.bf16.vlgmr.msra.gmra.mrb[4].mxu1 %vm3246_vm0, %v6729_v8  ;;  %v3079_v46 = vrot.slane %v3065_v7, %v7866_v11  ;;  %v2846_v17 = vcombine.low %v2807_v29, %v2839_v52  ;;  %v2847_v62 = vcombine.high %v2807_v29, %v2839_v52 }
 0x557   : > { %6414 = vmatpush3.bf16.msra.mxu0 %v3144_v1  ;;  %6422 = vmatpush3.bf16.msra.mxu1 %v3146_v59  ;;  %v3460_v40 = vsel %vm3250_vm15, %v3145_v48, 0  ;;  %v3512_v47 = vsel %vm3250_vm15, %v3147_v26, 0  ;;  %v3111_v30 = vrot.slane %v3097_v42, %v7866_v11  ;;  %v2982_v57 = vcombine.low %v2943_v53, %v2975_v45  ;;  %v3214_v36 = vpop.permute.xlu1 %3213 }
 0x558   : > { %6415 = vmatprep.subr.bf16.mxu0 %v7085_v41  ;;  %6423 = vmatprep.subr.bf16.mxu1 %v7085_v41  ;;  %v2983_v24 = vcombine.high %v2943_v53, %v2975_v45 }
 0x559   : > { %6417 = vmatprep.mubr.msk.bf16.mxu0 %vm7086_vm13, %v7085_v41  ;;  %6425 = vmatprep.mubr.msk.bf16.mxu1 %vm7086_vm13, %v7085_v41  ;;  %v3118_v21 = vcombine.low %v3079_v46, %v3111_v30  ;;  %v3119_v54 = vcombine.high %v3079_v46, %v3111_v30  ;;  %v3148_v23 = vpack.c.bf16 %v2982_v57, %v2846_v17 }
 0x55a   : > { %v3150_v34 = vpack.c.bf16 %v2983_v24, %v2847_v62 }
 0x55b   : > { %6416 = vmatpush3.bf16.msra.mxu0 %v3460_v40  ;;  %6424 = vmatpush3.bf16.msra.mxu1 %v3512_v47  ;;  %v3149_v58 = vpack.c.bf16 %v3118_v21, %v3118_v21  ;;  %v3151_v12 = vpack.c.bf16 %v3119_v54, %v3119_v54  ;;  %v8147_v2 = vpop.permute.xlu1 %3235 }
 0x55c   : > { %6429 = vmatprep.subr.bf16.mxu0 %v7085_v41  ;;  %6437 = vmatprep.subr.bf16.mxu1 %v7085_v41 }
 0x55d   : > { %v3564_v3 = vsel %vm3250_vm15, %v3149_v58, 0  ;;  %v3616_v19 = vsel %vm3250_vm15, %v3151_v12, 0 }
 0x55e   : > { %6418 = vmatmul.mubr.msk.bf16.vlgmr.msra.gmra.mrb[8].mxu0 %vm3246_vm0, %v6730_v35  ;;  %6426 = vmatmul.mubr.msk.bf16.vlgmr.msra.gmra.mrb[8].mxu1 %vm3246_vm0, %v6731_v18 }
 0x55f   : > { %6430 = vmatpush3.bf16.msra.mxu0 %v3148_v23  ;;  %6438 = vmatpush3.bf16.msra.mxu1 %v3150_v34  ;;  %v3174_v16 = vpop.permute.xlu1 %3173 }
 0x560   : > { %6431 = vmatprep.subr.bf16.mxu0 %v7085_v41  ;;  %6439 = vmatprep.subr.bf16.mxu1 %v7085_v41 }
 0x561   : > { %6433 = vmatprep.mubr.msk.bf16.mxu0 %vm7086_vm13, %v7085_v41  ;;  %6441 = vmatprep.mubr.msk.bf16.mxu1 %vm7086_vm13, %v7085_v41  ;;  %v8149_v41 = vpop.permute.xlu0 %3224 }
 0x563   : > { %6432 = vmatpush3.bf16.msra.mxu0 %v3564_v3  ;;  %6440 = vmatpush3.bf16.msra.mxu1 %v3616_v19  ;;  %v3196_v48 = vpop.permute.xlu1 %3195 }
 0x565   : > { %v3163_v31 = vpop.permute.xlu0 %3162 }
 0x566   : > { %6434 = vmatmul.mubr.msk.bf16.vlgmr.msra.gmra.mrb[12].mxu0 %vm3246_vm0, %v6732_v6  ;;  %6442 = vmatmul.mubr.msk.bf16.vlgmr.msra.gmra.mrb[12].mxu1 %vm3246_vm0, %v6733_v15 }
 0x567   : > { %v3218_v12 = vpop.permute.xlu1 %3217 }
 0x569   : > { %v3185_v26 = vpop.permute.xlu0 %3184 }
 0x56d   : > { %v3207_v3 = vpop.permute.xlu0 %3206 }
 0x621   : > { %v3288_v22 = vpop.f32.mrb[0].mxu0  ;;  %v3340_v9 = vpop.f32.mrb[0].mxu1 }
 0x622   : > { %v3289_v60 = vadd.f32 %v3288_v22, %v3159_v38  ;;  %v3341_v61 = vadd.f32 %v3340_v9, %v3170_v0  ;;  %v6387_v50 = vpop.f32.mrb[1].mxu0  ;;  %v6395_v37 = vpop.f32.mrb[1].mxu1 }
 0x623   : > { %v3291_v63 = vpop.f32.mrb[2].mxu0  ;;  %v3343_v55 = vpop.f32.mrb[2].mxu1 }
 0x624   : > { %v6168_v33 = vmul.f32 -1.442695, %v3289_v60  ;;  %v6169_v25 = vmul.f32 -1.442695, %v3341_v61  ;;  %v6388_v49 = vpop.f32.mrb[3].mxu0  ;;  %v6396_v14 = vpop.f32.mrb[3].mxu1  ;;  %v3344_v56 = vadd.f32 %v3343_v55, %v3174_v16  ;;  %v3292_v7 = vadd.f32 %v3291_v63, %v3163_v31 }
 0x626   : > { %6734 = vpow2.f32 %v6168_v33 }
 0x627   : > { %6736 = vpow2.f32 %v6169_v25 }
 0x629   : > { %v3392_v32 = vpop.f32.mrb[4].mxu0  ;;  %v3444_v39 = vpop.f32.mrb[4].mxu1 }
 0x62a   : > { %v3393_v20 = vadd.f32 %v3392_v32, %v3181_v43  ;;  %v3445_v4 = vadd.f32 %v3444_v39, %v3192_v10  ;;  %v6403_v27 = vpop.f32.mrb[5].mxu0  ;;  %v6411_v8 = vpop.f32.mrb[5].mxu1 }
 0x62b   : > { %v3395_v1 = vpop.f32.mrb[6].mxu0  ;;  %v3447_v44 = vpop.f32.mrb[6].mxu1 }
 0x62c   : > { %v6170_v51 = vmul.f32 -1.442695, %v3393_v20  ;;  %v6171_v28 = vmul.f32 -1.442695, %v3445_v4  ;;  %v6404_v29 = vpop.f32.mrb[7].mxu0  ;;  %v6412_v52 = vpop.f32.mrb[7].mxu1  ;;  %v3448_v23 = vadd.f32 %v3447_v44, %v3196_v48  ;;  %v3396_v34 = vadd.f32 %v3395_v1, %v3185_v26 }
 0x62d   : > { %v3240_v20 = vpop.permute.xlu1 %3239  ;;  %v3229_v27 = vpop.permute.xlu0 %3228 }
 0x62e   : > { %6738 = vpow2.f32 %v6170_v51 }
 0x62f   : > { %6740 = vpow2.f32 %v6171_v28 }
 0x630   : > { %v6735_v59 = vpop.eup %6734  ;;  %6742 = vtanh.f32 %v3344_v56 }
 0x631   : > { %v6737_v53 = vpop.eup %6736  ;;  %v3683_v45 = vadd.f32 1.0, %v6735_v59  ;;  %v3496_v46 = vpop.f32.mrb[8].mxu0  ;;  %6744 = vtanh.f32 %v3292_v7 }
 0x632   : > { %v3548_v42 = vpop.f32.mrb[8].mxu1  ;;  %v3684_v40 = vadd.f32 1.0, %v6737_v53  ;;  %v3497_v47 = vadd.f32 %v3496_v46, %v3203_v13  ;;  %v6419_v30 = vpop.f32.mrb[9].mxu0 }
 0x633   : > { %v3549_v17 = vadd.f32 %v3548_v42, %v3214_v36  ;;  %v6427_v57 = vpop.f32.mrb[9].mxu1  ;;  %6746 = vrcp.f32 %v3683_v45  ;;  %v3499_v62 = vpop.f32.mrb[10].mxu0 }
 0x634   : > { %v3551_v24 = vpop.f32.mrb[10].mxu1  ;;  %6748 = vrcp.f32 %v3684_v40  ;;  %v6172_v35 = vmul.f32 -1.442695, %v3497_v47  ;;  %v6420_v21 = vpop.f32.mrb[11].mxu0  ;;  %v3500_v16 = vadd.f32 %v3499_v62, %v3207_v3 }
 0x635   : > { %v6173_v18 = vmul.f32 -1.442695, %v3549_v17  ;;  %v6428_v54 = vpop.f32.mrb[11].mxu1  ;;  %v3552_v25 = vadd.f32 %v3551_v24, %v3218_v12 }
 0x636   : > { %6750 = vpow2.f32 %v6172_v35 }
 0x637   : > { %6752 = vpow2.f32 %v6173_v18 }
 0x638   : > { %v6739_v58 = vpop.eup %6738  ;;  %6754 = vtanh.f32 %v3448_v23 }
 0x639   : > { %v6741_v19 = vpop.eup %6740  ;;  %v3685_v6 = vadd.f32 1.0, %v6739_v58  ;;  %v3600_v15 = vpop.f32.mrb[12].mxu0  ;;  %6756 = vtanh.f32 %v3396_v34 }
 0x63a   : > { %v3652_v0 = vpop.f32.mrb[12].mxu1  ;;  %v3686_v38 = vadd.f32 1.0, %v6741_v19  ;;  %v3601_v10 = vadd.f32 %v3600_v15, %v8149_v41  ;;  %v6435_v36 = vpop.f32.mrb[13].mxu0 }
 0x63b   : > { %v3653_v43 = vadd.f32 %v3652_v0, %v8147_v2  ;;  %v6443_v13 = vpop.f32.mrb[13].mxu1  ;;  %v6743_v22 = vpop.eup %6742  ;;  %6758 = vrcp.f32 %v3685_v6 }
 0x63c   : > { %v3603_v9 = vpop.f32.mrb[14].mxu0  ;;  %v3655_v60 = vpop.f32.mrb[14].mxu1  ;;  %6760 = vrcp.f32 %v3686_v38  ;;  %v6174_v50 = vmul.f32 -1.442695, %v3601_v10 }
 0x63d   : > { %v6745_v61 = vpop.eup %6744  ;;  %v6175_v37 = vmul.f32 -1.442695, %v3653_v43  ;;  %v6436_v63 = vpop.f32.mrb[15].mxu0  ;;  %v3656_v44 = vadd.f32 %v3655_v60, %v3240_v20  ;;  %v3604_v29 = vadd.f32 %v3603_v9, %v3229_v27 }
 0x63e   : > { %v6444_v55 = vpop.f32.mrb[15].mxu1  ;;  %v6747_v33 = vpop.eup %6746  ;;  %6762 = vpow2.f32 %v6174_v50 }
 0x63f   : > { %v6749_v49 = vpop.eup %6748  ;;  %v3715_v14 = vmul.f32 %v6747_v33, %v6745_v61  ;;  %6764 = vpow2.f32 %v6175_v37 }
 0x640   : > { %v3716_v41 = vmul.f32 %v6749_v49, %v6743_v22  ;;  %v6751_v2 = vpop.eup %6750  ;;  %6766 = vtanh.f32 %v3552_v25 }
 0x641   : > { %v6753_v31 = vpop.eup %6752  ;;  %v3687_v32 = vadd.f32 1.0, %v6751_v2  ;;  %6768 = vtanh.f32 %v3500_v16 }
 0x642   : > { %v3688_v39 = vadd.f32 1.0, %v6753_v31  ;;  %v6755_v4 = vpop.eup %6754 }
 0x643   : > { %6770 = vrcp.f32 %v3687_v32  ;;  %v6757_v8 = vpop.eup %6756 }
 0x644   : > { %6772 = vrcp.f32 %v3688_v39 }
 0x645   : > { %v6759_v1 = vpop.eup %6758  ;;  %6774 = vtanh.f32 %v3656_v44 }
 0x646   : > { %v6761_v51 = vpop.eup %6760  ;;  %v3717_v28 = vmul.f32 %v6759_v1, %v6757_v8  ;;  %6776 = vtanh.f32 %v3604_v29 }
 0x647   : > { %v3718_v52 = vmul.f32 %v6761_v51, %v6755_v4 }
 0x648   : > { %v6763_v56 = vpop.eup %6762  ;;  %v3723_v7 = vcombine.low %v3715_v14, %v3717_v28  ;;  %v3724_v59 = vcombine.high %v3715_v14, %v3717_v28 }
 0x649   : > { %v6765_v48 = vpop.eup %6764  ;;  %v3739_v26 = vcombine.low %v3716_v41, %v3718_v52  ;;  %v3740_v53 = vcombine.high %v3716_v41, %v3718_v52  ;;  %v3689_v45 = vadd.f32 1.0, %v6763_v56 }
 0x64a   : > { %v3731_v46 = vrot.slane %v3723_v7, %v7858_v5  ;;  %v3738_v42 = vrot.slane %v3724_v59, %v7858_v5  ;;  %v3690_v40 = vadd.f32 1.0, %v6765_v48  ;;  %v6767_v47 = vpop.eup %6766 }
 0x64b   : > { %v3747_v17 = vrot.slane %v3739_v26, %v7858_v5  ;;  %v3754_v30 = vrot.slane %v3740_v53, %v7858_v5  ;;  %6778 = vrcp.f32 %v3689_v45  ;;  %v6769_v57 = vpop.eup %6768 }
 0x64c   : > { %6780 = vrcp.f32 %v3690_v40 }
 0x64d   : > { %v6771_v62 = vpop.eup %6770  ;;  %v3787_v24 = vcombine.low %v3731_v46, %v3747_v17  ;;  %v3788_v35 = vcombine.high %v3731_v46, %v3747_v17  ;;  %v3803_v18 = vcombine.low %v3738_v42, %v3754_v30  ;;  %v3804_v21 = vcombine.high %v3738_v42, %v3754_v30 }
 0x64e   : > { %v6773_v54 = vpop.eup %6772  ;;  %v3719_v23 = vmul.f32 %v6771_v62, %v6769_v57 }
 0x64f   : > { %v3720_v34 = vmul.f32 %v6773_v54, %v6767_v47  ;;  %v3795_v58 = vrot.slane %v3787_v24, %v7866_v11  ;;  %v3802_v12 = vrot.slane %v3788_v35, %v7866_v11  ;;  %v3811_v3 = vrot.slane %v3803_v18, %v7866_v11  ;;  %v6775_v10 = vpop.eup %6774 }
 0x650   : > { %v3818_v19 = vrot.slane %v3804_v21, %v7866_v11  ;;  %v6777_v13 = vpop.eup %6776 }
 0x651   : > { %v6176_v6 = vcombine.low %v3795_v58, %v3802_v12  ;;  %v6178_v15 = vcombine.high %v3795_v58, %v3802_v12 }
 0x652   : > { %v6180_v0 = vcombine.low %v3811_v3, %v3818_v19  ;;  %v6182_v38 = vcombine.high %v3811_v3, %v3818_v19 }
 0x653   : > { %v3867_v43 = vrot.slane %v6176_v6, %v7858_v5  ;;  %v3883_v36 = vrot.slane %v6178_v15, %v7858_v5 }
 0x654   : > { %v3899_v22 = vrot.slane %v6180_v0, %v7858_v5  ;;  %v3915_v9 = vrot.slane %v6182_v38, %v7858_v5 }
 0x655   : > { %v6779_v60 = vpop.eup %6778  ;;  %v3924_v61 = vcombine.high %v3867_v43, %v3883_v36  ;;  %v3923_v50 = vcombine.low %v3867_v43, %v3883_v36 }
 0x656   : > { %v6781_v37 = vpop.eup %6780  ;;  %v3721_v63 = vmul.f32 %v6779_v60, %v6777_v13  ;;  %v3956_v55 = vcombine.high %v3899_v22, %v3915_v9  ;;  %v3955_v33 = vcombine.low %v3899_v22, %v3915_v9 }
 0x657   : > { %v3722_v25 = vmul.f32 %v6781_v37, %v6775_v10  ;;  %v3938_v49 = vrot.slane %v3924_v61, %v7866_v11  ;;  %v3931_v14 = vrot.slane %v3923_v50, %v7866_v11 }
 0x658   : > { %v3755_v16 = vcombine.low %v3719_v23, %v3721_v63  ;;  %v3756_v41 = vcombine.high %v3719_v23, %v3721_v63  ;;  %v3970_v2 = vrot.slane %v3956_v55, %v7866_v11  ;;  %v3963_v31 = vrot.slane %v3955_v33, %v7866_v11 }
 0x659   : > { %v3771_v32 = vcombine.low %v3720_v34, %v3722_v25  ;;  %v3772_v39 = vcombine.high %v3720_v34, %v3722_v25 }
 0x65a   : > { %v3763_v20 = vrot.slane %v3755_v16, %v7858_v5  ;;  %v3770_v4 = vrot.slane %v3756_v41, %v7858_v5  ;;  %v3989_v27 = vcombine.low %v3938_v49, %v3970_v2  ;;  %v3988_v8 = vcombine.high %v3931_v14, %v3963_v31 }
 0x65b   : > { %v3779_v1 = vrot.slane %v3771_v32, %v7858_v5  ;;  %v3786_v44 = vrot.slane %v3772_v39, %v7858_v5  ;;  %v3990_v51 = vcombine.high %v3938_v49, %v3970_v2  ;;  %v3987_v28 = vcombine.low %v3931_v14, %v3963_v31 }
 0x65c   : > { %4000 = vrot.lane.b32.xlu1 %v3989_v27, %s7082_s10  ;;  %3996 = vrot.lane.b32.xlu0 %v3988_v8, %s7083_s30 }
 0x65d   : > { %v3819_v29 = vcombine.low %v3763_v20, %v3779_v1  ;;  %v3820_v52 = vcombine.high %v3763_v20, %v3779_v1  ;;  %v3835_v56 = vcombine.low %v3770_v4, %v3786_v44  ;;  %v3836_v7 = vcombine.high %v3770_v4, %v3786_v44 }
 0x65f   : > { %v3827_v59 = vrot.slane %v3819_v29, %v7866_v11  ;;  %v3834_v48 = vrot.slane %v3820_v52, %v7866_v11  ;;  %v3843_v26 = vrot.slane %v3835_v56, %v7866_v11  ;;  %v3850_v53 = vrot.slane %v3836_v7, %v7866_v11 }
 0x660   : > { %4004 = vrot.lane.b32.xlu0 %v3990_v51, %s7081_s23 }
 0x661   : > { %v6177_v45 = vcombine.low %v3827_v59, %v3834_v48  ;;  %v6179_v46 = vcombine.high %v3827_v59, %v3834_v48  ;;  %v6181_v42 = vcombine.low %v3843_v26, %v3850_v53  ;;  %v6183_v40 = vcombine.high %v3843_v26, %v3850_v53 }
 0x663   : > { %v3874_v47 = vrot.slane %v6177_v45, %v7858_v5  ;;  %v3890_v17 = vrot.slane %v6179_v46, %v7858_v5  ;;  %v3906_v30 = vrot.slane %v6181_v42, %v7858_v5  ;;  %v3922_v57 = vrot.slane %v6183_v40, %v7858_v5 }
 0x665   : > { %v3939_v62 = vcombine.low %v3874_v47, %v3890_v17  ;;  %v3971_v24 = vcombine.low %v3906_v30, %v3922_v57  ;;  %v3940_v35 = vcombine.high %v3874_v47, %v3890_v17  ;;  %v3972_v18 = vcombine.high %v3906_v30, %v3922_v57 }
 0x667   : > { %v3947_v21 = vrot.slane %v3939_v62, %v7866_v11  ;;  %v3979_v54 = vrot.slane %v3971_v24, %v7866_v11  ;;  %v3954_v23 = vrot.slane %v3940_v35, %v7866_v11  ;;  %v3986_v34 = vrot.slane %v3972_v18, %v7866_v11 }
 0x669   : > { %v3992_v58 = vcombine.high %v3947_v21, %v3979_v54  ;;  %v3991_v12 = vcombine.low %v3947_v21, %v3979_v54  ;;  %v3994_v3 = vcombine.high %v3954_v23, %v3986_v34  ;;  %v3993_v19 = vcombine.low %v3954_v23, %v3986_v34 }
 0x66b   : > { %4012 = vrot.lane.b32.xlu0 %v3992_v58, %s7080_s4  ;;  %4008 = vrot.lane.b32.xlu1 %v3991_v12, %s7079_s9 }
 0x66f   : > { %4020 = vrot.lane.b32.xlu0 %v3994_v3, %s7077_s7  ;;  %4016 = vrot.lane.b32.xlu1 %v3993_v19, %s7078_s29 }
 0x6ce   : > { %v3997_v5 = vpop.permute.xlu0 %3996  ;;  %v4001_v6 = vpop.permute.xlu1 %4000 }
 0x6cf   : > { %v4024_v15 = vsel %vm4023_vm1, %v3987_v28, %v3997_v5 }
 0x6d0   : > { %v4026_v11 = vsel %vm4025_vm2, %v4024_v15, %v4001_v6 }
 0x6d2   : > { %v4005_v0 = vpop.permute.xlu0 %4004 }
 0x6d3   : > { %v4028_v38 = vsel %vm4027_vm3, %v4026_v11, %v4005_v0 }
 0x6dd   : > { %v4009_v10 = vpop.permute.xlu1 %4008  ;;  %v4013_v43 = vpop.permute.xlu0 %4012 }
 0x6de   : > { %v4030_v36 = vsel %vm4029_vm4, %v4028_v38, %v4009_v10 }
 0x6df   : > { %v4032_v13 = vsel %vm4031_vm5, %v4030_v36, %v4013_v43 }
 0x6e1   : > { %v4017_v22 = vpop.permute.xlu1 %4016  ;;  %v4021_v9 = vpop.permute.xlu0 %4020 }
 0x6e2   : > { %v4034_v60 = vsel %vm4033_vm6, %v4032_v13, %v4017_v22 }
 0x6e3   : > { %v4036_v61 = vsel %vm4035_vm7, %v4034_v60, %v4021_v9 }
 0x6e4   : > { %4037 = vst [vmem:[#allocation2 + $0x8] sm:$0xff] %v4036_v61 }
 0x6e5 PF: > { %p6184_p9 = scmp.ne.s32.totalorder %s7038_s18, 2 }
 0x6e6   : > { %v4045_v37 = vld [vmem:[#allocation2 + $0x10] sm:$0xff] (!%p6184_p9)  ;;  %s7089_s17 = smov (!%p6184_p9), 124   ;;  %s7090_s28 = smov (!%p6184_p9), 120   ;;  %vm4055_vm8 = vcmask (!%p6184_p9), 982016   ;;  %v4042_v49 = vld [vmem:[#allocation2] sm:$0xff] (!%p6184_p9)  ;;  %v7099_v29 = vmov (!%p6184_p9), 0.0   ;;  %v4184_v53 = vlaneseq (!%p6184_p9) }
 0x6e7   : > { %4041 = sbr.rel (%p6184_p9) target bundleno = 2575 (0xa0f), region = 56  ;;  %4053 = vrot.lane.b32.xlu1 (!%p6184_p9), %v4045_v37, %s7090_s28  ;;  %s7091_s25 = smov (!%p6184_p9), 112   ;;  %6445 = vmatprep.subr.bf16.mxu0 (!%p6184_p9), %v7099_v29  ;;  %vm7100_vm9 = vmmov (!%p6184_p9), 0   ;;  %v5027_v46 = vld [vmem:[%s7405_s1] sm:$0xff] (!%p6184_p9)  ;;  %v7101_v5 = vmov (!%p6184_p9), 1983009808  }
 0x6e8   : > { %s7092_s11 = smov (!%p6184_p9), 96   ;;  %s7093_s26 = smov (!%p6184_p9), 64   ;;  %6453 = vmatprep.subr.bf16.mxu1 (!%p6184_p9), %v7099_v29  ;;  %6449 = vmatprep.mubr.msk.bf16.mxu0 (!%p6184_p9), %vm7100_vm9, %v7099_v29  ;;  %v4185_v45 = vshrl.u32 (!%p6184_p9), %v4184_v53, 7  ;;  %v4182_v6 = vunpack.c.l.s4 (!%p6184_p9), %v7101_v5  ;;  %vm4152_vm10 = vcmask (!%p6184_p9), 31744   ;;  %v7102_v13 = vmov (!%p6184_p9), 1934713408  }
 0x6e9   : > { %s7094_s27 = smov (!%p6184_p9), 80   ;;  %s7095_s18 = smov (!%p6184_p9), 48   ;;  %6457 = vmatprep.mubr.msk.bf16.mxu1 (!%p6184_p9), %vm7100_vm9, %v7099_v29  ;;  %v4246_v22 = vunpack.c.l.s4 (!%p6184_p9), %v7102_v13  ;;  %vm5125_vm11 = vcmask (!%p6184_p9), 1043456   ;;  %vm5121_vm12 = vcmask (!%p6184_p9), 195584   ;;  %vm5898_vm13 = vcmask (!%p6184_p9), 130048  }
 0x6ea   : > { %s7096_s19 = smov (!%p6184_p9), 32   ;;  %s7097_s3 = smov (!%p6184_p9), 16   ;;  %v5041_v42 = vsub.s32 (!%p6184_p9), 1, %v4185_v45  ;;  %v5030_v40 = vsub.s32 (!%p6184_p9), 0, %v4185_v45  ;;  %v5063_v47 = vsub.s32 (!%p6184_p9), 3, %v4185_v45  ;;  %v5052_v17 = vsub.s32 (!%p6184_p9), 2, %v4185_v45 }
 0x6eb   : > { %v4043_v50 = vld [vmem:[#allocation2 + $0x8] sm:$0xff] (!%p6184_p9)  ;;  %s7098_s0 = smov (!%p6184_p9), 4   ;;  %v5085_v35 = vsub.s32 (!%p6184_p9), 5, %v4185_v45  ;;  %v5074_v18 = vsub.s32 (!%p6184_p9), 4, %v4185_v45  ;;  %v5107_v23 = vsub.s32 (!%p6184_p9), 7, %v4185_v45  ;;  %v5096_v34 = vsub.s32 (!%p6184_p9), 6, %v4185_v45 }
 0x6ec   : > { %4047 = vrot.lane.b32.xlu0 (!%p6184_p9), %v4043_v50, %s7089_s17  ;;  %4057 = vrot.lane.b32.xlu1 (!%p6184_p9), %v4043_v50, %s7091_s25  ;;  %v5042_v30 = vrot.slane (!%p6184_p9), %v5027_v46, %v5041_v42  ;;  %v5031_v57 = vrot.slane (!%p6184_p9), %v5027_v46, %v5030_v40  ;;  %v5064_v62 = vrot.slane (!%p6184_p9), %v5027_v46, %v5063_v47  ;;  %v4183_v11 = vunpack.c.0.s8 (!%p6184_p9), %v4182_v6 }
 0x6ed   : > { %v5053_v24 = vrot.slane (!%p6184_p9), %v5027_v46, %v5052_v17  ;;  %v5086_v21 = vrot.slane (!%p6184_p9), %v5027_v46, %v5085_v35  ;;  %v5075_v54 = vrot.slane (!%p6184_p9), %v5027_v46, %v5074_v18  ;;  %v5108_v58 = vrot.slane (!%p6184_p9), %v5027_v46, %v5107_v23 }
 0x6ee   : > { %v5097_v12 = vrot.slane %v5027_v46, %v5096_v34  ;;  %v8248_v43 = vsub.s32 %v4183_v11, %v4185_v45  ;;  %v4247_v37 = vunpack.c.0.s8 %v4246_v22  ;;  %vm5900_vm14 = vcmask 261120  }
 0x6ef   : > { %vm5902_vm15 = vcmask 392192   ;;  %vm5904_vm0 = vcmask 523264   ;;  %vm5906_vm1 = vcmask 654336   ;;  %vm5908_vm2 = vcmask 785408  }
 0x6f0   : > { %4051 = vrot.lane.b32.xlu0 %v4043_v50, %s7090_s28  ;;  %4063 = vrot.lane.b32.xlu1 %v4043_v50, %s7092_s11  ;;  %vm5910_vm3 = vcmask 916480  }
 0x6f4   : > { %4075 = vrot.lane.b32.xlu0 %v4043_v50, %s7093_s26  ;;  %4069 = vrot.lane.b32.xlu1 %v4043_v50, %s7094_s27 }
 0x6f8   : > { %4081 = vrot.lane.b32.xlu0 %v4043_v50, %s7095_s18 }
 0x759   : > { %v4054_v55 = vpop.permute.xlu1 %4053 }
 0x75e   : > { %v4048_v63 = vpop.permute.xlu0 %4047  ;;  %v4058_v14 = vpop.permute.xlu1 %4057 }
 0x75f   : > { %4077 = vrot.lane.b32.xlu1 %v4048_v63, %s7093_s26  ;;  %4059 = vrot.lane.b32.xlu0 %v4048_v63, %s7091_s25 }
 0x762   : > { %v4052_v33 = vpop.permute.xlu0 %4051  ;;  %v4064_v16 = vpop.permute.xlu1 %4063 }
 0x763   : > { %4083 = vrot.lane.b32.xlu1 %v4048_v63, %s7095_s18  ;;  %4065 = vrot.lane.b32.xlu0 %v4048_v63, %s7092_s11  ;;  %v4056_v25 = vsel %vm4055_vm8, %v4052_v33, %v4054_v55 }
 0x766   : > { %v4076_v41 = vpop.permute.xlu0 %4075  ;;  %v4070_v2 = vpop.permute.xlu1 %4069 }
 0x767   : > { %4071 = vrot.lane.b32.xlu0 %v4048_v63, %s7094_s27  ;;  %4061 = vrot.lane.b32.xlu1 %v4056_v25, %s7091_s25 }
 0x76a   : > { %v4082_v31 = vpop.permute.xlu0 %4081 }
 0x76b   : > { %4067 = vrot.lane.b32.xlu0 %v4056_v25, %s7092_s11  ;;  %4073 = vrot.lane.b32.xlu1 %v4056_v25, %s7094_s27 }
 0x76f   : > { %4087 = vrot.lane.b32.xlu0 %v4043_v50, %s7096_s19  ;;  %4089 = vrot.lane.b32.xlu1 %v4048_v63, %s7096_s19 }
 0x773   : > { %4093 = vrot.lane.b32.xlu0 %v4043_v50, %s7097_s3  ;;  %4095 = vrot.lane.b32.xlu1 %v4048_v63, %s7097_s3 }
 0x777   : > { %4079 = vrot.lane.b32.xlu0 %v4056_v25, %s7093_s26  ;;  %4085 = vrot.lane.b32.xlu1 %v4056_v25, %s7095_s18 }
 0x77b   : > { %4091 = vrot.lane.b32.xlu0 %v4056_v25, %s7096_s19  ;;  %4097 = vrot.lane.b32.xlu1 %v4056_v25, %s7097_s3 }
 0x77f   : > { %4102 = vrot.lane.b32.xlu1 %v4043_v50, %s7098_s0  ;;  %4100 = vrot.lane.b32.xlu0 %v4042_v49, %s7098_s0 }
 0x783   : > { %4110 = vrot.lane.b32.xlu1 %v4058_v14, %s7098_s0  ;;  %4104 = vrot.lane.b32.xlu0 %v4048_v63, %s7098_s0  ;;  %v8256_v14 = vsub.s32 %v4247_v37, %v4185_v45 }
 0x787   : > { %4116 = vrot.lane.b32.xlu1 %v4064_v16, %s7098_s0  ;;  %4128 = vrot.lane.b32.xlu0 %v4076_v41, %s7098_s0 }
 0x78b   : > { %4122 = vrot.lane.b32.xlu1 %v4070_v2, %s7098_s0  ;;  %4134 = vrot.lane.b32.xlu0 %v4082_v31, %s7098_s0 }
 0x78f   : > { %4106 = vrot.lane.b32.xlu1 %v4052_v33, %s7098_s0  ;;  %4108 = vrot.lane.b32.xlu0 %v4056_v25, %s7098_s0 }
 0x7d1   : > { %v4078_v32 = vpop.permute.xlu1 %4077  ;;  %v4060_v39 = vpop.permute.xlu0 %4059 }
 0x7d2   : > { %4130 = vrot.lane.b32.xlu1 %v4078_v32, %s7098_s0  ;;  %4112 = vrot.lane.b32.xlu0 %v4060_v39, %s7098_s0 }
 0x7d5   : > { %v4084_v20 = vpop.permute.xlu1 %4083  ;;  %v4066_v4 = vpop.permute.xlu0 %4065 }
 0x7d6   : > { %4136 = vrot.lane.b32.xlu1 %v4084_v20, %s7098_s0  ;;  %4118 = vrot.lane.b32.xlu0 %v4066_v4, %s7098_s0 }
 0x7d9   : > { %v4062_v27 = vpop.permute.xlu1 %4061  ;;  %v4072_v8 = vpop.permute.xlu0 %4071 }
 0x7da   : > { %4114 = vrot.lane.b32.xlu1 %v4062_v27, %s7098_s0  ;;  %4124 = vrot.lane.b32.xlu0 %v4072_v8, %s7098_s0 }
 0x7dd   : > { %v4074_v1 = vpop.permute.xlu1 %4073  ;;  %v4068_v44 = vpop.permute.xlu0 %4067 }
 0x7de   : > { %4126 = vrot.lane.b32.xlu1 %v4074_v1, %s7098_s0  ;;  %4120 = vrot.lane.b32.xlu0 %v4068_v44, %s7098_s0 }
 0x7e1   : > { %v4090_v51 = vpop.permute.xlu1 %4089  ;;  %v4088_v28 = vpop.permute.xlu0 %4087 }
 0x7e2   : > { %4142 = vrot.lane.b32.xlu1 %v4090_v51, %s7098_s0  ;;  %4140 = vrot.lane.b32.xlu0 %v4088_v28, %s7098_s0 }
 0x7e5   : > { %v4096_v52 = vpop.permute.xlu1 %4095  ;;  %v4094_v56 = vpop.permute.xlu0 %4093 }
 0x7e6   : > { %4148 = vrot.lane.b32.xlu1 %v4096_v52, %s7098_s0  ;;  %4146 = vrot.lane.b32.xlu0 %v4094_v56, %s7098_s0 }
 0x7e9   : > { %v4086_v7 = vpop.permute.xlu1 %4085  ;;  %v4080_v59 = vpop.permute.xlu0 %4079 }
 0x7ea   : > { %4138 = vrot.lane.b32.xlu1 %v4086_v7, %s7098_s0  ;;  %4132 = vrot.lane.b32.xlu0 %v4080_v59, %s7098_s0 }
 0x7ed   : > { %v4098_v48 = vpop.permute.xlu1 %4097  ;;  %v4092_v26 = vpop.permute.xlu0 %4091 }
 0x7ee   : > { %4150 = vrot.lane.b32.xlu1 %v4098_v48, %s7098_s0  ;;  %4144 = vrot.lane.b32.xlu0 %v4092_v26, %s7098_s0 }
 0x7f1   : > { %v4103_v3 = vpop.permute.xlu1 %4102  ;;  %v4101_v15 = vpop.permute.xlu0 %4100 }
 0x7f2   : > { %5044 = vbcast.lane.b32.xlu1 %v5042_v30, 256  ;;  %5033 = vbcast.lane.b32.xlu0 %v5031_v57, 256  ;;  %v4153_v38 = vsel %vm4152_vm10, %v4101_v15, %v4103_v3 }
 0x7f5   : > { %v4111_v19 = vpop.permute.xlu1 %4110  ;;  %v4105_v10 = vpop.permute.xlu0 %4104 }
 0x7f6   : > { %5066 = vbcast.lane.b32.xlu1 %v5064_v62, 256  ;;  %5055 = vbcast.lane.b32.xlu0 %v5053_v24, 256 }
 0x7f9   : > { %v4117_v0 = vpop.permute.xlu1 %4116  ;;  %v8252_v33 = vpop.permute.xlu0 %4128 }
 0x7fa   : > { %5088 = vbcast.lane.b32.xlu1 %v5086_v21, 256  ;;  %5077 = vbcast.lane.b32.xlu0 %v5075_v54, 256  ;;  %v4179_v36 = vcombine.low %v4153_v38, %v4117_v0  ;;  %v4180_v60 = vcombine.high %v4153_v38, %v4117_v0 }
 0x7fc   : > { %v4187_v63 = vrot.slane %v4179_v36, %v8248_v43  ;;  %v4194_v55 = vrot.slane %v4180_v60, %v8248_v43 }
 0x7fd   : > { %v4123_v9 = vpop.permute.xlu1 %4122  ;;  %v8258_v32 = vpop.permute.xlu0 %4134 }
 0x7fe   : > { %5110 = vbcast.lane.b32.xlu1 %v5108_v58, 256  ;;  %5099 = vbcast.lane.b32.xlu0 %v5097_v12, 256  ;;  %v4195_v61 = vcombine.low %v4111_v19, %v4123_v9  ;;  %v4196_v50 = vcombine.high %v4111_v19, %v4123_v9 }
 0x800   : > { %v4203_v25 = vrot.slane %v4195_v61, %v8248_v43  ;;  %v4210_v49 = vrot.slane %v4196_v50, %v8248_v43 }
 0x801   : > { %v4107_v28 = vpop.permute.xlu1 %4106  ;;  %v4109_v52 = vpop.permute.xlu0 %4108 }
 0x802   : > { %5048 = vbcast.lane.b32.xlu1 %v5042_v30, 264  ;;  %5037 = vbcast.lane.b32.xlu0 %v5031_v57, 264  ;;  %v4243_v16 = vcombine.low %v4187_v63, %v4203_v25  ;;  %v4244_v41 = vcombine.high %v4187_v63, %v4203_v25  ;;  %v4259_v2 = vcombine.low %v4194_v55, %v4210_v49 }
 0x803   : > { %v4260_v31 = vcombine.high %v4194_v55, %v4210_v49  ;;  %v4154_v5 = vsel %vm4152_vm10, %v4107_v28, %v4109_v52 }
 0x804   : > { %v4251_v39 = vrot.slane %v4243_v16, %v8256_v14  ;;  %v4258_v20 = vrot.slane %v4244_v41, %v8256_v14  ;;  %v4267_v4 = vrot.slane %v4259_v2, %v8256_v14 }
 0x805   : > { %v4274_v27 = vrot.slane %v4260_v31, %v8256_v14 }
 0x806   : > { %5070 = vbcast.lane.b32.xlu1 %v5064_v62, 264  ;;  %5059 = vbcast.lane.b32.xlu0 %v5053_v24, 264  ;;  %v6185_v8 = vcombine.low %v4251_v39, %v4258_v20  ;;  %v6187_v1 = vcombine.high %v4251_v39, %v4258_v20 }
 0x807   : > { %v6189_v44 = vcombine.low %v4267_v4, %v4274_v27  ;;  %v6191_v51 = vcombine.high %v4267_v4, %v4274_v27 }
 0x808   : > { %v4595_v59 = vrot.slane %v6185_v8, %v8248_v43  ;;  %v4611_v48 = vrot.slane %v6187_v1, %v8248_v43 }
 0x809   : > { %v4627_v26 = vrot.slane %v6189_v44, %v8248_v43  ;;  %v4643_v53 = vrot.slane %v6191_v51, %v8248_v43 }
 0x80a   : > { %5092 = vbcast.lane.b32.xlu1 %v5086_v21, 264  ;;  %5081 = vbcast.lane.b32.xlu0 %v5075_v54, 264  ;;  %v4651_v42 = vcombine.low %v4595_v59, %v4611_v48  ;;  %v4652_v40 = vcombine.high %v4595_v59, %v4611_v48 }
 0x80b   : > { %v4683_v47 = vcombine.low %v4627_v26, %v4643_v53  ;;  %v4684_v17 = vcombine.high %v4627_v26, %v4643_v53 }
 0x80c   : > { %v8273_v35 = vrot.slane %v4651_v42, %v8256_v14  ;;  %v8279_v21 = vrot.slane %v4652_v40, %v8256_v14 }
 0x80d   : > { %v8276_v18 = vrot.slane %v4683_v47, %v8256_v14  ;;  %v8282_v54 = vrot.slane %v4684_v17, %v8256_v14 }
 0x80e   : > { %5114 = vbcast.lane.b32.xlu1 %v5108_v58, 264  ;;  %5103 = vbcast.lane.b32.xlu0 %v5097_v12, 264 }
 0x80f   : > { %v4715_v0 = vcombine.low %v8273_v35, %v8276_v18  ;;  %v4716_v11 = vcombine.high %v8273_v35, %v8276_v18  ;;  %v4717_v38 = vcombine.low %v8279_v21, %v8282_v54 }
 0x844   : > { %v8264_v56 = vpop.permute.xlu1 %4130  ;;  %v4113_v7 = vpop.permute.xlu0 %4112 }
 0x848   : > { %v8270_v45 = vpop.permute.xlu1 %4136  ;;  %v4119_v46 = vpop.permute.xlu0 %4118 }
 0x849   : > { %v4315_v30 = vcombine.low %v4105_v10, %v4119_v46  ;;  %v4316_v57 = vcombine.high %v4105_v10, %v4119_v46 }
 0x84b   : > { %v4323_v58 = vrot.slane %v4315_v30, %v8248_v43  ;;  %v4330_v12 = vrot.slane %v4316_v57, %v8248_v43  ;;  %v4718_v30 = vcombine.high %v8279_v21, %v8282_v54 }
 0x84c   : > { %v4115_v62 = vpop.permute.xlu1 %4114  ;;  %v4125_v24 = vpop.permute.xlu0 %4124 }
 0x84d   : > { %v4331_v23 = vcombine.low %v4113_v7, %v4125_v24  ;;  %v4332_v34 = vcombine.high %v4113_v7, %v4125_v24 }
 0x84f   : > { %v4339_v3 = vrot.slane %v4331_v23, %v8248_v43  ;;  %v4346_v19 = vrot.slane %v4332_v34, %v8248_v43 }
 0x850   : > { %v4127_v6 = vpop.permute.xlu1 %4126  ;;  %v4121_v15 = vpop.permute.xlu0 %4120 }
 0x851   : > { %v4379_v10 = vcombine.low %v4323_v58, %v4339_v3  ;;  %v4380_v36 = vcombine.high %v4323_v58, %v4339_v3  ;;  %v4395_v13 = vcombine.low %v4330_v12, %v4346_v19  ;;  %v4396_v22 = vcombine.high %v4330_v12, %v4346_v19 }
 0x852   : > { %v4467_v9 = vcombine.low %v4115_v62, %v4127_v6  ;;  %v4468_v60 = vcombine.high %v4115_v62, %v4127_v6  ;;  %v4451_v61 = vcombine.low %v4154_v5, %v4121_v15  ;;  %v4452_v50 = vcombine.high %v4154_v5, %v4121_v15 }
 0x853   : > { %v4387_v37 = vrot.slane %v4379_v10, %v8256_v14  ;;  %v4394_v63 = vrot.slane %v4380_v36, %v8256_v14  ;;  %v4403_v55 = vrot.slane %v4395_v13, %v8256_v14  ;;  %v4410_v25 = vrot.slane %v4396_v22, %v8256_v14 }
 0x854   : > { %v4475_v49 = vrot.slane %v4467_v9, %v8248_v43  ;;  %v4482_v16 = vrot.slane %v4468_v60, %v8248_v43  ;;  %v4459_v41 = vrot.slane %v4451_v61, %v8248_v43  ;;  %v4466_v2 = vrot.slane %v4452_v50, %v8248_v43  ;;  %v4143_v31 = vpop.permute.xlu1 %4142  ;;  %v4141_v39 = vpop.permute.xlu0 %4140 }
 0x855   : > { %v6193_v20 = vcombine.low %v4387_v37, %v4394_v63  ;;  %v6195_v4 = vcombine.high %v4387_v37, %v4394_v63  ;;  %v6197_v27 = vcombine.low %v4403_v55, %v4410_v25  ;;  %v6199_v8 = vcombine.high %v4403_v55, %v4410_v25 }
 0x856   : > { %v4515_v1 = vcombine.low %v4459_v41, %v4475_v49  ;;  %v4516_v44 = vcombine.high %v4459_v41, %v4475_v49  ;;  %v4531_v51 = vcombine.low %v4466_v2, %v4482_v16  ;;  %v4532_v28 = vcombine.high %v4466_v2, %v4482_v16 }
 0x857   : > { %v4347_v52 = vcombine.low %v8264_v56, %v4143_v31  ;;  %v4348_v7 = vcombine.high %v8264_v56, %v4143_v31  ;;  %v4211_v59 = vcombine.low %v8252_v33, %v4141_v39  ;;  %v4212_v48 = vcombine.high %v8252_v33, %v4141_v39 }
 0x858   : > { %v8308_v26 = vrot.slane %v4515_v1, %v8256_v14  ;;  %v8311_v53 = vrot.slane %v4516_v44, %v8256_v14  ;;  %v8314_v46 = vrot.slane %v4531_v51, %v8256_v14  ;;  %v8317_v42 = vrot.slane %v4532_v28, %v8256_v14  ;;  %v4149_v40 = vpop.permute.xlu1 %4148  ;;  %v4147_v47 = vpop.permute.xlu0 %4146 }
 0x859   : > { %v4355_v56 = vrot.slane %v4347_v52, %v8248_v43  ;;  %v4362_v17 = vrot.slane %v4348_v7, %v8248_v43  ;;  %v4219_v33 = vrot.slane %v4211_v59, %v8248_v43  ;;  %v4226_v23 = vrot.slane %v4212_v48, %v8248_v43 }
 0x85a   : > { %v6201_v57 = vcombine.low %v8308_v26, %v8311_v53  ;;  %v6203_v62 = vcombine.high %v8308_v26, %v8311_v53  ;;  %v6205_v24 = vcombine.low %v8314_v46, %v8317_v42  ;;  %v4363_v34 = vcombine.low %v8270_v45, %v4149_v40 }
 0x85b   : > { %v4364_v58 = vcombine.high %v8270_v45, %v4149_v40  ;;  %v4227_v12 = vcombine.low %v8258_v32, %v4147_v47  ;;  %v4228_v3 = vcombine.high %v8258_v32, %v4147_v47  ;;  %v8336_v19 = vrot.slane %v6193_v20, %v8248_v43 }
 0x85c   : > { %v8339_v5 = vrot.slane %v6195_v4, %v8248_v43  ;;  %v8342_v6 = vrot.slane %v6197_v27, %v8248_v43  ;;  %v8345_v15 = vrot.slane %v6199_v8, %v8248_v43  ;;  %v4371_v10 = vrot.slane %v4363_v34, %v8248_v43  ;;  %v4139_v22 = vpop.permute.xlu1 %4138  ;;  %v4133_v9 = vpop.permute.xlu0 %4132 }
 0x85d   : > { %v4378_v45 = vrot.slane %v4364_v58, %v8248_v43  ;;  %v4235_v36 = vrot.slane %v4227_v12, %v8248_v43  ;;  %v4242_v32 = vrot.slane %v4228_v3, %v8248_v43  ;;  %v6207_v13 = vcombine.high %v8314_v46, %v8317_v42 }
 0x85e   : > { %v4787_v60 = vcombine.low %v8336_v19, %v8339_v5  ;;  %v4788_v61 = vcombine.high %v8336_v19, %v8339_v5  ;;  %v4819_v50 = vcombine.low %v8342_v6, %v8345_v15  ;;  %v4411_v37 = vcombine.low %v4355_v56, %v4371_v10 }
 0x85f   : > { %v4412_v63 = vcombine.high %v4355_v56, %v4371_v10  ;;  %v4427_v55 = vcombine.low %v4362_v17, %v4378_v45  ;;  %v4428_v25 = vcombine.high %v4362_v17, %v4378_v45  ;;  %v4275_v49 = vcombine.low %v4219_v33, %v4235_v36 }
 0x860   : > { %v4276_v16 = vcombine.high %v4219_v33, %v4235_v36  ;;  %v4291_v41 = vcombine.low %v4226_v23, %v4242_v32  ;;  %v4292_v2 = vcombine.high %v4226_v23, %v4242_v32  ;;  %v4419_v31 = vrot.slane %v4411_v37, %v8256_v14  ;;  %v4151_v40 = vpop.permute.xlu1 %4150  ;;  %v4145_v47 = vpop.permute.xlu0 %4144 }
 0x861   : > { %v4426_v39 = vrot.slane %v4412_v63, %v8256_v14  ;;  %v8362_v20 = vrot.slane %v4427_v55, %v8256_v14  ;;  %v8365_v4 = vrot.slane %v4428_v25, %v8256_v14  ;;  %v4283_v27 = vrot.slane %v4275_v49, %v8256_v14 }
 0x862   : > { %v4290_v8 = vrot.slane %v4276_v16, %v8256_v14  ;;  %v4299_v1 = vrot.slane %v4291_v41, %v8256_v14  ;;  %v4306_v44 = vrot.slane %v4292_v2, %v8256_v14  ;;  %v4820_v7 = vcombine.high %v8342_v6, %v8345_v15 }
 0x863   : > { %v6194_v51 = vcombine.low %v4419_v31, %v4426_v39  ;;  %v6196_v28 = vcombine.high %v4419_v31, %v4426_v39  ;;  %v6198_v52 = vcombine.low %v8362_v20, %v8365_v4  ;;  %v6200_v23 = vcombine.high %v8362_v20, %v8365_v4 }
 0x864   : > { %v6186_v59 = vcombine.low %v4283_v27, %v4290_v8  ;;  %v6188_v48 = vcombine.high %v4283_v27, %v4290_v8  ;;  %v6190_v26 = vcombine.low %v4299_v1, %v4306_v44  ;;  %v6192_v53 = vcombine.high %v4299_v1, %v4306_v44 }
 0x865   : > { %v8376_v56 = vrot.slane %v6194_v51, %v8248_v43  ;;  %v8379_v17 = vrot.slane %v6196_v28, %v8248_v43  ;;  %v8382_v33 = vrot.slane %v6198_v52, %v8248_v43  ;;  %v4499_v6 = vcombine.low %v4139_v22, %v4151_v40 }
 0x866   : > { %v8387_v34 = vrot.slane %v6186_v59, %v8248_v43  ;;  %v8390_v58 = vrot.slane %v6188_v48, %v8248_v43  ;;  %v8393_v12 = vrot.slane %v6190_v26, %v8248_v43  ;;  %v8396_v3 = vrot.slane %v6192_v53, %v8248_v43 }
 0x867   : > { %v4500_v15 = vcombine.high %v4139_v22, %v4151_v40  ;;  %v4483_v10 = vcombine.low %v4133_v9, %v4145_v47  ;;  %v4484_v45 = vcombine.high %v4133_v9, %v4145_v47  ;;  %v4795_v36 = vrot.slane %v4787_v60, %v8256_v14 }
 0x868   : > { %v4827_v32 = vrot.slane %v4819_v50, %v8256_v14  ;;  %v4867_v37 = vrot.slane %v6201_v57, %v8248_v43  ;;  %v4883_v63 = vrot.slane %v6203_v62, %v8248_v43  ;;  %v4507_v55 = vrot.slane %v4499_v6, %v8248_v43 }
 0x869   : > { %v4514_v25 = vrot.slane %v4500_v15, %v8248_v43  ;;  %v4491_v49 = vrot.slane %v4483_v10, %v8248_v43  ;;  %v4498_v16 = vrot.slane %v4484_v45, %v8248_v43  ;;  %v4899_v9 = vrot.slane %v6205_v24, %v8248_v43 }
 0x86a   : > { %v4851_v41 = vcombine.low %v4795_v36, %v4827_v32  ;;  %v4852_v22 = vcombine.high %v4795_v36, %v4827_v32  ;;  %v4915_v60 = vrot.slane %v6207_v13, %v8248_v43  ;;  %v4923_v20 = vcombine.low %v4867_v37, %v4883_v63  ;;  %v6782_v36 = vld [vmem:[%s7398_s12] sm:$0xff]   ;;  %v6783_v32 = vld [vmem:[%s7398_s12 + $0x8] sm:$0xff]  }
 0x86b   : > { %v4547_v57 = vcombine.low %v4491_v49, %v4507_v55  ;;  %v4548_v50 = vcombine.high %v4491_v49, %v4507_v55  ;;  %v4563_v62 = vcombine.low %v4498_v16, %v4514_v25  ;;  %v4564_v2 = vcombine.high %v4498_v16, %v4514_v25 }
 0x86c   : > { %v5011_v31 = vpack.c.bf16 %v4851_v41, %v4715_v0  ;;  %v5013_v39 = vpack.c.bf16 %v4852_v22, %v4716_v11  ;;  %v4955_v4 = vcombine.low %v4899_v9, %v4915_v60  ;;  %v4931_v13 = vrot.slane %v4923_v20, %v8256_v14 }
 0x86d   : > { %v4555_v27 = vrot.slane %v4547_v57, %v8256_v14  ;;  %v4562_v46 = vrot.slane %v4548_v50, %v8256_v14  ;;  %v4571_v42 = vrot.slane %v4563_v62, %v8256_v14  ;;  %v4578_v24 = vrot.slane %v4564_v2, %v8256_v14 }
 0x86e   : > { %6446 = vmatpush3.bf16.msra.mxu0 %v5011_v31  ;;  %6454 = vmatpush3.bf16.msra.mxu1 %v5013_v39  ;;  %v4963_v0 = vrot.slane %v4955_v4, %v8256_v14  ;;  %v4802_v35 = vrot.slane %v4788_v61, %v8256_v14  ;;  %v4834_v28 = vrot.slane %v4820_v7, %v8256_v14 }
 0x86f   : > { %v6202_v18 = vcombine.low %v4555_v27, %v4562_v46  ;;  %v6204_v11 = vcombine.high %v4555_v27, %v4562_v46  ;;  %v6206_v8 = vcombine.low %v4571_v42, %v4578_v24  ;;  %v6208_v1 = vcombine.high %v4571_v42, %v4578_v24  ;;  %6447 = vmatprep.subr.bf16.mxu0 %v7099_v29  ;;  %v6784_v24 = vld [vmem:[%s7398_s12 + $0x10] sm:$0xff]  }
 0x870   : > { %6455 = vmatprep.subr.bf16.mxu1 %v7099_v29  ;;  %v4987_v44 = vcombine.low %v4931_v13, %v4963_v0  ;;  %v4988_v51 = vcombine.high %v4931_v13, %v4963_v0  ;;  %v4924_v52 = vcombine.high %v4867_v37, %v4883_v63  ;;  %v8431_v59 = vrot.slane %v6200_v23, %v8248_v43  ;;  %v6785_v13 = vld [vmem:[%s7398_s12 + $0x18] sm:$0xff]  }
 0x871   : > { %v8434_v19 = vrot.slane %v6202_v18, %v8248_v43  ;;  %v8437_v5 = vrot.slane %v6204_v11, %v8248_v43  ;;  %v8440_v61 = vrot.slane %v6206_v8, %v8248_v43  ;;  %v4853_v53 = vcombine.low %v4802_v35, %v4834_v28 }
 0x872   : > { %v5012_v48 = vpack.c.bf16 %v4987_v44, %v4987_v44  ;;  %v5014_v26 = vpack.c.bf16 %v4988_v51, %v4988_v51  ;;  %v4854_v40 = vcombine.high %v4802_v35, %v4834_v28  ;;  %v4938_v7 = vrot.slane %v4924_v52, %v8256_v14 }
 0x873   : > { %v4956_v47 = vcombine.high %v4899_v9, %v4915_v60  ;;  %v4667_v23 = vcombine.low %v8387_v34, %v8390_v58  ;;  %v4699_v6 = vcombine.low %v8393_v12, %v8396_v3  ;;  %v8448_v15 = vrot.slane %v6208_v1, %v8248_v43 }
 0x874   : > { %v5127_v10 = vsel %vm5125_vm11, %v5012_v48, 0  ;;  %v5179_v45 = vsel %vm5125_vm11, %v5014_v26, 0  ;;  %v5015_v37 = vpack.c.bf16 %v4853_v53, %v4717_v38  ;;  %v4803_v49 = vcombine.low %v8376_v56, %v8379_v17  ;;  %v6786_v26 = vld [vmem:[%s7398_s12 + $0x20] sm:$0xff]   ;;  %v6787_v53 = vld [vmem:[%s7398_s12 + $0x28] sm:$0xff]  }
 0x875   : > { %6448 = vmatpush3.bf16.msra.mxu0 %v5127_v10  ;;  %6456 = vmatpush3.bf16.msra.mxu1 %v5179_v45  ;;  %v4970_v63 = vrot.slane %v4956_v47, %v8256_v14  ;;  %v4675_v55 = vrot.slane %v4667_v23, %v8256_v14  ;;  %v4707_v25 = vrot.slane %v4699_v6, %v8256_v14 }
 0x876   : > { %6461 = vmatprep.subr.bf16.mxu0 %v7099_v29  ;;  %6469 = vmatprep.subr.bf16.mxu1 %v7099_v29  ;;  %v4835_v16 = vcombine.low %v8382_v33, %v8431_v59  ;;  %v4939_v38 = vcombine.low %v8434_v19, %v8437_v5  ;;  %v5017_v41 = vpack.c.bf16 %v4854_v40, %v4718_v30 }
 0x877   : > { %v4989_v22 = vcombine.low %v4938_v7, %v4970_v63  ;;  %v4990_v9 = vcombine.high %v4938_v7, %v4970_v63  ;;  %v4719_v60 = vcombine.low %v4675_v55, %v4707_v25  ;;  %v4811_v57 = vrot.slane %v4803_v49, %v8256_v14  ;;  %v5034_v63 = vpop.permute.xlu0 %5033 }
 0x878   : > { %6450 = vmatmul.mubr.msk.bf16.vlgmr.msra.gmra.mrb[0].mxu0 %vm5121_vm12, %v6782_v36  ;;  %6458 = vmatmul.mubr.msk.bf16.vlgmr.msra.gmra.mrb[0].mxu1 %vm5121_vm12, %v6783_v32  ;;  %v4843_v50 = vrot.slane %v4835_v16, %v8256_v14  ;;  %v4947_v62 = vrot.slane %v4939_v38, %v8256_v14  ;;  %v4971_v54 = vcombine.low %v8440_v61, %v8448_v15  ;;  %v6788_v36 = vld [vmem:[%s7398_s12 + $0x30] sm:$0xff]   ;;  %v6789_v32 = vld [vmem:[%s7398_s12 + $0x38] sm:$0xff]  }
 0x879   : > { %6462 = vmatpush3.bf16.msra.mxu0 %v5015_v37  ;;  %6470 = vmatpush3.bf16.msra.mxu1 %v5017_v41  ;;  %v5016_v2 = vpack.c.bf16 %v4989_v22, %v4989_v22  ;;  %v5018_v21 = vpack.c.bf16 %v4990_v9, %v4990_v9  ;;  %v4720_v31 = vcombine.high %v4675_v55, %v4707_v25  ;;  %v5045_v37 = vpop.permute.xlu1 %5044 }
 0x87a   : > { %6463 = vmatprep.subr.bf16.mxu0 %v7099_v29  ;;  %6471 = vmatprep.subr.bf16.mxu1 %v7099_v29  ;;  %v4855_v30 = vcombine.low %v4811_v57, %v4843_v50  ;;  %v4668_v39 = vcombine.high %v8387_v34, %v8390_v58  ;;  %v4856_v20 = vcombine.high %v4811_v57, %v4843_v50 }
 0x87b   : > { %6465 = vmatprep.mubr.msk.bf16.mxu0 %vm7100_vm9, %v7099_v29  ;;  %6473 = vmatprep.mubr.msk.bf16.mxu1 %vm7100_vm9, %v7099_v29  ;;  %v4979_v4 = vrot.slane %v4971_v54, %v8256_v14  ;;  %v4700_v27 = vcombine.high %v8393_v12, %v8396_v3  ;;  %v5231_v46 = vsel %vm5125_vm11, %v5016_v2, 0  ;;  %v5283_v42 = vsel %vm5125_vm11, %v5018_v21, 0  ;;  %v5056_v25 = vpop.permute.xlu0 %5055 }
 0x87c   : > { %v5019_v0 = vpack.c.bf16 %v4855_v30, %v4719_v60  ;;  %v4804_v34 = vcombine.high %v8376_v56, %v8379_v17  ;;  %v4682_v18 = vrot.slane %v4668_v39, %v8256_v14  ;;  %v4836_v3 = vcombine.high %v8382_v33, %v8431_v59 }
 0x87d   : > { %6464 = vmatpush3.bf16.msra.mxu0 %v5231_v46  ;;  %6472 = vmatpush3.bf16.msra.mxu1 %v5283_v42  ;;  %v4991_v58 = vcombine.low %v4947_v62, %v4979_v4  ;;  %v4992_v35 = vcombine.high %v4947_v62, %v4979_v4  ;;  %v4714_v12 = vrot.slane %v4700_v27, %v8256_v14  ;;  %v5067_v55 = vpop.permute.xlu1 %5066 }
 0x87e   : > { %6477 = vmatprep.subr.bf16.mxu0 %v7099_v29  ;;  %6485 = vmatprep.subr.bf16.mxu1 %v7099_v29  ;;  %v4940_v11 = vcombine.high %v8434_v19, %v8437_v5  ;;  %v5021_v8 = vpack.c.bf16 %v4856_v20, %v4720_v31  ;;  %v4818_v1 = vrot.slane %v4804_v34, %v8256_v14 }
 0x87f   : > { %v5020_v56 = vpack.c.bf16 %v4991_v58, %v4991_v58  ;;  %v5022_v17 = vpack.c.bf16 %v4992_v35, %v4992_v35  ;;  %v4850_v44 = vrot.slane %v4836_v3, %v8256_v14  ;;  %v4972_v33 = vcombine.high %v8440_v61, %v8448_v15  ;;  %v5078_v16 = vpop.permute.xlu0 %5077 }
 0x880   : > { %6466 = vmatmul.mubr.msk.bf16.vlgmr.msra.gmra.mrb[4].mxu0 %vm5121_vm12, %v6784_v24  ;;  %6474 = vmatmul.mubr.msk.bf16.vlgmr.msra.gmra.mrb[4].mxu1 %vm5121_vm12, %v6785_v13  ;;  %v4954_v51 = vrot.slane %v4940_v11, %v8256_v14  ;;  %v4721_v59 = vcombine.low %v4682_v18, %v4714_v12  ;;  %v4722_v61 = vcombine.high %v4682_v18, %v4714_v12 }
 0x881   : > { %6478 = vmatpush3.bf16.msra.mxu0 %v5019_v0  ;;  %6486 = vmatpush3.bf16.msra.mxu1 %v5021_v8  ;;  %v5335_v28 = vsel %vm5125_vm11, %v5020_v56, 0  ;;  %v5387_v52 = vsel %vm5125_vm11, %v5022_v17, 0  ;;  %v4986_v19 = vrot.slane %v4972_v33, %v8256_v14  ;;  %v4857_v5 = vcombine.low %v4818_v1, %v4850_v44  ;;  %v5089_v49 = vpop.permute.xlu1 %5088 }
 0x882   : > { %6479 = vmatprep.subr.bf16.mxu0 %v7099_v29  ;;  %6487 = vmatprep.subr.bf16.mxu1 %v7099_v29  ;;  %v4858_v48 = vcombine.high %v4818_v1, %v4850_v44 }
 0x883   : > { %6481 = vmatprep.mubr.msk.bf16.mxu0 %vm7100_vm9, %v7099_v29  ;;  %6489 = vmatprep.mubr.msk.bf16.mxu1 %vm7100_vm9, %v7099_v29  ;;  %v4993_v40 = vcombine.low %v4954_v51, %v4986_v19  ;;  %v4994_v7 = vcombine.high %v4954_v51, %v4986_v19  ;;  %v5023_v47 = vpack.c.bf16 %v4857_v5, %v4721_v59 }
 0x884   : > { %v5025_v23 = vpack.c.bf16 %v4858_v48, %v4722_v61 }
 0x885   : > { %6480 = vmatpush3.bf16.msra.mxu0 %v5335_v28  ;;  %6488 = vmatpush3.bf16.msra.mxu1 %v5387_v52  ;;  %v5024_v6 = vpack.c.bf16 %v4993_v40, %v4993_v40  ;;  %v5026_v15 = vpack.c.bf16 %v4994_v7, %v4994_v7  ;;  %v8537_v38 = vpop.permute.xlu1 %5110 }
 0x886   : > { %6493 = vmatprep.subr.bf16.mxu0 %v7099_v29  ;;  %6501 = vmatprep.subr.bf16.mxu1 %v7099_v29 }
 0x887   : > { %v5439_v10 = vsel %vm5125_vm11, %v5024_v6, 0  ;;  %v5491_v45 = vsel %vm5125_vm11, %v5026_v15, 0 }
 0x888   : > { %6482 = vmatmul.mubr.msk.bf16.vlgmr.msra.gmra.mrb[8].mxu0 %vm5121_vm12, %v6786_v26  ;;  %6490 = vmatmul.mubr.msk.bf16.vlgmr.msra.gmra.mrb[8].mxu1 %vm5121_vm12, %v6787_v53 }
 0x889   : > { %6494 = vmatpush3.bf16.msra.mxu0 %v5023_v47  ;;  %6502 = vmatpush3.bf16.msra.mxu1 %v5025_v23  ;;  %v5049_v39 = vpop.permute.xlu1 %5048 }
 0x88a   : > { %6495 = vmatprep.subr.bf16.mxu0 %v7099_v29  ;;  %6503 = vmatprep.subr.bf16.mxu1 %v7099_v29 }
 0x88b   : > { %6497 = vmatprep.mubr.msk.bf16.mxu0 %vm7100_vm9, %v7099_v29  ;;  %6505 = vmatprep.mubr.msk.bf16.mxu1 %vm7100_vm9, %v7099_v29  ;;  %v8539_v29 = vpop.permute.xlu0 %5099 }
 0x88d   : > { %6496 = vmatpush3.bf16.msra.mxu0 %v5439_v10  ;;  %6504 = vmatpush3.bf16.msra.mxu1 %v5491_v45  ;;  %v5071_v56 = vpop.permute.xlu1 %5070 }
 0x88f   : > { %v5038_v20 = vpop.permute.xlu0 %5037 }
 0x890   : > { %6498 = vmatmul.mubr.msk.bf16.vlgmr.msra.gmra.mrb[12].mxu0 %vm5121_vm12, %v6788_v36  ;;  %6506 = vmatmul.mubr.msk.bf16.vlgmr.msra.gmra.mrb[12].mxu1 %vm5121_vm12, %v6789_v32 }
 0x891   : > { %v5093_v15 = vpop.permute.xlu1 %5092 }
 0x893   : > { %v5060_v17 = vpop.permute.xlu0 %5059 }
 0x897   : > { %v5082_v10 = vpop.permute.xlu0 %5081 }
 0x94b   : > { %v5163_v41 = vpop.f32.mrb[0].mxu0  ;;  %v5215_v22 = vpop.f32.mrb[0].mxu1 }
 0x94c   : > { %v5164_v9 = vadd.f32 %v5163_v41, %v5034_v63  ;;  %v5216_v60 = vadd.f32 %v5215_v22, %v5045_v37  ;;  %v6451_v57 = vpop.f32.mrb[1].mxu0  ;;  %v6459_v50 = vpop.f32.mrb[1].mxu1 }
 0x94d   : > { %v5166_v62 = vpop.f32.mrb[2].mxu0  ;;  %v5218_v2 = vpop.f32.mrb[2].mxu1 }
 0x94e   : > { %v6225_v21 = vmul.f32 -1.442695, %v5164_v9  ;;  %v6226_v54 = vmul.f32 -1.442695, %v5216_v60  ;;  %v6452_v30 = vpop.f32.mrb[3].mxu0  ;;  %v6460_v31 = vpop.f32.mrb[3].mxu1  ;;  %v5219_v3 = vadd.f32 %v5218_v2, %v5049_v39  ;;  %v5167_v11 = vadd.f32 %v5166_v62, %v5038_v20 }
 0x950   : > { %6790 = vpow2.f32 %v6225_v21 }
 0x951   : > { %6792 = vpow2.f32 %v6226_v54 }
 0x953   : > { %v5267_v4 = vpop.f32.mrb[4].mxu0  ;;  %v5319_v27 = vpop.f32.mrb[4].mxu1 }
 0x954   : > { %v5268_v46 = vadd.f32 %v5267_v4, %v5056_v25  ;;  %v5320_v42 = vadd.f32 %v5319_v27, %v5067_v55  ;;  %v6467_v24 = vpop.f32.mrb[5].mxu0  ;;  %v6475_v13 = vpop.f32.mrb[5].mxu1 }
 0x955   : > { %v5270_v0 = vpop.f32.mrb[6].mxu0  ;;  %v5322_v34 = vpop.f32.mrb[6].mxu1 }
 0x956   : > { %v6227_v58 = vmul.f32 -1.442695, %v5268_v46  ;;  %v6228_v35 = vmul.f32 -1.442695, %v5320_v42  ;;  %v6468_v18 = vpop.f32.mrb[7].mxu0  ;;  %v6476_v12 = vpop.f32.mrb[7].mxu1  ;;  %v5323_v47 = vadd.f32 %v5322_v34, %v5071_v56  ;;  %v5271_v23 = vadd.f32 %v5270_v0, %v5060_v17 }
 0x957   : > { %v5115_v46 = vpop.permute.xlu1 %5114  ;;  %v5104_v24 = vpop.permute.xlu0 %5103 }
 0x958   : > { %6794 = vpow2.f32 %v6227_v58 }
 0x959   : > { %6796 = vpow2.f32 %v6228_v35 }
 0x95a   : > { %v6791_v8 = vpop.eup %6790  ;;  %6798 = vtanh.f32 %v5219_v3 }
 0x95b   : > { %v6793_v1 = vpop.eup %6792  ;;  %v5558_v44 = vadd.f32 1.0, %v6791_v8  ;;  %v5371_v51 = vpop.f32.mrb[8].mxu0  ;;  %6800 = vtanh.f32 %v5167_v11 }
 0x95c   : > { %v5423_v33 = vpop.f32.mrb[8].mxu1  ;;  %v5559_v28 = vadd.f32 1.0, %v6793_v1  ;;  %v5372_v52 = vadd.f32 %v5371_v51, %v5078_v16  ;;  %v6483_v19 = vpop.f32.mrb[9].mxu0 }
 0x95d   : > { %v5424_v59 = vadd.f32 %v5423_v33, %v5089_v49  ;;  %v6491_v5 = vpop.f32.mrb[9].mxu1  ;;  %6802 = vrcp.f32 %v5558_v44  ;;  %v5374_v61 = vpop.f32.mrb[10].mxu0 }
 0x95e   : > { %v5426_v48 = vpop.f32.mrb[10].mxu1  ;;  %6804 = vrcp.f32 %v5559_v28  ;;  %v6229_v26 = vmul.f32 -1.442695, %v5372_v52  ;;  %v6484_v40 = vpop.f32.mrb[11].mxu0  ;;  %v5375_v39 = vadd.f32 %v5374_v61, %v5082_v10 }
 0x95f   : > { %v6230_v53 = vmul.f32 -1.442695, %v5424_v59  ;;  %v6492_v7 = vpop.f32.mrb[11].mxu1  ;;  %v5427_v54 = vadd.f32 %v5426_v48, %v5093_v15 }
 0x960   : > { %6806 = vpow2.f32 %v6229_v26 }
 0x961   : > { %6808 = vpow2.f32 %v6230_v53 }
 0x962   : > { %v6795_v6 = vpop.eup %6794  ;;  %6810 = vtanh.f32 %v5323_v47 }
 0x963   : > { %v6797_v45 = vpop.eup %6796  ;;  %v5560_v36 = vadd.f32 1.0, %v6795_v6  ;;  %v5475_v32 = vpop.f32.mrb[12].mxu0  ;;  %6812 = vtanh.f32 %v5271_v23 }
 0x964   : > { %v5527_v37 = vpop.f32.mrb[12].mxu1  ;;  %v5561_v63 = vadd.f32 1.0, %v6797_v45  ;;  %v5476_v55 = vadd.f32 %v5475_v32, %v8539_v29  ;;  %v6499_v49 = vpop.f32.mrb[13].mxu0 }
 0x965   : > { %v5528_v25 = vadd.f32 %v5527_v37, %v8537_v38  ;;  %v6507_v16 = vpop.f32.mrb[13].mxu1  ;;  %v6799_v41 = vpop.eup %6798  ;;  %6814 = vrcp.f32 %v5560_v36 }
 0x966   : > { %v5478_v22 = vpop.f32.mrb[14].mxu0  ;;  %v5530_v9 = vpop.f32.mrb[14].mxu1  ;;  %6816 = vrcp.f32 %v5561_v63  ;;  %v6231_v57 = vmul.f32 -1.442695, %v5476_v55 }
 0x967   : > { %v6801_v60 = vpop.eup %6800  ;;  %v6232_v50 = vmul.f32 -1.442695, %v5528_v25  ;;  %v6500_v62 = vpop.f32.mrb[15].mxu0  ;;  %v5531_v34 = vadd.f32 %v5530_v9, %v5115_v46  ;;  %v5479_v18 = vadd.f32 %v5478_v22, %v5104_v24 }
 0x968   : > { %v6508_v2 = vpop.f32.mrb[15].mxu1  ;;  %v6803_v21 = vpop.eup %6802  ;;  %6818 = vpow2.f32 %v6231_v57 }
 0x969   : > { %v6805_v30 = vpop.eup %6804  ;;  %v5590_v31 = vmul.f32 %v6803_v21, %v6801_v60  ;;  %6820 = vpow2.f32 %v6232_v50 }
 0x96a   : > { %v5591_v29 = vmul.f32 %v6805_v30, %v6799_v41  ;;  %v6807_v38 = vpop.eup %6806  ;;  %6822 = vtanh.f32 %v5427_v54 }
 0x96b   : > { %v6809_v20 = vpop.eup %6808  ;;  %v5562_v4 = vadd.f32 1.0, %v6807_v38  ;;  %6824 = vtanh.f32 %v5375_v39 }
 0x96c   : > { %v5563_v27 = vadd.f32 1.0, %v6809_v20  ;;  %v6811_v42 = vpop.eup %6810 }
 0x96d   : > { %6826 = vrcp.f32 %v5562_v4  ;;  %v6813_v13 = vpop.eup %6812 }
 0x96e   : > { %6828 = vrcp.f32 %v5563_v27 }
 0x96f   : > { %v6815_v0 = vpop.eup %6814  ;;  %6830 = vtanh.f32 %v5531_v34 }
 0x970   : > { %v6817_v58 = vpop.eup %6816  ;;  %v5592_v35 = vmul.f32 %v6815_v0, %v6813_v13  ;;  %6832 = vtanh.f32 %v5479_v18 }
 0x971   : > { %v5593_v12 = vmul.f32 %v6817_v58, %v6811_v42 }
 0x972   : > { %v6819_v3 = vpop.eup %6818  ;;  %v5598_v11 = vcombine.low %v5590_v31, %v5592_v35  ;;  %v5599_v8 = vcombine.high %v5590_v31, %v5592_v35 }
 0x973   : > { %v6821_v56 = vpop.eup %6820  ;;  %v5614_v17 = vcombine.low %v5591_v29, %v5593_v12  ;;  %v5615_v1 = vcombine.high %v5591_v29, %v5593_v12  ;;  %v5564_v44 = vadd.f32 1.0, %v6819_v3 }
 0x974   : > { %v5606_v51 = vrot.slane %v5598_v11, %v8248_v43  ;;  %v5613_v33 = vrot.slane %v5599_v8, %v8248_v43  ;;  %v5565_v28 = vadd.f32 1.0, %v6821_v56  ;;  %v6823_v52 = vpop.eup %6822 }
 0x975   : > { %v5622_v59 = vrot.slane %v5614_v17, %v8248_v43  ;;  %v5629_v19 = vrot.slane %v5615_v1, %v8248_v43  ;;  %6834 = vrcp.f32 %v5564_v44  ;;  %v6825_v5 = vpop.eup %6824 }
 0x976   : > { %6836 = vrcp.f32 %v5565_v28 }
 0x977   : > { %v6827_v61 = vpop.eup %6826  ;;  %v5662_v48 = vcombine.low %v5606_v51, %v5622_v59  ;;  %v5663_v26 = vcombine.high %v5606_v51, %v5622_v59  ;;  %v5678_v53 = vcombine.low %v5613_v33, %v5629_v19  ;;  %v5679_v40 = vcombine.high %v5613_v33, %v5629_v19 }
 0x978   : > { %v6829_v7 = vpop.eup %6828  ;;  %v5594_v47 = vmul.f32 %v6827_v61, %v6825_v5 }
 0x979   : > { %v5595_v23 = vmul.f32 %v6829_v7, %v6823_v52  ;;  %v5670_v6 = vrot.slane %v5662_v48, %v8256_v14  ;;  %v5677_v15 = vrot.slane %v5663_v26, %v8256_v14  ;;  %v5686_v10 = vrot.slane %v5678_v53, %v8256_v14  ;;  %v6831_v55 = vpop.eup %6830 }
 0x97a   : > { %v5693_v45 = vrot.slane %v5679_v40, %v8256_v14  ;;  %v6833_v16 = vpop.eup %6832 }
 0x97b   : > { %v6233_v36 = vcombine.low %v5670_v6, %v5677_v15  ;;  %v6235_v32 = vcombine.high %v5670_v6, %v5677_v15 }
 0x97c   : > { %v6237_v37 = vcombine.low %v5686_v10, %v5693_v45  ;;  %v6239_v63 = vcombine.high %v5686_v10, %v5693_v45 }
 0x97d   : > { %v5742_v25 = vrot.slane %v6233_v36, %v8248_v43  ;;  %v5758_v49 = vrot.slane %v6235_v32, %v8248_v43 }
 0x97e   : > { %v5774_v41 = vrot.slane %v6237_v37, %v8248_v43  ;;  %v5790_v22 = vrot.slane %v6239_v63, %v8248_v43 }
 0x97f   : > { %v6835_v9 = vpop.eup %6834  ;;  %v5799_v60 = vcombine.high %v5742_v25, %v5758_v49  ;;  %v5798_v57 = vcombine.low %v5742_v25, %v5758_v49 }
 0x980   : > { %v6837_v50 = vpop.eup %6836  ;;  %v5596_v62 = vmul.f32 %v6835_v9, %v6833_v16  ;;  %v5831_v2 = vcombine.high %v5774_v41, %v5790_v22  ;;  %v5830_v21 = vcombine.low %v5774_v41, %v5790_v22 }
 0x981   : > { %v5597_v54 = vmul.f32 %v6837_v50, %v6831_v55  ;;  %v5813_v30 = vrot.slane %v5799_v60, %v8256_v14  ;;  %v5806_v31 = vrot.slane %v5798_v57, %v8256_v14 }
 0x982   : > { %v5630_v39 = vcombine.low %v5594_v47, %v5596_v62  ;;  %v5631_v29 = vcombine.high %v5594_v47, %v5596_v62  ;;  %v5845_v38 = vrot.slane %v5831_v2, %v8256_v14  ;;  %v5838_v20 = vrot.slane %v5830_v21, %v8256_v14 }
 0x983   : > { %v5646_v4 = vcombine.low %v5595_v23, %v5597_v54  ;;  %v5647_v27 = vcombine.high %v5595_v23, %v5597_v54 }
 0x984   : > { %v5638_v46 = vrot.slane %v5630_v39, %v8248_v43  ;;  %v5645_v42 = vrot.slane %v5631_v29, %v8248_v43  ;;  %v5864_v24 = vcombine.low %v5813_v30, %v5845_v38  ;;  %v5863_v13 = vcombine.high %v5806_v31, %v5838_v20 }
 0x985   : > { %v5654_v0 = vrot.slane %v5646_v4, %v8248_v43  ;;  %v5661_v34 = vrot.slane %v5647_v27, %v8248_v43  ;;  %v5865_v58 = vcombine.high %v5813_v30, %v5845_v38  ;;  %v5862_v35 = vcombine.low %v5806_v31, %v5838_v20 }
 0x986   : > { %5875 = vrot.lane.b32.xlu1 %v5864_v24, %s7096_s19  ;;  %5871 = vrot.lane.b32.xlu0 %v5863_v13, %s7097_s3 }
 0x987   : > { %v5694_v18 = vcombine.low %v5638_v46, %v5654_v0  ;;  %v5695_v12 = vcombine.high %v5638_v46, %v5654_v0  ;;  %v5710_v3 = vcombine.low %v5645_v42, %v5661_v34  ;;  %v5711_v11 = vcombine.high %v5645_v42, %v5661_v34 }
 0x989   : > { %v5702_v8 = vrot.slane %v5694_v18, %v8256_v14  ;;  %v5709_v56 = vrot.slane %v5695_v12, %v8256_v14  ;;  %v5718_v17 = vrot.slane %v5710_v3, %v8256_v14  ;;  %v5725_v1 = vrot.slane %v5711_v11, %v8256_v14 }
 0x98a   : > { %5879 = vrot.lane.b32.xlu0 %v5865_v58, %s7095_s18 }
 0x98b   : > { %v6234_v44 = vcombine.low %v5702_v8, %v5709_v56  ;;  %v6236_v51 = vcombine.high %v5702_v8, %v5709_v56  ;;  %v6238_v33 = vcombine.low %v5718_v17, %v5725_v1  ;;  %v6240_v28 = vcombine.high %v5718_v17, %v5725_v1 }
 0x98d   : > { %v5749_v52 = vrot.slane %v6234_v44, %v8248_v43  ;;  %v5765_v59 = vrot.slane %v6236_v51, %v8248_v43  ;;  %v5781_v19 = vrot.slane %v6238_v33, %v8248_v43  ;;  %v5797_v5 = vrot.slane %v6240_v28, %v8248_v43 }
 0x98f   : > { %v5814_v61 = vcombine.low %v5749_v52, %v5765_v59  ;;  %v5846_v48 = vcombine.low %v5781_v19, %v5797_v5  ;;  %v5815_v26 = vcombine.high %v5749_v52, %v5765_v59  ;;  %v5847_v53 = vcombine.high %v5781_v19, %v5797_v5 }
 0x991   : > { %v5822_v40 = vrot.slane %v5814_v61, %v8256_v14  ;;  %v5854_v7 = vrot.slane %v5846_v48, %v8256_v14  ;;  %v5829_v47 = vrot.slane %v5815_v26, %v8256_v14  ;;  %v5861_v23 = vrot.slane %v5847_v53, %v8256_v14 }
 0x993   : > { %v5867_v6 = vcombine.high %v5822_v40, %v5854_v7  ;;  %v5866_v15 = vcombine.low %v5822_v40, %v5854_v7  ;;  %v5869_v10 = vcombine.high %v5829_v47, %v5861_v23  ;;  %v5868_v45 = vcombine.low %v5829_v47, %v5861_v23 }
 0x995   : > { %5887 = vrot.lane.b32.xlu0 %v5867_v6, %s7094_s27  ;;  %5883 = vrot.lane.b32.xlu1 %v5866_v15, %s7093_s26 }
 0x999   : > { %5895 = vrot.lane.b32.xlu0 %v5869_v10, %s7091_s25  ;;  %5891 = vrot.lane.b32.xlu1 %v5868_v45, %s7092_s11 }
 0x9f8   : > { %v5872_v43 = vpop.permute.xlu0 %5871  ;;  %v5876_v36 = vpop.permute.xlu1 %5875 }
 0x9f9   : > { %v5899_v32 = vsel %vm5898_vm13, %v5862_v35, %v5872_v43 }
 0x9fa   : > { %v5901_v14 = vsel %vm5900_vm14, %v5899_v32, %v5876_v36 }
 0x9fc   : > { %v5880_v37 = vpop.permute.xlu0 %5879 }
 0x9fd   : > { %v5903_v63 = vsel %vm5902_vm15, %v5901_v14, %v5880_v37 }
 0xa07   : > { %v5884_v55 = vpop.permute.xlu1 %5883  ;;  %v5888_v25 = vpop.permute.xlu0 %5887 }
 0xa08   : > { %v5905_v49 = vsel %vm5904_vm0, %v5903_v63, %v5884_v55 }
 0xa09   : > { %v5907_v16 = vsel %vm5906_vm1, %v5905_v49, %v5888_v25 }
 0xa0b   : > { %v5892_v41 = vpop.permute.xlu1 %5891  ;;  %v5896_v22 = vpop.permute.xlu0 %5895 }
 0xa0c   : > { %v5909_v9 = vsel %vm5908_vm2, %v5907_v16, %v5892_v41 }
 0xa0d   : > { %v5911_v60 = vsel %vm5910_vm3, %v5909_v9, %v5896_v22 }
 0xa0e   : > { %5912 = vst [vmem:[%s7407_s24] sm:$0xff] %v5911_v60 }
 0xa0f PF: > { %s8692_s12 = sld [smem:[#allocation14_spill]]  ;;  %s8693_s9 = sld [smem:[#allocation22_spill]] }
 0xa10   : > { %s5927_s23 = sshll.u32 %s7407_s24, 4  ;;  %s5914_s10 = scalar_lea.sflag [#allocation5], %s7386_s5  ;;  %s5928_s23 = int_to_ptr.vmem [resolvable:$true] %s5927_s23 }
 0xa11   : > { %s6928_s30 = scalar_lea.vmem %s5928_s23, 128  ;;  %p8694_p2 = scmp.ne.s32.totalorder %s8677_s8, 0 }
 0xa12   : > { %p6929_p3 = scmp.ne.s32.totalorder %s5928_s23, %s6928_s30  ;;  %s7103_s6 = smov [#allocation9]  }
 0xa13   : > { %s6932_s17 = sshll.u32 %s7103_s6, 4  ;;  %s6933_s17 = int_to_ptr.vmem [resolvable:$false] %s6932_s17 }
 0xa14   : > { %p6930_p12 = pnand %p6929_p3, %p8694_p2  ;;  %s6934_s28 = scalar_lea.vmem %s6933_s17, 256 }
 0xa15   : > { %s6242_s1 = sshll.u32 %s8692_s12, 7  ;;  %p6935_p1 = scmp.lt.s32.totalorder %s5928_s23, %s6933_s17 }
 0xa16   : > { %s8587_s4 = scalar_lea.hbm %s8693_s9, %s6242_s1  ;;  %p6931_p5 = pneg %p6930_p12 }
 0xa17   : > { %p6936_p13 = scmp.lt.s32.totalorder %s6934_s28, %s6928_s30 }
 0xa19   : > { %p6937_p4 = por %p6936_p13, %p6935_p1 }
 0xa1b   : > { %p6938_p10 = pnand %p6937_p4, %p6931_p5 }
 0xa1d   : > { %6941 = shalt.err (!%p6938_p10)
}
 0xa1e   : > { %s6942_s5 = scalar_lea.hbm %s8587_s4, 128  ;;  %s6946_s11 = scalar_lea.hbm %s8693_s9, 256 }
 0xa1f   : > { %p6943_p7 = scmp.ne.s32.totalorder %s8587_s4, %s6942_s5  ;;  %p6947_p11 = scmp.lt.u32.totalorder %s8587_s4, %s8693_s9 }
 0xa20   : > { %p6948_p8 = scmp.lt.u32.totalorder %s6946_s11, %s6942_s5  ;;  %p6950_p3 = scmp.lt.u32.totalorder %s6942_s5, %s8587_s4 }
 0xa21   : > { %p6944_p0 = pnand %p6943_p7, %p8694_p2 }
 0xa22   : > { %p6949_p9 = por %p6948_p8, %p6947_p11 }
 0xa23   : > { %p6945_p6 = pneg %p6944_p0 }
 0xa24   : > { %p6951_p12 = por %p6950_p3, %p6949_p9 }
 0xa26   : > { %p6952_p5 = pnand %p6951_p12, %p6945_p6 }
 0xa28   : > { %6955 = shalt.err (!%p6952_p5)
}
 0xa29   : > { %6520 = dma.vmem_to_hbm [thread:$0]  (%p8694_p2), %s5928_s23, 128, %s8587_s4, %s5914_s10  }
 0xa2a PF: > { %s8695_s18 = sld [smem:[#allocation19_spill]]  ;;  %p6537_p1 = scmp.ge.s32.totalorder %s7054_s22, 2 }
 0xa2b   : > { %s5939_s19 = sand.u32 1, %s7026_s15  }
 0xa2c   : > { %s5940_s3 = scalar_lea.sflag [#allocation5], %s5939_s19 }
 0xa30   : > { %p8696_p13 = scmp.ne.s32.totalorder %s8695_s18, 0 }
 0xa32   : > { %p6533_p4 = pnand %p6537_p1, %p8696_p13 }
 0xa34   : > { %7009 = dma.done.wait (!%p6533_p4), %s5940_s3, 128  }
 0xa35   : > { %7011 = vsyncadd (!%p6533_p4), %s5940_s3, 4294967168  ;;  %s22_s22 = sadd.s32 1, %s7054_s22   ;;  %s8697_s0 = sld [smem:[#allocation18_spill]] }
 0xa36   : > { %p19_p10 = scmp.ge.s32.totalorder %s22_s22, 8   ;;  %s8698_s8 = sld [smem:[#allocation13_spill]] }
 0xa37   : > { %s8699_s17 = sld [smem:[#allocation17_spill]]  ;;  %s8700_s1 = sld [smem:[#allocation15_spill]] }
 0xa38   : > { %s8701_s7 = sld [smem:[#allocation16_spill]]  ;;  %s8702_s12 = smov %s7018_s13 }
 0xa39   : > { %s8703_s13 = smov %s7022_s14  ;;  %s8705_s15 = smov %s7030_s16 }
 0xa3a   : > { %s8707_s18 = smov %s7046_s20  ;;  %s8708_s19 = smov %s7050_s21 }
 0xa3b   : > { %s8704_s14 = smov %s8697_s0  ;;  %21 = sbr.rel (!%p19_p10) target bundleno = 15 (0xf), region = 113 }
 0xa3c   : > { %s8706_s16 = smov %s8698_s8 }
 0xa3d   : > { %s8709_s20 = smov %s8700_s1 }
 0xa3e   : > { %s8710_s21 = smov %s8701_s7 }
 0xa42   :  { %5945 = vsyncpa [#allocation4], 1 }
 0xa43   :  { %5947 = vsyncpa [#allocation4 + $0x1], 1 }
 0xa44   :  { %5948 = vsyncpa [#allocation7], 1 }
 0xa45   :  { %5950 = vsyncpa [#allocation7 + $0x1], 1 }
 0xa46   :  { %5951 = vsyncpa [#allocation5], 1 }
 0xa47   :  { %5953 = vsyncpa [#allocation5 + $0x1], 1 }

</bundles_post_ra>
